<compile_context>
chip_gen: v5e
topology: v5e:2x2
jax: 0.10.0
libtpu: 0.0.40
codegen_flags: <defaults>
</compile_context>

<pallas_src>
import functools

import numpy as np
import jax
import jax.numpy as jnp
from jax.experimental import pallas as pl
from jax.experimental.pallas import tpu as pltpu


# ----------------------------------------------------------------------------
# Model constants (fixed by the PyTorch module definition)
# ----------------------------------------------------------------------------
NF = 96            # trunk feature channels
GC = 16            # SSHF growth channels
N_SSHF = 3         # SSHFs per RCMFF
N_CONV = 5         # convs per SSHF
KH_TRUNK = 9       # (9, 1) conv kernel height
PAD_TRUNK = 4      # (4, 0) padding
SLAB_W = NF + (N_CONV - 1) * GC   # 160 lanes: [x | x1 | x2 | x3 | x4]
COUT_PAD = 128                    # padded output-lane width for trunk convs


def _round_up(x, m):
    return (x + m - 1) // m * m


def _conv_taps(h):
    """Kernel-tap offsets d = kh - PAD that touch any valid row of height-h map."""
    taps = []
    for kh in range(KH_TRUNK):
        d = kh - PAD_TRUNK
        if max(0, -d) < min(h, h - d):
            taps.append(d)
    return tuple(taps)


# ----------------------------------------------------------------------------
# Boundary convs: im2col (fused XLA glue inside jit) + one full-block GEMM
# ----------------------------------------------------------------------------
def _gemm_kernel(a_ref, w_ref, b_ref, o_ref, *, act):
    acc = jnp.dot(a_ref[...], w_ref[...], preferred_element_type=jnp.float32)
    acc = acc + b_ref[...]
    if act == "lrelu":
        acc = jnp.where(acc >= 0.0, acc, 0.2 * acc)
    o_ref[...] = acc


def _dense_gemm(a, w, b, act):
    """out = act(a @ w + b).  a:(M,K) bf16, w:(K,N) bf16, b:(1,N) f32 -> f32."""
    m = a.shape[0]
    n = w.shape[1]
    vmem = pl.BlockSpec(memory_space=pltpu.MemorySpace.VMEM)
    return pl.pallas_call(
        functools.partial(_gemm_kernel, act=act),
        out_shape=jax.ShapeDtypeStruct((m, n), jnp.float32),
        in_specs=[vmem, vmem, vmem],
        out_specs=pl.BlockSpec(memory_space=pltpu.MemorySpace.VMEM),
    )(a, w, b)


def conv2d_gemm(x, wb, ksize, stride, padding, act=None):
    """PyTorch-semantics Conv2d via im2col + one full-block Pallas GEMM.

    x: (N, C, H, W) f32.  wb["w"]: (C*kh*kw, O) bf16, wb["b"]: (1, O) f32.
    """
    kh, kw = ksize
    sh, sw = stride
    ph, pw = padding
    n, c, h, w = x.shape
    k, o = wb["w"].shape
    assert k == c * kh * kw, (k, c, kh, kw)
    ho = (h + 2 * ph - kh) // sh + 1
    wo = (w + 2 * pw - kw) // sw + 1

    xp = jnp.pad(x, ((0, 0), (0, 0), (ph, ph), (pw, pw)))
    cols = []
    for i in range(kh):
        for j in range(kw):
            cols.append(xp[:, :, i:i + sh * (ho - 1) + 1:sh,
                               j:j + sw * (wo - 1) + 1:sw])
    patches = jnp.stack(cols, axis=2)                  # (N, C, kh*kw, Ho, Wo)
    a = patches.reshape(n, c * kh * kw, ho, wo)
    a = a.transpose(0, 2, 3, 1).reshape(n * ho * wo, c * kh * kw)
    out = _dense_gemm(a.astype(jnp.bfloat16), wb["w"], wb["b"], act)
    return out.reshape(n, ho, wo, o).transpose(0, 3, 1, 2)


def pixel_shuffle(x, r=2):
    n, c, h, w = x.shape
    x = x.reshape(n, c // (r * r), r, r, h, w)
    x = x.transpose(0, 1, 4, 2, 5, 3)
    return x.reshape(n, c // (r * r), h * r, w * r)


# ----------------------------------------------------------------------------
# Fused trunk kernel: 8 CMblocks x 3 SSHFs, slab resident in VMEM
# ----------------------------------------------------------------------------
def _trunk_kernel(x0_ref, w_ref, b_ref, o_ref, slab_ref, rcmff_ref, *, h, taps):
    blk = pl.program_id(0)
    sshf = pl.program_id(1)

    # First grid step: load trunk input into the resident slab.
    @pl.when((blk == 0) & (sshf == 0))
    def _():
        slab_ref[...] = x0_ref[...]

    # Start of every CMblock / RCMFF: snapshot its input for the residual.
    @pl.when(sshf == 0)
    def _():
        rcmff_ref[...] = slab_ref[...]

    mp, slab_w = slab_ref.shape
    h_idx = jax.lax.broadcasted_iota(jnp.int32, (mp, 1), 0) % h
    masks = []
    for d in taps:
        if d == 0:
            masks.append(None)
        else:
            valid = jnp.logical_and(h_idx + d >= 0, h_idx + d < h)
            masks.append(valid.astype(jnp.float32))

    # One SSHF: 5 dense (9,1) convs; "concat" == writing new lane slices.
    for ci in range(N_CONV):
        x_slab = slab_ref[...]                          # (Mp, 160) f32
        acc = None
        for t, d in enumerate(taps):
            if d == 0:
                xs = x_slab
            elif d > 0:
                xs = jnp.concatenate(
                    [x_slab[d:, :], jnp.zeros((d, slab_w), jnp.float32)], axis=0)
                xs = xs * masks[t]
            else:
                xs = jnp.concatenate(
                    [jnp.zeros((-d, slab_w), jnp.float32), x_slab[:d, :]], axis=0)
                xs = xs * masks[t]
            part = jnp.dot(xs.astype(jnp.bfloat16), w_ref[0, 0, ci, t],
                           preferred_element_type=jnp.float32)
            acc = part if acc is None else acc + part
        y = acc + b_ref[0, 0, ci:ci + 1, :]
        if ci < N_CONV - 1:
            y = jnp.where(y >= 0.0, y, 0.2 * y)          # LeakyReLU(0.2)
            slab_ref[:, NF + GC * ci:NF + GC * (ci + 1)] = y[:, :GC]
        else:
            slab_ref[:, :NF] = y[:, :NF] * 0.2 + x_slab[:, :NF]

    # End of RCMFF: residual, then CMblock's Mamba branch add.
    @pl.when(sshf == pl.num_programs(1) - 1)
    def _():
        out_nf = slab_ref[:, :NF] * 0.2 + rcmff_ref[:, :NF]
        # TODO(synk): Mamba(nf, bimamba_type='v2') external dependency ->
        # identity stand-in, so `mam + out` == `2 * out`.
        slab_ref[:, :NF] = out_nf * 2.0

    # Last grid step: write the resident slab back out.
    @pl.when((blk == pl.num_programs(0) - 1) & (sshf == pl.num_programs(1) - 1))
    def _():
        o_ref[...] = slab_ref[...]


def run_trunk(x, trunk_w, trunk_b):
    """x: (N, NF, H, W) f32.  Runs the fused 8-CMblock trunk in one pallas_call."""
    n, c, h, w = x.shape
    assert c == NF
    taps = _conv_taps(h)
    n_blocks, n_sshf = trunk_w.shape[0], trunk_w.shape[1]
    assert trunk_w.shape[3] == len(taps), "trunk weights packed for a different H"

    m = n * w * h
    mp = _round_up(max(m, 8), 8)
    a = jnp.transpose(x, (0, 3, 2, 1)).reshape(m, c)     # rows (n, w, h), h fastest
    a = jnp.pad(a, ((0, mp - m), (0, SLAB_W - c)))

    out = pl.pallas_call(
        functools.partial(_trunk_kernel, h=h, taps=taps),
        out_shape=jax.ShapeDtypeStruct((mp, SLAB_W), jnp.float32),
        grid=(n_blocks, n_sshf),
        in_specs=[
            pl.BlockSpec((mp, SLAB_W), lambda b, s: (0, 0)),
            pl.BlockSpec((1, 1, N_CONV, len(taps), SLAB_W, COUT_PAD),
                         lambda b, s: (b, s, 0, 0, 0, 0)),
            pl.BlockSpec((1, 1, N_CONV, COUT_PAD), lambda b, s: (b, s, 0, 0)),
        ],
        out_specs=pl.BlockSpec((mp, SLAB_W), lambda b, s: (0, 0)),
        scratch_shapes=[
            pltpu.VMEM((mp, SLAB_W), jnp.float32),   # resident activation slab
            pltpu.VMEM((mp, SLAB_W), jnp.float32),   # RCMFF-input snapshot
        ],
        compiler_params=pltpu.CompilerParams(
            dimension_semantics=("arbitrary", "arbitrary")),
    )(a, trunk_w, trunk_b)

    return out[:m, :c].reshape(n, w, h, c).transpose(0, 3, 2, 1)


# ----------------------------------------------------------------------------
# Model forward (mirrors the PyTorch modules); single jit over everything
# ----------------------------------------------------------------------------
def encoder_fwd(x, p):
    x = conv2d_gemm(x, p["c1"], (3, 4), (2, 2), (1, 0))
    x = conv2d_gemm(x, p["c2"], (3, 1), (2, 1), (1, 0))
    return x


def decoder_fwd(x, p):
    # ADD ("mafe"): conv_b is applied twice on the same input in the reference,
    # producing identical tensors, so reuse `res` as the trunk input.
    res = conv2d_gemm(x, p["conv_b"], (3, 3), (1, 1), (1, 1))
    mam = run_trunk(res, p["trunk_w"], p["trunk_b"])
    mam = conv2d_gemm(mam, p["conv_b_end"], (3, 3), (1, 1), (1, 1))  # groups=4 block-diag
    fea = mam + res
    # up_scale == 4 branch
    fea = pixel_shuffle(fea)
    fea = conv2d_gemm(fea, p["upconv1"], (3, 3), (1, 1), (1, 1), act="lrelu")
    fea = conv2d_gemm(fea, p["upconv2"], (3, 3), (1, 1), (1, 1), act="lrelu")
    fea = pixel_shuffle(fea)
    fea = conv2d_gemm(fea, p["upconv3"], (3, 3), (1, 1), (1, 1), act="lrelu")
    fea = conv2d_gemm(fea, p["conv_last"], (1, 1), (1, 1), (0, 0))
    return fea


@functools.partial(jax.jit, static_argnames=("mode",))
def csn_forward(data, params, mode=0):
    # snr == 0 -> the AWGN branch (torch.randn().cuda()) is never exercised.
    if mode == 0:
        x = encoder_fwd(data, params["enc"])
        y = decoder_fwd(x, params["dec"])
        return y, x
    elif mode == 1:
        return encoder_fwd(data, params["enc"])
    elif mode == 2:
        return decoder_fwd(data, params["dec"])
    else:
        x = encoder_fwd(data, params["enc"])
        return decoder_fwd(x, params["dec"])


# ----------------------------------------------------------------------------
# Deterministic parameter construction + one-time GEMM-layout preparation
# ----------------------------------------------------------------------------
class ParamGen:
    def __init__(self, seed):
        self.rng = np.random.default_rng(seed)

    def conv(self, o, c, kh, kw, w_scale=0.05, b_scale=0.01):
        return {
            "w": (self.rng.standard_normal((o, c, kh, kw)) * w_scale).astype(np.float32),
            "b": (self.rng.standard_normal((o,)) * b_scale).astype(np.float32),
        }


def make_sshf_params(gen, nf=NF, gc=GC):
    p = {}
    in_chs = [nf, nf + gc, nf + 2 * gc, nf + 3 * gc, nf + 4 * gc]
    out_chs = [gc, gc, gc, gc, nf]
    for i, (ci, co) in enumerate(zip(in_chs, out_chs), start=1):
        cp = gen.conv(co, ci, KH_TRUNK, 1)
        p[f"w{i}"] = cp["w"]
        p[f"b{i}"] = cp["b"]
    return p


def make_params(seed=1):
    gen = ParamGen(seed)
    enc = {"c1": gen.conv(128, 172, 3, 4), "c2": gen.conv(27, 128, 3, 1)}   # cr == 1
    trunk = []
    for _ in range(8):
        trunk.append({"rcmff": {"s1": make_sshf_params(gen),
                                "s2": make_sshf_params(gen),
                                "s3": make_sshf_params(gen)}})
    dec = {
        "add": {
            "conv_b": gen.conv(96, 27, 3, 3),
            "trunk": trunk,
            "conv_b_end": gen.conv(96, 24, 3, 3),   # groups=4 -> 96/4=24 in-chs
        },
        "upconv1": gen.conv(96, 24, 3, 3),
        "upconv2": gen.conv(192, 96, 3, 3),
        "upconv3": gen.conv(192, 48, 3, 3),
        "conv_last": gen.conv(172, 192, 1, 1),
    }
    return {"enc": enc, "dec": dec}


def _prep_conv(p):
    w = np.asarray(p["w"], np.float32)
    b = np.asarray(p["b"], np.float32)
    o, c, kh, kw = w.shape
    wm = w.reshape(o, c * kh * kw).T
    return {"w": jnp.asarray(wm, jnp.bfloat16), "b": jnp.asarray(b.reshape(1, o))}


def _prep_grouped_conv(p, groups):
    w = np.asarray(p["w"], np.float32)
    b = np.asarray(p["b"], np.float32)
    o, cg, kh, kw = w.shape
    og = o // groups
    kg = cg * kh * kw
    wm = np.zeros((kg * groups, o), np.float32)        # block-diagonal -> one GEMM
    for g in range(groups):
        wm[g * kg:(g + 1) * kg, g * og:(g + 1) * og] = \
            w[g * og:(g + 1) * og].reshape(og, kg).T
    return {"w": jnp.asarray(wm, jnp.bfloat16), "b": jnp.asarray(b.reshape(1, o))}


def _pack_trunk_params(trunk, h):
    taps = _conv_taps(h)
    nb = len(trunk)
    w_pk = np.zeros((nb, N_SSHF, N_CONV, len(taps), SLAB_W, COUT_PAD), np.float32)
    b_pk = np.zeros((nb, N_SSHF, N_CONV, COUT_PAD), np.float32)
    for bi in range(nb):
        for si in range(N_SSHF):
            sp = trunk[bi]["rcmff"][f"s{si + 1}"]
            for ci in range(N_CONV):
                w = np.asarray(sp[f"w{ci + 1}"], np.float32)   # (Cout, Cin, 9, 1)
                co, cin = w.shape[0], w.shape[1]
                for ti, d in enumerate(taps):
                    w_pk[bi, si, ci, ti, :cin, :co] = w[:, :, d + PAD_TRUNK, 0].T
                b_pk[bi, si, ci, :co] = np.asarray(sp[f"b{ci + 1}"], np.float32)
    return jnp.asarray(w_pk, jnp.bfloat16), jnp.asarray(b_pk, jnp.float32)


def prepare_params(raw, trunk_h):
    enc, dec = raw["enc"], raw["dec"]
    add = dec["add"]
    tw, tb = _pack_trunk_params(add["trunk"], trunk_h)
    return {
        "enc": {"c1": _prep_conv(enc["c1"]), "c2": _prep_conv(enc["c2"])},
        "dec": {
            "conv_b": _prep_conv(add["conv_b"]),
            "conv_b_end": _prep_grouped_conv(add["conv_b_end"], groups=4),
            "trunk_w": tw,
            "trunk_b": tb,
            "upconv1": _prep_conv(dec["upconv1"]),
            "upconv2": _prep_conv(dec["upconv2"]),
            "upconv3": _prep_conv(dec["upconv3"]),
            "conv_last": _prep_conv(dec["conv_last"]),
        },
    }


# ----------------------------------------------------------------------------
if __name__ == "__main__":
    key = jax.random.PRNGKey(0)
    # Small input consistent with CSN(in_channels=172, cr=1): (N, C, H, W)
    data = jax.random.normal(key, (2, 172, 8, 6), jnp.float32)

    raw = make_params(seed=1)
    # latent height after the encoder (k=3, s=2, p=1 applied twice): 8 -> 4 -> 2
    h_lat = ((data.shape[2] + 2 - 3) // 2 + 1 + 2 - 3) // 2 + 1
    params = prepare_params(raw, trunk_h=h_lat)

    y, x_enc = csn_forward(data, params, mode=0)
    y, x_enc = jax.block_until_ready((y, x_enc))

    assert x_enc.shape == (2, 27, 2, 2), x_enc.shape        # encoder latent
    assert y.shape == (2, 172, 8, 8), y.shape               # 4x upscaled decode
    assert bool(jnp.all(jnp.isfinite(y))) and bool(jnp.all(jnp.isfinite(x_enc)))

    print("KERNEL_OK")
</pallas_src>

<mosaic_0001>
module attributes {stable_mosaic.version = 11 : i64} {
  func.func @_gemm_kernel(%arg0: memref<16x2064xbf16, #tpu.memory_space<vmem>>, %arg1: memref<2064x128xbf16, #tpu.memory_space<vmem>>, %arg2: memref<1x128xf32, #tpu.memory_space<vmem>>, %arg3: memref<16x128xf32, #tpu.memory_space<vmem>>) attributes {dimension_semantics = [], scalar_prefetch = 0 : i64, scratch_operands = 0 : i64, tpu.core_type = #tpu.core_type<tc>} {
    %c0 = arith.constant 0 : index
    %c0_0 = arith.constant 0 : index
    %0 = vector.load %arg0[%c0, %c0_0] : memref<16x2064xbf16, #tpu.memory_space<vmem>>, vector<16x2064xbf16>
    %c0_1 = arith.constant 0 : index
    %c0_2 = arith.constant 0 : index
    %1 = vector.load %arg1[%c0_1, %c0_2] : memref<2064x128xbf16, #tpu.memory_space<vmem>>, vector<2064x128xbf16>
    %cst = arith.constant dense<0.000000e+00> : vector<16x128xf32>
    %2 = tpu.matmul %0, %1, %cst {dimension_numbers = #tpu.dot_dimension_numbers<[1], [0], [0], [1], [0, 0, 1, 1], [], []>} : vector<16x2064xbf16>, vector<2064x128xbf16>, vector<16x128xf32> -> vector<16x128xf32>
    %c0_3 = arith.constant 0 : index
    %c0_4 = arith.constant 0 : index
    %3 = vector.load %arg2[%c0_3, %c0_4] : memref<1x128xf32, #tpu.memory_space<vmem>>, vector<1x128xf32>
    %4 = vector.broadcast %3 : vector<1x128xf32> to vector<16x128xf32>
    %5 = arith.addf %2, %4 : vector<16x128xf32>
    %c0_5 = arith.constant 0 : index
    %c0_6 = arith.constant 0 : index
    %6 = vector.load %arg3[%c0_5, %c0_6] : memref<16x128xf32, #tpu.memory_space<vmem>>, vector<16x128xf32>
    tpu.vector_store %arg3[%c0_5, %c0_6], %5 {strides = array<i32>} : memref<16x128xf32, #tpu.memory_space<vmem>>, vector<16x128xf32>,
    return
  }
}

module attributes {stable_mosaic.version = 11 : i64} {
  func.func @_gemm_kernel(%arg0: memref<8x384xbf16, #tpu.memory_space<vmem>>, %arg1: memref<384x27xbf16, #tpu.memory_space<vmem>>, %arg2: memref<1x27xf32, #tpu.memory_space<vmem>>, %arg3: memref<8x27xf32, #tpu.memory_space<vmem>>) attributes {dimension_semantics = [], scalar_prefetch = 0 : i64, scratch_operands = 0 : i64, tpu.core_type = #tpu.core_type<tc>} {
    %c0 = arith.constant 0 : index
    %c0_0 = arith.constant 0 : index
    %0 = vector.load %arg0[%c0, %c0_0] : memref<8x384xbf16, #tpu.memory_space<vmem>>, vector<8x384xbf16>
    %c0_1 = arith.constant 0 : index
    %c0_2 = arith.constant 0 : index
    %1 = vector.load %arg1[%c0_1, %c0_2] : memref<384x27xbf16, #tpu.memory_space<vmem>>, vector<384x27xbf16>
    %cst = arith.constant dense<0.000000e+00> : vector<8x27xf32>
    %2 = tpu.matmul %0, %1, %cst {dimension_numbers = #tpu.dot_dimension_numbers<[1], [0], [0], [1], [0, 0, 1, 1], [], []>} : vector<8x384xbf16>, vector<384x27xbf16>, vector<8x27xf32> -> vector<8x27xf32>
    %c0_3 = arith.constant 0 : index
    %c0_4 = arith.constant 0 : index
    %3 = vector.load %arg2[%c0_3, %c0_4] : memref<1x27xf32, #tpu.memory_space<vmem>>, vector<1x27xf32>
    %4 = vector.broadcast %3 : vector<1x27xf32> to vector<8x27xf32>
    %5 = arith.addf %2, %4 : vector<8x27xf32>
    %c0_5 = arith.constant 0 : index
    %c0_6 = arith.constant 0 : index
    %6 = vector.load %arg3[%c0_5, %c0_6] : memref<8x27xf32, #tpu.memory_space<vmem>>, vector<8x27xf32>
    tpu.vector_store %arg3[%c0_5, %c0_6], %5 {strides = array<i32>} : memref<8x27xf32, #tpu.memory_space<vmem>>, vector<8x27xf32>,
    return
  }
}

module attributes {stable_mosaic.version = 11 : i64} {
  func.func @_gemm_kernel(%arg0: memref<8x243xbf16, #tpu.memory_space<vmem>>, %arg1: memref<243x96xbf16, #tpu.memory_space<vmem>>, %arg2: memref<1x96xf32, #tpu.memory_space<vmem>>, %arg3: memref<8x96xf32, #tpu.memory_space<vmem>>) attributes {dimension_semantics = [], scalar_prefetch = 0 : i64, scratch_operands = 0 : i64, tpu.core_type = #tpu.core_type<tc>} {
    %c0 = arith.constant 0 : index
    %c0_0 = arith.constant 0 : index
    %0 = vector.load %arg0[%c0, %c0_0] : memref<8x243xbf16, #tpu.memory_space<vmem>>, vector<8x243xbf16>
    %c0_1 = arith.constant 0 : index
    %c0_2 = arith.constant 0 : index
    %1 = vector.load %arg1[%c0_1, %c0_2] : memref<243x96xbf16, #tpu.memory_space<vmem>>, vector<243x96xbf16>
    %cst = arith.constant dense<0.000000e+00> : vector<8x96xf32>
    %2 = tpu.matmul %0, %1, %cst {dimension_numbers = #tpu.dot_dimension_numbers<[1], [0], [0], [1], [0, 0, 1, 1], [], []>} : vector<8x243xbf16>, vector<243x96xbf16>, vector<8x96xf32> -> vector<8x96xf32>
    %c0_3 = arith.constant 0 : index
    %c0_4 = arith.constant 0 : index
    %3 = vector.load %arg2[%c0_3, %c0_4] : memref<1x96xf32, #tpu.memory_space<vmem>>, vector<1x96xf32>
    %4 = vector.broadcast %3 : vector<1x96xf32> to vector<8x96xf32>
    %5 = arith.addf %2, %4 : vector<8x96xf32>
    %c0_5 = arith.constant 0 : index
    %c0_6 = arith.constant 0 : index
    %6 = vector.load %arg3[%c0_5, %c0_6] : memref<8x96xf32, #tpu.memory_space<vmem>>, vector<8x96xf32>
    tpu.vector_store %arg3[%c0_5, %c0_6], %5 {strides = array<i32>} : memref<8x96xf32, #tpu.memory_space<vmem>>, vector<8x96xf32>,
    return
  }
}

module attributes {stable_mosaic.version = 11 : i64} {
  func.func @_trunk_kernel(%arg0: i32, %arg1: i32, %arg2: memref<8x160xf32, #tpu.memory_space<vmem>>, %arg3: memref<1x1x5x3x160x128xbf16, #tpu.memory_space<vmem>>, %arg4: memref<1x1x5x128xf32, #tpu.memory_space<vmem>>, %arg5: memref<8x160xf32, #tpu.memory_space<vmem>>, %arg6: memref<8x160xf32, #tpu.memory_space<vmem>>, %arg7: memref<8x160xf32, #tpu.memory_space<vmem>>) attributes {dimension_semantics = [#tpu.dimension_semantics<arbitrary>, #tpu.dimension_semantics<arbitrary>], iteration_bounds = array<i64: 8, 3>, scalar_prefetch = 0 : i64, scratch_operands = 2 : i64, tpu.core_type = #tpu.core_type<tc>, window_params = [{pipeline_mode = #tpu.pipeline_mode<synchronous>, transform_indices = @transform_0, window_bounds = array<i64: 8, 160>}, {transform_indices = @transform_1, window_bounds = array<i64: 1, 1, 5, 3, 160, 128>}, {transform_indices = @transform_2, window_bounds = array<i64: 1, 1, 5, 128>}, {pipeline_mode = #tpu.pipeline_mode<synchronous>, transform_indices = @transform_3, window_bounds = array<i64: 8, 160>}]} {
    %c0_i32 = arith.constant 0 : i32
    %0 = arith.cmpi eq, %arg0, %c0_i32 : i32
    %c0_i32_0 = arith.constant 0 : i32
    %1 = arith.cmpi eq, %arg1, %c0_i32_0 : i32
    %2 = arith.andi %0, %1 : i1
    %3 = arith.extui %2 : i1 to i32
    %c0_i32_1 = arith.constant 0 : i32
    %4 = arith.cmpi ne, %3, %c0_i32_1 : i32
    scf.if %4 {
      %c0_173 = arith.constant 0 : index
      %c0_174 = arith.constant 0 : index
      %234 = vector.load %arg2[%c0_173, %c0_174] : memref<8x160xf32, #tpu.memory_space<vmem>>, vector<8x160xf32>
      %c0_175 = arith.constant 0 : index
      %c0_176 = arith.constant 0 : index
      %235 = vector.load %arg6[%c0_175, %c0_176] : memref<8x160xf32, #tpu.memory_space<vmem>>, vector<8x160xf32>
      tpu.vector_store %arg6[%c0_175, %c0_176], %234 {strides = array<i32>} : memref<8x160xf32, #tpu.memory_space<vmem>>, vector<8x160xf32>,
    } else {
    }
    %c0_i32_2 = arith.constant 0 : i32
    %5 = arith.cmpi eq, %arg1, %c0_i32_2 : i32
    %6 = arith.extui %5 : i1 to i32
    %c0_i32_3 = arith.constant 0 : i32
    %7 = arith.cmpi ne, %6, %c0_i32_3 : i32
    scf.if %7 {
      %c0_173 = arith.constant 0 : index
      %c0_174 = arith.constant 0 : index
      %234 = vector.load %arg6[%c0_173, %c0_174] : memref<8x160xf32, #tpu.memory_space<vmem>>, vector<8x160xf32>
      %c0_175 = arith.constant 0 : index
      %c0_176 = arith.constant 0 : index
      %235 = vector.load %arg7[%c0_175, %c0_176] : memref<8x160xf32, #tpu.memory_space<vmem>>, vector<8x160xf32>
      tpu.vector_store %arg7[%c0_175, %c0_176], %234 {strides = array<i32>} : memref<8x160xf32, #tpu.memory_space<vmem>>, vector<8x160xf32>,
    } else {
    }
    %8 = tpu.iota {dimensions = array<i32: 0>} : vector<8x1xi32>
    %c2_i32 = arith.constant 2 : i32
    %c0_i32_4 = arith.constant 0 : i32
    %9 = arith.cmpi eq, %c2_i32, %c0_i32_4 : i32
    %c1_i32 = arith.constant 1 : i32
    %10 = arith.select %9, %c1_i32, %c2_i32 : i32
    %11 = vector.broadcast %10 : i32 to vector<8x1xi32>
    %12 = arith.remsi %8, %11 : vector<8x1xi32>
    %c0_i32_5 = arith.constant 0 : i32
    %13 = vector.broadcast %c0_i32_5 : i32 to vector<8x1xi32>
    %14 = arith.cmpi ne, %12, %13 : vector<8x1xi32>
    %c0_i32_6 = arith.constant 0 : i32
    %15 = vector.broadcast %c0_i32_6 : i32 to vector<8x1xi32>
    %16 = arith.cmpi slt, %12, %15 : vector<8x1xi32>
    %c0_i32_7 = arith.constant 0 : i32
    %17 = arith.cmpi slt, %10, %c0_i32_7 : i32
    %18 = vector.broadcast %17 : i1 to vector<8x1xi1>
    %19 = vector.broadcast %18 : vector<8x1xi1> to vector<8x1xi1>
    %20 = arith.xori %16, %19 : vector<8x1xi1>
    %21 = arith.andi %20, %14 : vector<8x1xi1>
    %22 = vector.broadcast %10 : i32 to vector<8x1xi32>
    %23 = arith.addi %12, %22 : vector<8x1xi32>
    %24 = arith.select %21, %23, %12 : vector<8x1xi1>, vector<8x1xi32>
    %c-1_i32 = arith.constant -1 : i32
    %25 = vector.broadcast %c-1_i32 : i32 to vector<8x1xi32>
    %26 = arith.addi %24, %25 : vector<8x1xi32>
    %c0_i32_8 = arith.constant 0 : i32
    %27 = vector.broadcast %c0_i32_8 : i32 to vector<8x1xi32>
    %28 = arith.cmpi sge, %26, %27 : vector<8x1xi32>
    %c-1_i32_9 = arith.constant -1 : i32
    %29 = vector.broadcast %c-1_i32_9 : i32 to vector<8x1xi32>
    %30 = arith.addi %24, %29 : vector<8x1xi32>
    %c2_i32_10 = arith.constant 2 : i32
    %31 = vector.broadcast %c2_i32_10 : i32 to vector<8x1xi32>
    %32 = arith.cmpi slt, %30, %31 : vector<8x1xi32>
    %33 = arith.andi %28, %32 : vector<8x1xi1>
    %34 = arith.extui %33 : vector<8x1xi1> to vector<8x1xi32>
    %35 = arith.sitofp %34 : vector<8x1xi32> to vector<8x1xf32>
    %c1_i32_11 = arith.constant 1 : i32
    %36 = vector.broadcast %c1_i32_11 : i32 to vector<8x1xi32>
    %37 = arith.addi %24, %36 : vector<8x1xi32>
    %c0_i32_12 = arith.constant 0 : i32
    %38 = vector.broadcast %c0_i32_12 : i32 to vector<8x1xi32>
    %39 = arith.cmpi sge, %37, %38 : vector<8x1xi32>
    %c1_i32_13 = arith.constant 1 : i32
    %40 = vector.broadcast %c1_i32_13 : i32 to vector<8x1xi32>
    %41 = arith.addi %24, %40 : vector<8x1xi32>
    %c2_i32_14 = arith.constant 2 : i32
    %42 = vector.broadcast %c2_i32_14 : i32 to vector<8x1xi32>
    %43 = arith.cmpi slt, %41, %42 : vector<8x1xi32>
    %44 = arith.andi %39, %43 : vector<8x1xi1>
    %45 = arith.extui %44 : vector<8x1xi1> to vector<8x1xi32>
    %46 = arith.sitofp %45 : vector<8x1xi32> to vector<8x1xf32>
    %c0 = arith.constant 0 : index
    %c0_15 = arith.constant 0 : index
    %47 = vector.load %arg6[%c0, %c0_15] : memref<8x160xf32, #tpu.memory_space<vmem>>, vector<8x160xf32>
    %cst = arith.constant 0.000000e+00 : f32
    %48 = vector.broadcast %cst : f32 to vector<1x160xf32>
    %49 = vector.extract_strided_slice %47 {offsets = [0, 0], sizes = [7, 160], strides = [1, 1]} : vector<8x160xf32> to vector<7x160xf32>
    %50 = tpu.concatenate %48, %49 in 0 : vector<1x160xf32>, vector<7x160xf32> -> vector<8x160xf32>
    %51 = vector.broadcast %35 : vector<8x1xf32> to vector<8x160xf32>
    %52 = arith.mulf %50, %51 : vector<8x160xf32>
    %53 = arith.truncf %52 : vector<8x160xf32> to vector<8x160xbf16>
    %c0_16 = arith.constant 0 : index
    %c0_17 = arith.constant 0 : index
    %c0_18 = arith.constant 0 : index
    %c0_19 = arith.constant 0 : index
    %c0_20 = arith.constant 0 : index
    %c0_21 = arith.constant 0 : index
    %54 = vector.load %arg3[%c0_16, %c0_17, %c0_18, %c0_19, %c0_20, %c0_21] : memref<1x1x5x3x160x128xbf16, #tpu.memory_space<vmem>>, vector<1x1x1x1x160x128xbf16>
    %55 = vector.shape_cast %54 : vector<1x1x1x1x160x128xbf16> to vector<160x128xbf16>
    %cst_22 = arith.constant dense<0.000000e+00> : vector<8x128xf32>
    %56 = tpu.matmul %53, %55, %cst_22 {dimension_numbers = #tpu.dot_dimension_numbers<[1], [0], [0], [1], [0, 0, 1, 1], [], []>} : vector<8x160xbf16>, vector<160x128xbf16>, vector<8x128xf32> -> vector<8x128xf32>
    %57 = arith.truncf %47 : vector<8x160xf32> to vector<8x160xbf16>
    %c0_23 = arith.constant 0 : index
    %c0_24 = arith.constant 0 : index
    %c0_25 = arith.constant 0 : index
    %c1 = arith.constant 1 : index
    %c0_26 = arith.constant 0 : index
    %c0_27 = arith.constant 0 : index
    %58 = vector.load %arg3[%c0_23, %c0_24, %c0_25, %c1, %c0_26, %c0_27] : memref<1x1x5x3x160x128xbf16, #tpu.memory_space<vmem>>, vector<1x1x1x1x160x128xbf16>
    %59 = vector.shape_cast %58 : vector<1x1x1x1x160x128xbf16> to vector<160x128xbf16>
    %cst_28 = arith.constant dense<0.000000e+00> : vector<8x128xf32>
    %60 = tpu.matmul %57, %59, %cst_28 {dimension_numbers = #tpu.dot_dimension_numbers<[1], [0], [0], [1], [0, 0, 1, 1], [], []>} : vector<8x160xbf16>, vector<160x128xbf16>, vector<8x128xf32> -> vector<8x128xf32>
    %61 = arith.addf %56, %60 : vector<8x128xf32>
    %62 = vector.extract_strided_slice %47 {offsets = [1, 0], sizes = [7, 160], strides = [1, 1]} : vector<8x160xf32> to vector<7x160xf32>
    %cst_29 = arith.constant 0.000000e+00 : f32
    %63 = vector.broadcast %cst_29 : f32 to vector<1x160xf32>
    %64 = tpu.concatenate %62, %63 in 0 : vector<7x160xf32>, vector<1x160xf32> -> vector<8x160xf32>
    %65 = vector.broadcast %46 : vector<8x1xf32> to vector<8x160xf32>
    %66 = arith.mulf %64, %65 : vector<8x160xf32>
    %67 = arith.truncf %66 : vector<8x160xf32> to vector<8x160xbf16>
    %c0_30 = arith.constant 0 : index
    %c0_31 = arith.constant 0 : index
    %c0_32 = arith.constant 0 : index
    %c2 = arith.constant 2 : index
    %c0_33 = arith.constant 0 : index
    %c0_34 = arith.constant 0 : index
    %68 = vector.load %arg3[%c0_30, %c0_31, %c0_32, %c2, %c0_33, %c0_34] : memref<1x1x5x3x160x128xbf16, #tpu.memory_space<vmem>>, vector<1x1x1x1x160x128xbf16>
    %69 = vector.shape_cast %68 : vector<1x1x1x1x160x128xbf16> to vector<160x128xbf16>
    %cst_35 = arith.constant dense<0.000000e+00> : vector<8x128xf32>
    %70 = tpu.matmul %67, %69, %cst_35 {dimension_numbers = #tpu.dot_dimension_numbers<[1], [0], [0], [1], [0, 0, 1, 1], [], []>} : vector<8x160xbf16>, vector<160x128xbf16>, vector<8x128xf32> -> vector<8x128xf32>
    %71 = arith.addf %61, %70 : vector<8x128xf32>
    %c0_36 = arith.constant 0 : index
    %c0_37 = arith.constant 0 : index
    %c0_38 = arith.constant 0 : index
    %c0_39 = arith.constant 0 : index
    %72 = vector.load %arg4[%c0_36, %c0_37, %c0_38, %c0_39] : memref<1x1x5x128xf32, #tpu.memory_space<vmem>>, vector<1x1x1x128xf32>
    %73 = vector.shape_cast %72 : vector<1x1x1x128xf32> to vector<1x128xf32>
    %74 = vector.broadcast %73 : vector<1x128xf32> to vector<8x128xf32>
    %75 = arith.addf %71, %74 : vector<8x128xf32>
    %cst_40 = arith.constant 0.000000e+00 : f32
    %76 = vector.broadcast %cst_40 : f32 to vector<8x128xf32>
    %77 = arith.cmpf oge, %75, %76 : vector<8x128xf32>
    %cst_41 = arith.constant 2.000000e-01 : f32
    %78 = vector.broadcast %cst_41 : f32 to vector<8x128xf32>
    %79 = arith.mulf %78, %75 : vector<8x128xf32>
    %80 = arith.select %77, %75, %79 : vector<8x128xi1>, vector<8x128xf32>
    %81 = vector.extract_strided_slice %80 {offsets = [0, 0], sizes = [8, 16], strides = [1, 1]} : vector<8x128xf32> to vector<8x16xf32>
    %c0_42 = arith.constant 0 : index
    %c96 = arith.constant 96 : index
    %82 = vector.load %arg6[%c0_42, %c96] : memref<8x160xf32, #tpu.memory_space<vmem>>, vector<8x16xf32>
    tpu.vector_store %arg6[%c0_42, %c96], %81 {strides = array<i32>} : memref<8x160xf32, #tpu.memory_space<vmem>>, vector<8x16xf32>,
    %c0_43 = arith.constant 0 : index
    %c0_44 = arith.constant 0 : index
    %83 = vector.load %arg6[%c0_43, %c0_44] : memref<8x160xf32, #tpu.memory_space<vmem>>, vector<8x160xf32>
    %cst_45 = arith.constant 0.000000e+00 : f32
    %84 = vector.broadcast %cst_45 : f32 to vector<1x160xf32>
    %85 = vector.extract_strided_slice %83 {offsets = [0, 0], sizes = [7, 160], strides = [1, 1]} : vector<8x160xf32> to vector<7x160xf32>
    %86 = tpu.concatenate %84, %85 in 0 : vector<1x160xf32>, vector<7x160xf32> -> vector<8x160xf32>
    %87 = vector.broadcast %35 : vector<8x1xf32> to vector<8x160xf32>
    %88 = arith.mulf %86, %87 : vector<8x160xf32>
    %89 = arith.truncf %88 : vector<8x160xf32> to vector<8x160xbf16>
    %c0_46 = arith.constant 0 : index
    %c0_47 = arith.constant 0 : index
    %c1_48 = arith.constant 1 : index
    %c0_49 = arith.constant 0 : index
    %c0_50 = arith.constant 0 : index
    %c0_51 = arith.constant 0 : index
    %90 = vector.load %arg3[%c0_46, %c0_47, %c1_48, %c0_49, %c0_50, %c0_51] : memref<1x1x5x3x160x128xbf16, #tpu.memory_space<vmem>>, vector<1x1x1x1x160x128xbf16>
    %91 = vector.shape_cast %90 : vector<1x1x1x1x160x128xbf16> to vector<160x128xbf16>
    %cst_52 = arith.constant dense<0.000000e+00> : vector<8x128xf32>
    %92 = tpu.matmul %89, %91, %cst_52 {dimension_numbers = #tpu.dot_dimension_numbers<[1], [0], [0], [1], [0, 0, 1, 1], [], []>} : vector<8x160xbf16>, vector<160x128xbf16>, vector<8x128xf32> -> vector<8x128xf32>
    %93 = arith.truncf %83 : vector<8x160xf32> to vector<8x160xbf16>
    %c0_53 = arith.constant 0 : index
    %c0_54 = arith.constant 0 : index
    %c1_55 = arith.constant 1 : index
    %c1_56 = arith.constant 1 : index
    %c0_57 = arith.constant 0 : index
    %c0_58 = arith.constant 0 : index
    %94 = vector.load %arg3[%c0_53, %c0_54, %c1_55, %c1_56, %c0_57, %c0_58] : memref<1x1x5x3x160x128xbf16, #tpu.memory_space<vmem>>, vector<1x1x1x1x160x128xbf16>
    %95 = vector.shape_cast %94 : vector<1x1x1x1x160x128xbf16> to vector<160x128xbf16>
    %cst_59 = arith.constant dense<0.000000e+00> : vector<8x128xf32>
    %96 = tpu.matmul %93, %95, %cst_59 {dimension_numbers = #tpu.dot_dimension_numbers<[1], [0], [0], [1], [0, 0, 1, 1], [], []>} : vector<8x160xbf16>, vector<160x128xbf16>, vector<8x128xf32> -> vector<8x128xf32>
    %97 = arith.addf %92, %96 : vector<8x128xf32>
    %98 = vector.extract_strided_slice %83 {offsets = [1, 0], sizes = [7, 160], strides = [1, 1]} : vector<8x160xf32> to vector<7x160xf32>
    %cst_60 = arith.constant 0.000000e+00 : f32
    %99 = vector.broadcast %cst_60 : f32 to vector<1x160xf32>
    %100 = tpu.concatenate %98, %99 in 0 : vector<7x160xf32>, vector<1x160xf32> -> vector<8x160xf32>
    %101 = vector.broadcast %46 : vector<8x1xf32> to vector<8x160xf32>
    %102 = arith.mulf %100, %101 : vector<8x160xf32>
    %103 = arith.truncf %102 : vector<8x160xf32> to vector<8x160xbf16>
    %c0_61 = arith.constant 0 : index
    %c0_62 = arith.constant 0 : index
    %c1_63 = arith.constant 1 : index
    %c2_64 = arith.constant 2 : index
    %c0_65 = arith.constant 0 : index
    %c0_66 = arith.constant 0 : index
    %104 = vector.load %arg3[%c0_61, %c0_62, %c1_63, %c2_64, %c0_65, %c0_66] : memref<1x1x5x3x160x128xbf16, #tpu.memory_space<vmem>>, vector<1x1x1x1x160x128xbf16>
    %105 = vector.shape_cast %104 : vector<1x1x1x1x160x128xbf16> to vector<160x128xbf16>
    %cst_67 = arith.constant dense<0.000000e+00> : vector<8x128xf32>
    %106 = tpu.matmul %103, %105, %cst_67 {dimension_numbers = #tpu.dot_dimension_numbers<[1], [0], [0], [1], [0, 0, 1, 1], [], []>} : vector<8x160xbf16>, vector<160x128xbf16>, vector<8x128xf32> -> vector<8x128xf32>
    %107 = arith.addf %97, %106 : vector<8x128xf32>
    %c0_68 = arith.constant 0 : index
    %c0_69 = arith.constant 0 : index
    %c1_70 = arith.constant 1 : index
    %c0_71 = arith.constant 0 : index
    %108 = vector.load %arg4[%c0_68, %c0_69, %c1_70, %c0_71] : memref<1x1x5x128xf32, #tpu.memory_space<vmem>>, vector<1x1x1x128xf32>
    %109 = vector.shape_cast %108 : vector<1x1x1x128xf32> to vector<1x128xf32>
    %110 = vector.broadcast %109 : vector<1x128xf32> to vector<8x128xf32>
    %111 = arith.addf %107, %110 : vector<8x128xf32>
    %cst_72 = arith.constant 0.000000e+00 : f32
    %112 = vector.broadcast %cst_72 : f32 to vector<8x128xf32>
    %113 = arith.cmpf oge, %111, %112 : vector<8x128xf32>
    %cst_73 = arith.constant 2.000000e-01 : f32
    %114 = vector.broadcast %cst_73 : f32 to vector<8x128xf32>
    %115 = arith.mulf %114, %111 : vector<8x128xf32>
    %116 = arith.select %113, %111, %115 : vector<8x128xi1>, vector<8x128xf32>
    %117 = vector.extract_strided_slice %116 {offsets = [0, 0], sizes = [8, 16], strides = [1, 1]} : vector<8x128xf32> to vector<8x16xf32>
    %c0_74 = arith.constant 0 : index
    %c112 = arith.constant 112 : index
    %118 = vector.load %arg6[%c0_74, %c112] : memref<8x160xf32, #tpu.memory_space<vmem>>, vector<8x16xf32>
    tpu.vector_store %arg6[%c0_74, %c112], %117 {strides = array<i32>} : memref<8x160xf32, #tpu.memory_space<vmem>>, vector<8x16xf32>,
    %c0_75 = arith.constant 0 : index
    %c0_76 = arith.constant 0 : index
    %119 = vector.load %arg6[%c0_75, %c0_76] : memref<8x160xf32, #tpu.memory_space<vmem>>, vector<8x160xf32>
    %cst_77 = arith.constant 0.000000e+00 : f32
    %120 = vector.broadcast %cst_77 : f32 to vector<1x160xf32>
    %121 = vector.extract_strided_slice %119 {offsets = [0, 0], sizes = [7, 160], strides = [1, 1]} : vector<8x160xf32> to vector<7x160xf32>
    %122 = tpu.concatenate %120, %121 in 0 : vector<1x160xf32>, vector<7x160xf32> -> vector<8x160xf32>
    %123 = vector.broadcast %35 : vector<8x1xf32> to vector<8x160xf32>
    %124 = arith.mulf %122, %123 : vector<8x160xf32>
    %125 = arith.truncf %124 : vector<8x160xf32> to vector<8x160xbf16>
    %c0_78 = arith.constant 0 : index
    %c0_79 = arith.constant 0 : index
    %c2_80 = arith.constant 2 : index
    %c0_81 = arith.constant 0 : index
    %c0_82 = arith.constant 0 : index
    %c0_83 = arith.constant 0 : index
    %126 = vector.load %arg3[%c0_78, %c0_79, %c2_80, %c0_81, %c0_82, %c0_83] : memref<1x1x5x3x160x128xbf16, #tpu.memory_space<vmem>>, vector<1x1x1x1x160x128xbf16>
    %127 = vector.shape_cast %126 : vector<1x1x1x1x160x128xbf16> to vector<160x128xbf16>
    %cst_84 = arith.constant dense<0.000000e+00> : vector<8x128xf32>
    %128 = tpu.matmul %125, %127, %cst_84 {dimension_numbers = #tpu.dot_dimension_numbers<[1], [0], [0], [1], [0, 0, 1, 1], [], []>} : vector<8x160xbf16>, vector<160x128xbf16>, vector<8x128xf32> -> vector<8x128xf32>
    %129 = arith.truncf %119 : vector<8x160xf32> to vector<8x160xbf16>
    %c0_85 = arith.constant 0 : index
    %c0_86 = arith.constant 0 : index
    %c2_87 = arith.constant 2 : index
    %c1_88 = arith.constant 1 : index
    %c0_89 = arith.constant 0 : index
    %c0_90 = arith.constant 0 : index
    %130 = vector.load %arg3[%c0_85, %c0_86, %c2_87, %c1_88, %c0_89, %c0_90] : memref<1x1x5x3x160x128xbf16, #tpu.memory_space<vmem>>, vector<1x1x1x1x160x128xbf16>
    %131 = vector.shape_cast %130 : vector<1x1x1x1x160x128xbf16> to vector<160x128xbf16>
    %cst_91 = arith.constant dense<0.000000e+00> : vector<8x128xf32>
    %132 = tpu.matmul %129, %131, %cst_91 {dimension_numbers = #tpu.dot_dimension_numbers<[1], [0], [0], [1], [0, 0, 1, 1], [], []>} : vector<8x160xbf16>, vector<160x128xbf16>, vector<8x128xf32> -> vector<8x128xf32>
    %133 = arith.addf %128, %132 : vector<8x128xf32>
    %134 = vector.extract_strided_slice %119 {offsets = [1, 0], sizes = [7, 160], strides = [1, 1]} : vector<8x160xf32> to vector<7x160xf32>
    %cst_92 = arith.constant 0.000000e+00 : f32
    %135 = vector.broadcast %cst_92 : f32 to vector<1x160xf32>
    %136 = tpu.concatenate %134, %135 in 0 : vector<7x160xf32>, vector<1x160xf32> -> vector<8x160xf32>
    %137 = vector.broadcast %46 : vector<8x1xf32> to vector<8x160xf32>
    %138 = arith.mulf %136, %137 : vector<8x160xf32>
    %139 = arith.truncf %138 : vector<8x160xf32> to vector<8x160xbf16>
    %c0_93 = arith.constant 0 : index
    %c0_94 = arith.constant 0 : index
    %c2_95 = arith.constant 2 : index
    %c2_96 = arith.constant 2 : index
    %c0_97 = arith.constant 0 : index
    %c0_98 = arith.constant 0 : index
    %140 = vector.load %arg3[%c0_93, %c0_94, %c2_95, %c2_96, %c0_97, %c0_98] : memref<1x1x5x3x160x128xbf16, #tpu.memory_space<vmem>>, vector<1x1x1x1x160x128xbf16>
    %141 = vector.shape_cast %140 : vector<1x1x1x1x160x128xbf16> to vector<160x128xbf16>
    %cst_99 = arith.constant dense<0.000000e+00> : vector<8x128xf32>
    %142 = tpu.matmul %139, %141, %cst_99 {dimension_numbers = #tpu.dot_dimension_numbers<[1], [0], [0], [1], [0, 0, 1, 1], [], []>} : vector<8x160xbf16>, vector<160x128xbf16>, vector<8x128xf32> -> vector<8x128xf32>
    %143 = arith.addf %133, %142 : vector<8x128xf32>
    %c0_100 = arith.constant 0 : index
    %c0_101 = arith.constant 0 : index
    %c2_102 = arith.constant 2 : index
    %c0_103 = arith.constant 0 : index
    %144 = vector.load %arg4[%c0_100, %c0_101, %c2_102, %c0_103] : memref<1x1x5x128xf32, #tpu.memory_space<vmem>>, vector<1x1x1x128xf32>
    %145 = vector.shape_cast %144 : vector<1x1x1x128xf32> to vector<1x128xf32>
    %146 = vector.broadcast %145 : vector<1x128xf32> to vector<8x128xf32>
    %147 = arith.addf %143, %146 : vector<8x128xf32>
    %cst_104 = arith.constant 0.000000e+00 : f32
    %148 = vector.broadcast %cst_104 : f32 to vector<8x128xf32>
    %149 = arith.cmpf oge, %147, %148 : vector<8x128xf32>
    %cst_105 = arith.constant 2.000000e-01 : f32
    %150 = vector.broadcast %cst_105 : f32 to vector<8x128xf32>
    %151 = arith.mulf %150, %147 : vector<8x128xf32>
    %152 = arith.select %149, %147, %151 : vector<8x128xi1>, vector<8x128xf32>
    %153 = vector.extract_strided_slice %152 {offsets = [0, 0], sizes = [8, 16], strides = [1, 1]} : vector<8x128xf32> to vector<8x16xf32>
    %c0_106 = arith.constant 0 : index
    %c128 = arith.constant 128 : index
    %154 = vector.load %arg6[%c0_106, %c128] : memref<8x160xf32, #tpu.memory_space<vmem>>, vector<8x16xf32>
    tpu.vector_store %arg6[%c0_106, %c128], %153 {strides = array<i32>} : memref<8x160xf32, #tpu.memory_space<vmem>>, vector<8x16xf32>,
    %c0_107 = arith.constant 0 : index
    %c0_108 = arith.constant 0 : index
    %155 = vector.load %arg6[%c0_107, %c0_108] : memref<8x160xf32, #tpu.memory_space<vmem>>, vector<8x160xf32>
    %cst_109 = arith.constant 0.000000e+00 : f32
    %156 = vector.broadcast %cst_109 : f32 to vector<1x160xf32>
    %157 = vector.extract_strided_slice %155 {offsets = [0, 0], sizes = [7, 160], strides = [1, 1]} : vector<8x160xf32> to vector<7x160xf32>
    %158 = tpu.concatenate %156, %157 in 0 : vector<1x160xf32>, vector<7x160xf32> -> vector<8x160xf32>
    %159 = vector.broadcast %35 : vector<8x1xf32> to vector<8x160xf32>
    %160 = arith.mulf %158, %159 : vector<8x160xf32>
    %161 = arith.truncf %160 : vector<8x160xf32> to vector<8x160xbf16>
    %c0_110 = arith.constant 0 : index
    %c0_111 = arith.constant 0 : index
    %c3 = arith.constant 3 : index
    %c0_112 = arith.constant 0 : index
    %c0_113 = arith.constant 0 : index
    %c0_114 = arith.constant 0 : index
    %162 = vector.load %arg3[%c0_110, %c0_111, %c3, %c0_112, %c0_113, %c0_114] : memref<1x1x5x3x160x128xbf16, #tpu.memory_space<vmem>>, vector<1x1x1x1x160x128xbf16>
    %163 = vector.shape_cast %162 : vector<1x1x1x1x160x128xbf16> to vector<160x128xbf16>
    %cst_115 = arith.constant dense<0.000000e+00> : vector<8x128xf32>
    %164 = tpu.matmul %161, %163, %cst_115 {dimension_numbers = #tpu.dot_dimension_numbers<[1], [0], [0], [1], [0, 0, 1, 1], [], []>} : vector<8x160xbf16>, vector<160x128xbf16>, vector<8x128xf32> -> vector<8x128xf32>
    %165 = arith.truncf %155 : vector<8x160xf32> to vector<8x160xbf16>
    %c0_116 = arith.constant 0 : index
    %c0_117 = arith.constant 0 : index
    %c3_118 = arith.constant 3 : index
    %c1_119 = arith.constant 1 : index
    %c0_120 = arith.constant 0 : index
    %c0_121 = arith.constant 0 : index
    %166 = vector.load %arg3[%c0_116, %c0_117, %c3_118, %c1_119, %c0_120, %c0_121] : memref<1x1x5x3x160x128xbf16, #tpu.memory_space<vmem>>, vector<1x1x1x1x160x128xbf16>
    %167 = vector.shape_cast %166 : vector<1x1x1x1x160x128xbf16> to vector<160x128xbf16>
    %cst_122 = arith.constant dense<0.000000e+00> : vector<8x128xf32>
    %168 = tpu.matmul %165, %167, %cst_122 {dimension_numbers = #tpu.dot_dimension_numbers<[1], [0], [0], [1], [0, 0, 1, 1], [], []>} : vector<8x160xbf16>, vector<160x128xbf16>, vector<8x128xf32> -> vector<8x128xf32>
    %169 = arith.addf %164, %168 : vector<8x128xf32>
    %170 = vector.extract_strided_slice %155 {offsets = [1, 0], sizes = [7, 160], strides = [1, 1]} : vector<8x160xf32> to vector<7x160xf32>
    %cst_123 = arith.constant 0.000000e+00 : f32
    %171 = vector.broadcast %cst_123 : f32 to vector<1x160xf32>
    %172 = tpu.concatenate %170, %171 in 0 : vector<7x160xf32>, vector<1x160xf32> -> vector<8x160xf32>
    %173 = vector.broadcast %46 : vector<8x1xf32> to vector<8x160xf32>
    %174 = arith.mulf %172, %173 : vector<8x160xf32>
    %175 = arith.truncf %174 : vector<8x160xf32> to vector<8x160xbf16>
    %c0_124 = arith.constant 0 : index
    %c0_125 = arith.constant 0 : index
    %c3_126 = arith.constant 3 : index
    %c2_127 = arith.constant 2 : index
    %c0_128 = arith.constant 0 : index
    %c0_129 = arith.constant 0 : index
    %176 = vector.load %arg3[%c0_124, %c0_125, %c3_126, %c2_127, %c0_128, %c0_129] : memref<1x1x5x3x160x128xbf16, #tpu.memory_space<vmem>>, vector<1x1x1x1x160x128xbf16>
    %177 = vector.shape_cast %176 : vector<1x1x1x1x160x128xbf16> to vector<160x128xbf16>
    %cst_130 = arith.constant dense<0.000000e+00> : vector<8x128xf32>
    %178 = tpu.matmul %175, %177, %cst_130 {dimension_numbers = #tpu.dot_dimension_numbers<[1], [0], [0], [1], [0, 0, 1, 1], [], []>} : vector<8x160xbf16>, vector<160x128xbf16>, vector<8x128xf32> -> vector<8x128xf32>
    %179 = arith.addf %169, %178 : vector<8x128xf32>
    %c0_131 = arith.constant 0 : index
    %c0_132 = arith.constant 0 : index
    %c3_133 = arith.constant 3 : index
    %c0_134 = arith.constant 0 : index
    %180 = vector.load %arg4[%c0_131, %c0_132, %c3_133, %c0_134] : memref<1x1x5x128xf32, #tpu.memory_space<vmem>>, vector<1x1x1x128xf32>
    %181 = vector.shape_cast %180 : vector<1x1x1x128xf32> to vector<1x128xf32>
    %182 = vector.broadcast %181 : vector<1x128xf32> to vector<8x128xf32>
    %183 = arith.addf %179, %182 : vector<8x128xf32>
    %cst_135 = arith.constant 0.000000e+00 : f32
    %184 = vector.broadcast %cst_135 : f32 to vector<8x128xf32>
    %185 = arith.cmpf oge, %183, %184 : vector<8x128xf32>
    %cst_136 = arith.constant 2.000000e-01 : f32
    %186 = vector.broadcast %cst_136 : f32 to vector<8x128xf32>
    %187 = arith.mulf %186, %183 : vector<8x128xf32>
    %188 = arith.select %185, %183, %187 : vector<8x128xi1>, vector<8x128xf32>
    %189 = vector.extract_strided_slice %188 {offsets = [0, 0], sizes = [8, 16], strides = [1, 1]} : vector<8x128xf32> to vector<8x16xf32>
    %c0_137 = arith.constant 0 : index
    %c144 = arith.constant 144 : index
    %190 = vector.load %arg6[%c0_137, %c144] : memref<8x160xf32, #tpu.memory_space<vmem>>, vector<8x16xf32>
    tpu.vector_store %arg6[%c0_137, %c144], %189 {strides = array<i32>} : memref<8x160xf32, #tpu.memory_space<vmem>>, vector<8x16xf32>,
    %c0_138 = arith.constant 0 : index
    %c0_139 = arith.constant 0 : index
    %191 = vector.load %arg6[%c0_138, %c0_139] : memref<8x160xf32, #tpu.memory_space<vmem>>, vector<8x160xf32>
    %cst_140 = arith.constant 0.000000e+00 : f32
    %192 = vector.broadcast %cst_140 : f32 to vector<1x160xf32>
    %193 = vector.extract_strided_slice %191 {offsets = [0, 0], sizes = [7, 160], strides = [1, 1]} : vector<8x160xf32> to vector<7x160xf32>
    %194 = tpu.concatenate %192, %193 in 0 : vector<1x160xf32>, vector<7x160xf32> -> vector<8x160xf32>
    %195 = vector.broadcast %35 : vector<8x1xf32> to vector<8x160xf32>
    %196 = arith.mulf %194, %195 : vector<8x160xf32>
    %197 = arith.truncf %196 : vector<8x160xf32> to vector<8x160xbf16>
    %c0_141 = arith.constant 0 : index
    %c0_142 = arith.constant 0 : index
    %c4 = arith.constant 4 : index
    %c0_143 = arith.constant 0 : index
    %c0_144 = arith.constant 0 : index
    %c0_145 = arith.constant 0 : index
    %198 = vector.load %arg3[%c0_141, %c0_142, %c4, %c0_143, %c0_144, %c0_145] : memref<1x1x5x3x160x128xbf16, #tpu.memory_space<vmem>>, vector<1x1x1x1x160x128xbf16>
    %199 = vector.shape_cast %198 : vector<1x1x1x1x160x128xbf16> to vector<160x128xbf16>
    %cst_146 = arith.constant dense<0.000000e+00> : vector<8x128xf32>
    %200 = tpu.matmul %197, %199, %cst_146 {dimension_numbers = #tpu.dot_dimension_numbers<[1], [0], [0], [1], [0, 0, 1, 1], [], []>} : vector<8x160xbf16>, vector<160x128xbf16>, vector<8x128xf32> -> vector<8x128xf32>
    %201 = arith.truncf %191 : vector<8x160xf32> to vector<8x160xbf16>
    %c0_147 = arith.constant 0 : index
    %c0_148 = arith.constant 0 : index
    %c4_149 = arith.constant 4 : index
    %c1_150 = arith.constant 1 : index
    %c0_151 = arith.constant 0 : index
    %c0_152 = arith.constant 0 : index
    %202 = vector.load %arg3[%c0_147, %c0_148, %c4_149, %c1_150, %c0_151, %c0_152] : memref<1x1x5x3x160x128xbf16, #tpu.memory_space<vmem>>, vector<1x1x1x1x160x128xbf16>
    %203 = vector.shape_cast %202 : vector<1x1x1x1x160x128xbf16> to vector<160x128xbf16>
    %cst_153 = arith.constant dense<0.000000e+00> : vector<8x128xf32>
    %204 = tpu.matmul %201, %203, %cst_153 {dimension_numbers = #tpu.dot_dimension_numbers<[1], [0], [0], [1], [0, 0, 1, 1], [], []>} : vector<8x160xbf16>, vector<160x128xbf16>, vector<8x128xf32> -> vector<8x128xf32>
    %205 = arith.addf %200, %204 : vector<8x128xf32>
    %206 = vector.extract_strided_slice %191 {offsets = [1, 0], sizes = [7, 160], strides = [1, 1]} : vector<8x160xf32> to vector<7x160xf32>
    %cst_154 = arith.constant 0.000000e+00 : f32
    %207 = vector.broadcast %cst_154 : f32 to vector<1x160xf32>
    %208 = tpu.concatenate %206, %207 in 0 : vector<7x160xf32>, vector<1x160xf32> -> vector<8x160xf32>
    %209 = vector.broadcast %46 : vector<8x1xf32> to vector<8x160xf32>
    %210 = arith.mulf %208, %209 : vector<8x160xf32>
    %211 = arith.truncf %210 : vector<8x160xf32> to vector<8x160xbf16>
    %c0_155 = arith.constant 0 : index
    %c0_156 = arith.constant 0 : index
    %c4_157 = arith.constant 4 : index
    %c2_158 = arith.constant 2 : index
    %c0_159 = arith.constant 0 : index
    %c0_160 = arith.constant 0 : index
    %212 = vector.load %arg3[%c0_155, %c0_156, %c4_157, %c2_158, %c0_159, %c0_160] : memref<1x1x5x3x160x128xbf16, #tpu.memory_space<vmem>>, vector<1x1x1x1x160x128xbf16>
    %213 = vector.shape_cast %212 : vector<1x1x1x1x160x128xbf16> to vector<160x128xbf16>
    %cst_161 = arith.constant dense<0.000000e+00> : vector<8x128xf32>
    %214 = tpu.matmul %211, %213, %cst_161 {dimension_numbers = #tpu.dot_dimension_numbers<[1], [0], [0], [1], [0, 0, 1, 1], [], []>} : vector<8x160xbf16>, vector<160x128xbf16>, vector<8x128xf32> -> vector<8x128xf32>
    %215 = arith.addf %205, %214 : vector<8x128xf32>
    %c0_162 = arith.constant 0 : index
    %c0_163 = arith.constant 0 : index
    %c4_164 = arith.constant 4 : index
    %c0_165 = arith.constant 0 : index
    %216 = vector.load %arg4[%c0_162, %c0_163, %c4_164, %c0_165] : memref<1x1x5x128xf32, #tpu.memory_space<vmem>>, vector<1x1x1x128xf32>
    %217 = vector.shape_cast %216 : vector<1x1x1x128xf32> to vector<1x128xf32>
    %218 = vector.broadcast %217 : vector<1x128xf32> to vector<8x128xf32>
    %219 = arith.addf %215, %218 : vector<8x128xf32>
    %220 = vector.extract_strided_slice %219 {offsets = [0, 0], sizes = [8, 96], strides = [1, 1]} : vector<8x128xf32> to vector<8x96xf32>
    %cst_166 = arith.constant 2.000000e-01 : f32
    %221 = vector.broadcast %cst_166 : f32 to vector<8x96xf32>
    %222 = arith.mulf %220, %221 : vector<8x96xf32>
    %223 = vector.extract_strided_slice %191 {offsets = [0, 0], sizes = [8, 96], strides = [1, 1]} : vector<8x160xf32> to vector<8x96xf32>
    %224 = arith.addf %222, %223 : vector<8x96xf32>
    %c0_167 = arith.constant 0 : index
    %c0_168 = arith.constant 0 : index
    %225 = vector.load %arg6[%c0_167, %c0_168] : memref<8x160xf32, #tpu.memory_space<vmem>>, vector<8x96xf32>
    tpu.vector_store %arg6[%c0_167, %c0_168], %224 {strides = array<i32>} : memref<8x160xf32, #tpu.memory_space<vmem>>, vector<8x96xf32>,
    %c2_i32_169 = arith.constant 2 : i32
    %226 = arith.cmpi eq, %arg1, %c2_i32_169 : i32
    %227 = arith.extui %226 : i1 to i32
    %c0_i32_170 = arith.constant 0 : i32
    %228 = arith.cmpi ne, %227, %c0_i32_170 : i32
    scf.if %228 {
      %c0_173 = arith.constant 0 : index
      %c0_174 = arith.constant 0 : index
      %234 = vector.load %arg6[%c0_173, %c0_174] : memref<8x160xf32, #tpu.memory_space<vmem>>, vector<8x96xf32>
      %cst_175 = arith.constant 2.000000e-01 : f32
      %235 = vector.broadcast %cst_175 : f32 to vector<8x96xf32>
      %236 = arith.mulf %234, %235 : vector<8x96xf32>
      %c0_176 = arith.constant 0 : index
      %c0_177 = arith.constant 0 : index
      %237 = vector.load %arg7[%c0_176, %c0_177] : memref<8x160xf32, #tpu.memory_space<vmem>>, vector<8x96xf32>
      %238 = arith.addf %236, %237 : vector<8x96xf32>
      %cst_178 = arith.constant 2.000000e+00 : f32
      %239 = vector.broadcast %cst_178 : f32 to vector<8x96xf32>
      %240 = arith.mulf %238, %239 : vector<8x96xf32>
      %c0_179 = arith.constant 0 : index
      %c0_180 = arith.constant 0 : index
      %241 = vector.load %arg6[%c0_179, %c0_180] : memref<8x160xf32, #tpu.memory_space<vmem>>, vector<8x96xf32>
      tpu.vector_store %arg6[%c0_179, %c0_180], %240 {strides = array<i32>} : memref<8x160xf32, #tpu.memory_space<vmem>>, vector<8x96xf32>,
    } else {
    }
    %c7_i32 = arith.constant 7 : i32
    %229 = arith.cmpi eq, %arg0, %c7_i32 : i32
    %c2_i32_171 = arith.constant 2 : i32
    %230 = arith.cmpi eq, %arg1, %c2_i32_171 : i32
    %231 = arith.andi %229, %230 : i1
    %232 = arith.extui %231 : i1 to i32
    %c0_i32_172 = arith.constant 0 : i32
    %233 = arith.cmpi ne, %232, %c0_i32_172 : i32
    scf.if %233 {
      %c0_173 = arith.constant 0 : index
      %c0_174 = arith.constant 0 : index
      %234 = vector.load %arg6[%c0_173, %c0_174] : memref<8x160xf32, #tpu.memory_space<vmem>>, vector<8x160xf32>
      %c0_175 = arith.constant 0 : index
      %c0_176 = arith.constant 0 : index
      %235 = vector.load %arg5[%c0_175, %c0_176] : memref<8x160xf32, #tpu.memory_space<vmem>>, vector<8x160xf32>
      tpu.vector_store %arg5[%c0_175, %c0_176], %234 {strides = array<i32>} : memref<8x160xf32, #tpu.memory_space<vmem>>, vector<8x160xf32>,
    } else {
    }
    return
  }
  func.func @transform_0(%arg0: i32, %arg1: i32) -> (i32, i32) {
    %c0_i32 = arith.constant 0 : i32
    %c0_i32_0 = arith.constant 0 : i32
    %c0_i32_1 = arith.constant 0 : i32
    return %c0_i32, %c0_i32_0 : i32, i32
  }
  func.func @transform_1(%arg0: i32, %arg1: i32) -> (i32, i32, i32, i32, i32, i32) {
    %c0_i32 = arith.constant 0 : i32
    %c0_i32_0 = arith.constant 0 : i32
    %c0_i32_1 = arith.constant 0 : i32
    %c0_i32_2 = arith.constant 0 : i32
    %c0_i32_3 = arith.constant 0 : i32
    return %arg0, %arg1, %c0_i32, %c0_i32_0, %c0_i32_1, %c0_i32_2 : i32, i32, i32, i32, i32, i32
  }
  func.func @transform_2(%arg0: i32, %arg1: i32) -> (i32, i32, i32, i32) {
    %c0_i32 = arith.constant 0 : i32
    %c0_i32_0 = arith.constant 0 : i32
    %c0_i32_1 = arith.constant 0 : i32
    return %arg0, %arg1, %c0_i32, %c0_i32_0 : i32, i32, i32, i32
  }
  func.func @transform_3(%arg0: i32, %arg1: i32) -> (i32, i32) {
    %c0_i32 = arith.constant 0 : i32
    %c0_i32_0 = arith.constant 0 : i32
    %c0_i32_1 = arith.constant 0 : i32
    return %c0_i32, %c0_i32_0 : i32, i32
  }
}

module attributes {stable_mosaic.version = 11 : i64} {
  func.func @_gemm_kernel(%arg0: memref<8x864xbf16, #tpu.memory_space<vmem>>, %arg1: memref<864x96xbf16, #tpu.memory_space<vmem>>, %arg2: memref<1x96xf32, #tpu.memory_space<vmem>>, %arg3: memref<8x96xf32, #tpu.memory_space<vmem>>) attributes {dimension_semantics = [], scalar_prefetch = 0 : i64, scratch_operands = 0 : i64, tpu.core_type = #tpu.core_type<tc>} {
    %c0 = arith.constant 0 : index
    %c0_0 = arith.constant 0 : index
    %0 = vector.load %arg0[%c0, %c0_0] : memref<8x864xbf16, #tpu.memory_space<vmem>>, vector<8x864xbf16>
    %c0_1 = arith.constant 0 : index
    %c0_2 = arith.constant 0 : index
    %1 = vector.load %arg1[%c0_1, %c0_2] : memref<864x96xbf16, #tpu.memory_space<vmem>>, vector<864x96xbf16>
    %cst = arith.constant dense<0.000000e+00> : vector<8x96xf32>
    %2 = tpu.matmul %0, %1, %cst {dimension_numbers = #tpu.dot_dimension_numbers<[1], [0], [0], [1], [0, 0, 1, 1], [], []>} : vector<8x864xbf16>, vector<864x96xbf16>, vector<8x96xf32> -> vector<8x96xf32>
    %c0_3 = arith.constant 0 : index
    %c0_4 = arith.constant 0 : index
    %3 = vector.load %arg2[%c0_3, %c0_4] : memref<1x96xf32, #tpu.memory_space<vmem>>, vector<1x96xf32>
    %4 = vector.broadcast %3 : vector<1x96xf32> to vector<8x96xf32>
    %5 = arith.addf %2, %4 : vector<8x96xf32>
    %c0_5 = arith.constant 0 : index
    %c0_6 = arith.constant 0 : index
    %6 = vector.load %arg3[%c0_5, %c0_6] : memref<8x96xf32, #tpu.memory_space<vmem>>, vector<8x96xf32>
    tpu.vector_store %arg3[%c0_5, %c0_6], %5 {strides = array<i32>} : memref<8x96xf32, #tpu.memory_space<vmem>>, vector<8x96xf32>,
    return
  }
}

module attributes {stable_mosaic.version = 11 : i64} {
  func.func @_gemm_kernel(%arg0: memref<32x216xbf16, #tpu.memory_space<vmem>>, %arg1: memref<216x96xbf16, #tpu.memory_space<vmem>>, %arg2: memref<1x96xf32, #tpu.memory_space<vmem>>, %arg3: memref<32x96xf32, #tpu.memory_space<vmem>>) attributes {dimension_semantics = [], scalar_prefetch = 0 : i64, scratch_operands = 0 : i64, tpu.core_type = #tpu.core_type<tc>} {
    %c0 = arith.constant 0 : index
    %c0_0 = arith.constant 0 : index
    %0 = vector.load %arg0[%c0, %c0_0] : memref<32x216xbf16, #tpu.memory_space<vmem>>, vector<32x216xbf16>
    %c0_1 = arith.constant 0 : index
    %c0_2 = arith.constant 0 : index
    %1 = vector.load %arg1[%c0_1, %c0_2] : memref<216x96xbf16, #tpu.memory_space<vmem>>, vector<216x96xbf16>
    %cst = arith.constant dense<0.000000e+00> : vector<32x96xf32>
    %2 = tpu.matmul %0, %1, %cst {dimension_numbers = #tpu.dot_dimension_numbers<[1], [0], [0], [1], [0, 0, 1, 1], [], []>} : vector<32x216xbf16>, vector<216x96xbf16>, vector<32x96xf32> -> vector<32x96xf32>
    %c0_3 = arith.constant 0 : index
    %c0_4 = arith.constant 0 : index
    %3 = vector.load %arg2[%c0_3, %c0_4] : memref<1x96xf32, #tpu.memory_space<vmem>>, vector<1x96xf32>
    %4 = vector.broadcast %3 : vector<1x96xf32> to vector<32x96xf32>
    %5 = arith.addf %2, %4 : vector<32x96xf32>
    %cst_5 = arith.constant 0.000000e+00 : f32
    %6 = vector.broadcast %cst_5 : f32 to vector<32x96xf32>
    %7 = arith.cmpf oge, %5, %6 : vector<32x96xf32>
    %cst_6 = arith.constant 2.000000e-01 : f32
    %8 = vector.broadcast %cst_6 : f32 to vector<32x96xf32>
    %9 = arith.mulf %8, %5 : vector<32x96xf32>
    %10 = arith.select %7, %5, %9 : vector<32x96xi1>, vector<32x96xf32>
    %c0_7 = arith.constant 0 : index
    %c0_8 = arith.constant 0 : index
    %11 = vector.load %arg3[%c0_7, %c0_8] : memref<32x96xf32, #tpu.memory_space<vmem>>, vector<32x96xf32>
    tpu.vector_store %arg3[%c0_7, %c0_8], %10 {strides = array<i32>} : memref<32x96xf32, #tpu.memory_space<vmem>>, vector<32x96xf32>,
    return
  }
}

module attributes {stable_mosaic.version = 11 : i64} {
  func.func @_gemm_kernel(%arg0: memref<32x864xbf16, #tpu.memory_space<vmem>>, %arg1: memref<864x192xbf16, #tpu.memory_space<vmem>>, %arg2: memref<1x192xf32, #tpu.memory_space<vmem>>, %arg3: memref<32x192xf32, #tpu.memory_space<vmem>>) attributes {dimension_semantics = [], scalar_prefetch = 0 : i64, scratch_operands = 0 : i64, tpu.core_type = #tpu.core_type<tc>} {
    %c0 = arith.constant 0 : index
    %c0_0 = arith.constant 0 : index
    %0 = vector.load %arg0[%c0, %c0_0] : memref<32x864xbf16, #tpu.memory_space<vmem>>, vector<32x864xbf16>
    %c0_1 = arith.constant 0 : index
    %c0_2 = arith.constant 0 : index
    %1 = vector.load %arg1[%c0_1, %c0_2] : memref<864x192xbf16, #tpu.memory_space<vmem>>, vector<864x192xbf16>
    %cst = arith.constant dense<0.000000e+00> : vector<32x192xf32>
    %2 = tpu.matmul %0, %1, %cst {dimension_numbers = #tpu.dot_dimension_numbers<[1], [0], [0], [1], [0, 0, 1, 1], [], []>} : vector<32x864xbf16>, vector<864x192xbf16>, vector<32x192xf32> -> vector<32x192xf32>
    %c0_3 = arith.constant 0 : index
    %c0_4 = arith.constant 0 : index
    %3 = vector.load %arg2[%c0_3, %c0_4] : memref<1x192xf32, #tpu.memory_space<vmem>>, vector<1x192xf32>
    %4 = vector.broadcast %3 : vector<1x192xf32> to vector<32x192xf32>
    %5 = arith.addf %2, %4 : vector<32x192xf32>
    %cst_5 = arith.constant 0.000000e+00 : f32
    %6 = vector.broadcast %cst_5 : f32 to vector<32x192xf32>
    %7 = arith.cmpf oge, %5, %6 : vector<32x192xf32>
    %cst_6 = arith.constant 2.000000e-01 : f32
    %8 = vector.broadcast %cst_6 : f32 to vector<32x192xf32>
    %9 = arith.mulf %8, %5 : vector<32x192xf32>
    %10 = arith.select %7, %5, %9 : vector<32x192xi1>, vector<32x192xf32>
    %c0_7 = arith.constant 0 : index
    %c0_8 = arith.constant 0 : index
    %11 = vector.load %arg3[%c0_7, %c0_8] : memref<32x192xf32, #tpu.memory_space<vmem>>, vector<32x192xf32>
    tpu.vector_store %arg3[%c0_7, %c0_8], %10 {strides = array<i32>} : memref<32x192xf32, #tpu.memory_space<vmem>>, vector<32x192xf32>,
    return
  }
}

module attributes {stable_mosaic.version = 11 : i64} {
  func.func @_gemm_kernel(%arg0: memref<128x432xbf16, #tpu.memory_space<vmem>>, %arg1: memref<432x192xbf16, #tpu.memory_space<vmem>>, %arg2: memref<1x192xf32, #tpu.memory_space<vmem>>, %arg3: memref<128x192xf32, #tpu.memory_space<vmem>>) attributes {dimension_semantics = [], scalar_prefetch = 0 : i64, scratch_operands = 0 : i64, tpu.core_type = #tpu.core_type<tc>} {
    %c0 = arith.constant 0 : index
    %c0_0 = arith.constant 0 : index
    %0 = vector.load %arg0[%c0, %c0_0] : memref<128x432xbf16, #tpu.memory_space<vmem>>, vector<128x432xbf16>
    %c0_1 = arith.constant 0 : index
    %c0_2 = arith.constant 0 : index
    %1 = vector.load %arg1[%c0_1, %c0_2] : memref<432x192xbf16, #tpu.memory_space<vmem>>, vector<432x192xbf16>
    %cst = arith.constant dense<0.000000e+00> : vector<128x192xf32>
    %2 = tpu.matmul %0, %1, %cst {dimension_numbers = #tpu.dot_dimension_numbers<[1], [0], [0], [1], [0, 0, 1, 1], [], []>} : vector<128x432xbf16>, vector<432x192xbf16>, vector<128x192xf32> -> vector<128x192xf32>
    %c0_3 = arith.constant 0 : index
    %c0_4 = arith.constant 0 : index
    %3 = vector.load %arg2[%c0_3, %c0_4] : memref<1x192xf32, #tpu.memory_space<vmem>>, vector<1x192xf32>
    %4 = vector.broadcast %3 : vector<1x192xf32> to vector<128x192xf32>
    %5 = arith.addf %2, %4 : vector<128x192xf32>
    %cst_5 = arith.constant 0.000000e+00 : f32
    %6 = vector.broadcast %cst_5 : f32 to vector<128x192xf32>
    %7 = arith.cmpf oge, %5, %6 : vector<128x192xf32>
    %cst_6 = arith.constant 2.000000e-01 : f32
    %8 = vector.broadcast %cst_6 : f32 to vector<128x192xf32>
    %9 = arith.mulf %8, %5 : vector<128x192xf32>
    %10 = arith.select %7, %5, %9 : vector<128x192xi1>, vector<128x192xf32>
    %c0_7 = arith.constant 0 : index
    %c0_8 = arith.constant 0 : index
    %11 = vector.load %arg3[%c0_7, %c0_8] : memref<128x192xf32, #tpu.memory_space<vmem>>, vector<128x192xf32>
    tpu.vector_store %arg3[%c0_7, %c0_8], %10 {strides = array<i32>} : memref<128x192xf32, #tpu.memory_space<vmem>>, vector<128x192xf32>,
    return
  }
}

module attributes {stable_mosaic.version = 11 : i64} {
  func.func @_gemm_kernel(%arg0: memref<128x192xbf16, #tpu.memory_space<vmem>>, %arg1: memref<192x172xbf16, #tpu.memory_space<vmem>>, %arg2: memref<1x172xf32, #tpu.memory_space<vmem>>, %arg3: memref<128x172xf32, #tpu.memory_space<vmem>>) attributes {dimension_semantics = [], scalar_prefetch = 0 : i64, scratch_operands = 0 : i64, tpu.core_type = #tpu.core_type<tc>} {
    %c0 = arith.constant 0 : index
    %c0_0 = arith.constant 0 : index
    %0 = vector.load %arg0[%c0, %c0_0] : memref<128x192xbf16, #tpu.memory_space<vmem>>, vector<128x192xbf16>
    %c0_1 = arith.constant 0 : index
    %c0_2 = arith.constant 0 : index
    %1 = vector.load %arg1[%c0_1, %c0_2] : memref<192x172xbf16, #tpu.memory_space<vmem>>, vector<192x172xbf16>
    %cst = arith.constant dense<0.000000e+00> : vector<128x172xf32>
    %2 = tpu.matmul %0, %1, %cst {dimension_numbers = #tpu.dot_dimension_numbers<[1], [0], [0], [1], [0, 0, 1, 1], [], []>} : vector<128x192xbf16>, vector<192x172xbf16>, vector<128x172xf32> -> vector<128x172xf32>
    %c0_3 = arith.constant 0 : index
    %c0_4 = arith.constant 0 : index
    %3 = vector.load %arg2[%c0_3, %c0_4] : memref<1x172xf32, #tpu.memory_space<vmem>>, vector<1x172xf32>
    %4 = vector.broadcast %3 : vector<1x172xf32> to vector<128x172xf32>
    %5 = arith.addf %2, %4 : vector<128x172xf32>
    %c0_5 = arith.constant 0 : index
    %c0_6 = arith.constant 0 : index
    %6 = vector.load %arg3[%c0_5, %c0_6] : memref<128x172xf32, #tpu.memory_space<vmem>>, vector<128x172xf32>
    tpu.vector_store %arg3[%c0_5, %c0_6], %5 {strides = array<i32>} : memref<128x172xf32, #tpu.memory_space<vmem>>, vector<128x172xf32>,
    return
  }
}

</mosaic_0001>

<bundles_post_ra>
// kernel: csn_forward.9
= control target key start
LH: loop header
LB: loop body
LE: loop exit
PB: predicated region body
PF: predicated region fallthrough
CT: control target
= control target key end

     0   :  { %8 = vsyncpa [#allocation3], 0  ;;  %s2360_s0 = inlined_call_operand.vmem [shape: bf16[16,2064], index: 0, kind: input, shape index: {}]   ;;  %s2361_s1 = inlined_call_operand.hbm [shape: bf16[2064,128], index: 1, kind: input, shape index: {}]   ;;  %s2362_s2 = inlined_call_operand.hbm [shape: f32[1,128], index: 2, kind: input, shape index: {}]   ;;  %s2363_s3 = inlined_call_operand.vmem [shape: f32[16,128], index: 3, kind: output, shape index: {}]  }
   0x1   :  { %s16_s14 = sshll.u32 %s2361_s1, 4  ;;  %s17_s14 = int_to_ptr.hbm [resolvable:$true] %s16_s14 }
   0x2   :  { %9 = vsyncpa [#allocation5], 0  ;;  %s2222_s15 = smov [#allocation2]   ;;  %s30_s19 = sshll.u32 %s2362_s2, 4  ;;  %s31_s19 = int_to_ptr.hbm [resolvable:$true] %s30_s19 }
   0x3   :  { %s18_s16 = sshll.u32 %s2222_s15, 4  ;;  %s2223_s20 = smov 64   ;;  %s19_s16 = int_to_ptr.vmem [resolvable:$true] %s18_s16 }
   0x4   :  { %s2224_s21 = smov 4   ;;  %s2225_s22 = smov [#allocation4]  }
   0x5   :  { %24 = dma.hbm_to_vmem [thread:$0]  %s17_s14, 16512, %s19_s16, [#allocation3], %s2223_s20, %s2223_s20, %s2224_s21  }
   0x6   :  { %s32_s23 = sshll.u32 %s2225_s22, 4  ;;  %s33_s23 = int_to_ptr.vmem [resolvable:$true] %s32_s23 }
   0x7   :  { %35 = dma.hbm_to_vmem [thread:$0]  %s31_s19, 16, %s33_s23, [#allocation5]  }
   0x8   :  { %2218 = dma.done.wait [#allocation3], 16512  }
   0x9   :  { %2219 = vsyncadd [#allocation3], 4294950784 }
   0xa   :  { %2220 = dma.done.wait [#allocation5], 16  }
   0xb   :  { %2221 = vsyncadd [#allocation5], 4294967280  ;;  %v2043_v0 = vld [vmem:[#allocation2 + $0x38] sm:$0xff]  ;;  %v2042_v4 = vld [vmem:[#allocation2 + $0x30] sm:$0xff]  ;;  %vm1184_vm0 = vcmask 130048  }
   0xc   :  { %v2059_v1 = vld [vmem:[#allocation2 + $0xb8] sm:$0xff]  ;;  %1188 = vmatpush.bf16.msra.mxu0 %v2043_v0  ;;  %v2058_v5 = vld [vmem:[#allocation2 + $0xb0] sm:$0xff]  ;;  %v2041_v8 = vld [vmem:[#allocation2 + $0x28] sm:$0xff] }
   0xd   :  { %v2067_v2 = vld [vmem:[#allocation2 + $0xf8] sm:$0xff]  ;;  %1216 = vmatpush.bf16.msra.mxu2 %v2059_v1  ;;  %v2066_v6 = vld [vmem:[#allocation2 + $0xf0] sm:$0xff]  ;;  %v2057_v9 = vld [vmem:[#allocation2 + $0xa8] sm:$0xff] }
   0xe   :  { %v2051_v3 = vld [vmem:[#allocation2 + $0x78] sm:$0xff]  ;;  %1230 = vmatpush.bf16.msra.mxu3 %v2067_v2  ;;  %v2050_v7 = vld [vmem:[#allocation2 + $0x70] sm:$0xff]  ;;  %v2065_v10 = vld [vmem:[#allocation2 + $0xe8] sm:$0xff] }
   0xf   :  { %1202 = vmatpush.bf16.msra.mxu1 %v2051_v3  ;;  %v2049_v11 = vld [vmem:[#allocation2 + $0x68] sm:$0xff]  ;;  %v2040_v12 = vld [vmem:[#allocation2 + $0x20] sm:$0xff]  ;;  %v2039_v16 = vld [vmem:[#allocation2 + $0x18] sm:$0xff] }
  0x10   :  { %1189 = vmatpush.bf16.msra.mxu0 %v2042_v4  ;;  %v2056_v13 = vld [vmem:[#allocation2 + $0xa0] sm:$0xff]  ;;  %v2055_v17 = vld [vmem:[#allocation2 + $0x98] sm:$0xff]  ;;  %v2038_v20 = vld [vmem:[#allocation2 + $0x10] sm:$0xff] }
  0x11   :  { %1217 = vmatpush.bf16.msra.mxu2 %v2058_v5  ;;  %v2064_v14 = vld [vmem:[#allocation2 + $0xe0] sm:$0xff]  ;;  %v2063_v18 = vld [vmem:[#allocation2 + $0xd8] sm:$0xff]  ;;  %v2054_v21 = vld [vmem:[#allocation2 + $0x90] sm:$0xff] }
  0x12   :  { %1231 = vmatpush.bf16.msra.mxu3 %v2066_v6  ;;  %v2048_v15 = vld [vmem:[#allocation2 + $0x60] sm:$0xff]  ;;  %v2047_v19 = vld [vmem:[#allocation2 + $0x58] sm:$0xff]  ;;  %v2062_v22 = vld [vmem:[#allocation2 + $0xd0] sm:$0xff] }
  0x13   :  { %1203 = vmatpush.bf16.msra.mxu1 %v2050_v7  ;;  %v2046_v23 = vld [vmem:[#allocation2 + $0x50] sm:$0xff]  ;;  %v2037_v24 = vld [vmem:[#allocation2 + $0x8] sm:$0xff]  ;;  %v2036_v28 = vld [vmem:[#allocation2] sm:$0xff] }
  0x14   :  { %1190 = vmatpush.bf16.msra.mxu0 %v2041_v8  ;;  %v2053_v25 = vld [vmem:[#allocation2 + $0x88] sm:$0xff]  ;;  %v2052_v29 = vld [vmem:[#allocation2 + $0x80] sm:$0xff]  ;;  %v2075_v31 = vld [vmem:[#allocation2 + $0x138] sm:$0xff] }
  0x15   :  { %1218 = vmatpush.bf16.msra.mxu2 %v2057_v9  ;;  %v2061_v26 = vld [vmem:[#allocation2 + $0xc8] sm:$0xff]  ;;  %v2060_v30 = vld [vmem:[#allocation2 + $0xc0] sm:$0xff]  ;;  %v2091_v34 = vld [vmem:[#allocation2 + $0x1b8] sm:$0xff] }
  0x16   :  { %1232 = vmatpush.bf16.msra.mxu3 %v2065_v10  ;;  %v2045_v27 = vld [vmem:[#allocation2 + $0x48] sm:$0xff]  ;;  %v1436_v32 = vld [vmem:[%s2360_s0] sm:$0xf]  ;;  %v2027_v33 = vld [vmem:[%s2360_s0 + $0x40] sm:$0xf0] }
  0x17   :  { %1204 = vmatpush.bf16.msra.mxu1 %v2049_v11  ;;  %v1444_v35 = vld [vmem:[%s2360_s0 + $0x8] sm:$0xf]  ;;  %v2028_v36 = vld [vmem:[%s2360_s0 + $0x48] sm:$0xf0]  ;;  %v2099_v37 = vld [vmem:[#allocation2 + $0x1f8] sm:$0xff]  ;;  %v1437_v41 = vor.u32 %v2027_v33, %v1436_v32 }
  0x18   :  { %1191 = vmatpush.bf16.msra.mxu0 %v2040_v12  ;;  %v2020_v38 = vld [vmem:[%s2360_s0 + $0xc] sm:$0xf]  ;;  %v1446_v39 = vld [vmem:[%s2360_s0 + $0x4c] sm:$0xf0]  ;;  %v2044_v40 = vld [vmem:[#allocation2 + $0x40] sm:$0xff]  ;;  %v1445_v43 = vor.u32 %v2028_v36, %v1444_v35 }
  0x19   :  { %1219 = vmatpush.bf16.msra.mxu2 %v2056_v13  ;;  %v2083_v42 = vld [vmem:[#allocation2 + $0x178] sm:$0xff]  ;;  %v2019_v44 = vld [vmem:[%s2360_s0 + $0x4] sm:$0xf]  ;;  %v1438_v45 = vld [vmem:[%s2360_s0 + $0x44] sm:$0xf0]  ;;  %v1449_v47 = vor.u32 %v2020_v38, %v1446_v39 }
  0x1a   :  { %1233 = vmatpush.bf16.msra.mxu3 %v2064_v14  ;;  %v2074_v46 = vld [vmem:[#allocation2 + $0x130] sm:$0xff]  ;;  %v1441_v50 = vor.u32 %v2019_v44, %v1438_v45  ;;  %v2073_v52 = vld [vmem:[#allocation2 + $0x128] sm:$0xff]  ;;  %v2072_v56 = vld [vmem:[#allocation2 + $0x120] sm:$0xff] }
  0x1b   :  { %1205 = vmatpush.bf16.msra.mxu1 %v2048_v15  ;;  %v2090_v48 = vld [vmem:[#allocation2 + $0x1b0] sm:$0xff]  ;;  %v2089_v53 = vld [vmem:[#allocation2 + $0x1a8] sm:$0xff]  ;;  %v2088_v57 = vld [vmem:[#allocation2 + $0x1a0] sm:$0xff] }
  0x1c   :  { %1192 = vmatpush.bf16.msra.mxu0 %v2039_v16  ;;  %v2098_v49 = vld [vmem:[#allocation2 + $0x1f0] sm:$0xff]  ;;  %v2097_v54 = vld [vmem:[#allocation2 + $0x1e8] sm:$0xff]  ;;  %v2096_v58 = vld [vmem:[#allocation2 + $0x1e0] sm:$0xff] }
  0x1d   :  { %1220 = vmatpush.bf16.msra.mxu2 %v2055_v17  ;;  %v2082_v51 = vld [vmem:[#allocation2 + $0x170] sm:$0xff]  ;;  %v2081_v55 = vld [vmem:[#allocation2 + $0x168] sm:$0xff]  ;;  %v2080_v59 = vld [vmem:[#allocation2 + $0x160] sm:$0xff] }
  0x1e   :  { %1234 = vmatpush.bf16.msra.mxu3 %v2063_v18  ;;  %v2071_v60 = vld [vmem:[#allocation2 + $0x118] sm:$0xff]  ;;  %v2070_v0 = vld [vmem:[#allocation2 + $0x110] sm:$0xff]  ;;  %v2069_v4 = vld [vmem:[#allocation2 + $0x108] sm:$0xff] }
  0x1f   :  { %1206 = vmatpush.bf16.msra.mxu1 %v2047_v19  ;;  %v2087_v61 = vld [vmem:[#allocation2 + $0x198] sm:$0xff]  ;;  %v2086_v1 = vld [vmem:[#allocation2 + $0x190] sm:$0xff]  ;;  %v2085_v5 = vld [vmem:[#allocation2 + $0x188] sm:$0xff] }
  0x20   :  { %1193 = vmatpush.bf16.msra.mxu0 %v2038_v20  ;;  %v2095_v62 = vld [vmem:[#allocation2 + $0x1d8] sm:$0xff]  ;;  %v2094_v2 = vld [vmem:[#allocation2 + $0x1d0] sm:$0xff]  ;;  %v2093_v6 = vld [vmem:[#allocation2 + $0x1c8] sm:$0xff] }
  0x21   :  { %1221 = vmatpush.bf16.msra.mxu2 %v2054_v21  ;;  %v2079_v63 = vld [vmem:[#allocation2 + $0x158] sm:$0xff]  ;;  %v2078_v3 = vld [vmem:[#allocation2 + $0x150] sm:$0xff]  ;;  %v2077_v7 = vld [vmem:[#allocation2 + $0x148] sm:$0xff] }
  0x22   :  { %1235 = vmatpush.bf16.msra.mxu3 %v2062_v22  ;;  %v2068_v8 = vld [vmem:[#allocation2 + $0x100] sm:$0xff]  ;;  %v2107_v11 = vld [vmem:[#allocation2 + $0x238] sm:$0xff]  ;;  %v1452_v13 = vld [vmem:[%s2360_s0 + $0x10] sm:$0xf] }
  0x23   :  { %1207 = vmatpush.bf16.msra.mxu1 %v2046_v23  ;;  %v2084_v9 = vld [vmem:[#allocation2 + $0x180] sm:$0xff]  ;;  %v2123_v12 = vld [vmem:[#allocation2 + $0x2b8] sm:$0xff]  ;;  %v2029_v14 = vld [vmem:[%s2360_s0 + $0x50] sm:$0xf0] }
  0x24   :  { %1194 = vmatpush.bf16.msra.mxu0 %v2037_v24  ;;  %v2092_v10 = vld [vmem:[#allocation2 + $0x1c0] sm:$0xff]  ;;  %v1460_v15 = vld [vmem:[%s2360_s0 + $0x18] sm:$0xf]  ;;  %v2030_v16 = vld [vmem:[%s2360_s0 + $0x58] sm:$0xf0]  ;;  %v1453_v23 = vor.u32 %v2029_v14, %v1452_v13 }
  0x25   :  { %1222 = vmatpush.bf16.msra.mxu2 %v2053_v25  ;;  %v2131_v17 = vld [vmem:[#allocation2 + $0x2f8] sm:$0xff]  ;;  %v1462_v19 = vld [vmem:[%s2360_s0 + $0x5c] sm:$0xf0]  ;;  %v2021_v21 = vld [vmem:[%s2360_s0 + $0x14] sm:$0xf]  ;;  %v1461_v24 = vor.u32 %v2030_v16, %v1460_v15 }
  0x26   :  { %1236 = vmatpush.bf16.msra.mxu3 %v2061_v26  ;;  %v2022_v18 = vld [vmem:[%s2360_s0 + $0x1c] sm:$0xf]  ;;  %v2076_v20 = vld [vmem:[#allocation2 + $0x140] sm:$0xff]  ;;  %v1454_v22 = vld [vmem:[%s2360_s0 + $0x54] sm:$0xf0] }
  0x27   :  { %1208 = vmatpush.bf16.msra.mxu1 %v2045_v27  ;;  %v2115_v25 = vld [vmem:[#allocation2 + $0x278] sm:$0xff]  ;;  %v1465_v26 = vor.u32 %v2022_v18, %v1462_v19  ;;  %v1457_v27 = vor.u32 %v2021_v21, %v1454_v22  ;;  %v2105_v32 = vld [vmem:[#allocation2 + $0x228] sm:$0xff]  ;;  %v2104_v36 = vld [vmem:[#allocation2 + $0x220] sm:$0xff] }
  0x28   :  { %1195 = vmatpush.bf16.msra.mxu0 %v2036_v28  ;;  %v2106_v28 = vld [vmem:[#allocation2 + $0x230] sm:$0xff]  ;;  %v2121_v33 = vld [vmem:[#allocation2 + $0x2a8] sm:$0xff]  ;;  %v2128_v38 = vld [vmem:[#allocation2 + $0x2e0] sm:$0xff] }
  0x29   :  { %1223 = vmatpush.bf16.msra.mxu2 %v2052_v29  ;;  %v2122_v29 = vld [vmem:[#allocation2 + $0x2b0] sm:$0xff]  ;;  %v2113_v35 = vld [vmem:[#allocation2 + $0x268] sm:$0xff]  ;;  %v2112_v39 = vld [vmem:[#allocation2 + $0x260] sm:$0xff] }
  0x2a   :  { %1237 = vmatpush.bf16.msra.mxu3 %v2060_v30  ;;  %v2130_v30 = vld [vmem:[#allocation2 + $0x2f0] sm:$0xff]  ;;  %v2153_v13 = vld [vmem:[#allocation2 + $0x3a8] sm:$0xff]  ;;  %v2136_v16 = vld [vmem:[#allocation2 + $0x320] sm:$0xff] }
  0x2b   :  { %1209 = vmatpush.bf16.msra.mxu1 %v2044_v40  ;;  %1196 = vmatmul.bf16.vlgmr.msra.gmra.mxu0 %v1437_v41  ;;  %v2103_v40 = vld [vmem:[#allocation2 + $0x218] sm:$0xff]  ;;  %v2102_v44 = vld [vmem:[#allocation2 + $0x210] sm:$0xff]  ;;  %v2161_v14 = vld [vmem:[#allocation2 + $0x3e8] sm:$0xff] }
  0x2c   :  { %1244 = vmatpush.bf16.msrb.mxu0 %v2075_v31  ;;  %1224 = vmatmul.bf16.vlgmr.msra.gmra.mxu2 %v1445_v43  ;;  %v2114_v31 = vld [vmem:[#allocation2 + $0x270] sm:$0xff]  ;;  %v2119_v41 = vld [vmem:[#allocation2 + $0x298] sm:$0xff]  ;;  %v2145_v15 = vld [vmem:[#allocation2 + $0x368] sm:$0xff] }
  0x2d   :  { %1272 = vmatpush.bf16.msrb.mxu2 %v2091_v34  ;;  %1238 = vmatmul.bf16.vlgmr.msra.gmra.mxu3 %v1449_v47  ;;  %v2129_v34 = vld [vmem:[#allocation2 + $0x2e8] sm:$0xff]  ;;  %v2111_v43 = vld [vmem:[#allocation2 + $0x258] sm:$0xff]  ;;  %v2118_v45 = vld [vmem:[#allocation2 + $0x290] sm:$0xff] }
  0x2e   :  { %1286 = vmatpush.bf16.msrb.mxu3 %v2099_v37  ;;  %1210 = vmatmul.bf16.vlgmr.msra.gmra.mxu1 %v1441_v50  ;;  %v2120_v37 = vld [vmem:[#allocation2 + $0x2a0] sm:$0xff]  ;;  %v2110_v47 = vld [vmem:[#allocation2 + $0x250] sm:$0xff]  ;;  %v2125_v50 = vld [vmem:[#allocation2 + $0x2c8] sm:$0xff] }
  0x2f   :  { %1258 = vmatpush.bf16.msrb.mxu1 %v2083_v42  ;;  %v2127_v42 = vld [vmem:[#allocation2 + $0x2d8] sm:$0xff]  ;;  %v2160_v18 = vld [vmem:[#allocation2 + $0x3e0] sm:$0xff] }
  0x30   :  { %1245 = vmatpush.bf16.msrb.mxu0 %v2074_v46  ;;  %v2126_v46 = vld [vmem:[#allocation2 + $0x2d0] sm:$0xff]  ;;  %v2144_v19 = vld [vmem:[#allocation2 + $0x360] sm:$0xff]  ;;  %v2151_v21 = vld [vmem:[#allocation2 + $0x398] sm:$0xff] }
  0x31   :  { %1273 = vmatpush.bf16.msrb.mxu2 %v2090_v48  ;;  %v2101_v48 = vld [vmem:[#allocation2 + $0x208] sm:$0xff]  ;;  %v2159_v22 = vld [vmem:[#allocation2 + $0x3d8] sm:$0xff] }
  0x32   :  { %1287 = vmatpush.bf16.msrb.mxu3 %v2098_v49  ;;  %v2117_v49 = vld [vmem:[#allocation2 + $0x288] sm:$0xff] }
  0x33   :  { %1259 = vmatpush.bf16.msrb.mxu1 %v2082_v51  ;;  %v2109_v51 = vld [vmem:[#allocation2 + $0x248] sm:$0xff] }
  0x34   :  { %1246 = vmatpush.bf16.msrb.mxu0 %v2073_v52  ;;  %v2100_v52 = vld [vmem:[#allocation2 + $0x200] sm:$0xff] }
  0x35   :  { %1274 = vmatpush.bf16.msrb.mxu2 %v2089_v53  ;;  %v2116_v53 = vld [vmem:[#allocation2 + $0x280] sm:$0xff] }
  0x36   :  { %1288 = vmatpush.bf16.msrb.mxu3 %v2097_v54  ;;  %v2124_v54 = vld [vmem:[#allocation2 + $0x2c0] sm:$0xff] }
  0x37   :  { %1260 = vmatpush.bf16.msrb.mxu1 %v2081_v55  ;;  %v2139_v55 = vld [vmem:[#allocation2 + $0x338] sm:$0xff] }
  0x38   :  { %1247 = vmatpush.bf16.msrb.mxu0 %v2072_v56  ;;  %v2155_v56 = vld [vmem:[#allocation2 + $0x3b8] sm:$0xff] }
  0x39   :  { %1275 = vmatpush.bf16.msrb.mxu2 %v2088_v57  ;;  %v1468_v57 = vld [vmem:[%s2360_s0 + $0x20] sm:$0xf] }
  0x3a   :  { %1289 = vmatpush.bf16.msrb.mxu3 %v2096_v58  ;;  %v2031_v58 = vld [vmem:[%s2360_s0 + $0x60] sm:$0xf0] }
  0x3b   :  { %1261 = vmatpush.bf16.msrb.mxu1 %v2080_v59  ;;  %v1476_v59 = vld [vmem:[%s2360_s0 + $0x28] sm:$0xf] }
  0x3c   :  { %1248 = vmatpush.bf16.msrb.mxu0 %v2071_v60  ;;  %v2032_v60 = vld [vmem:[%s2360_s0 + $0x68] sm:$0xf0] }
  0x3d   :  { %1276 = vmatpush.bf16.msrb.mxu2 %v2087_v61  ;;  %v2163_v61 = vld [vmem:[#allocation2 + $0x3f8] sm:$0xff] }
  0x3e   :  { %1290 = vmatpush.bf16.msrb.mxu3 %v2095_v62  ;;  %v2024_v62 = vld [vmem:[%s2360_s0 + $0x2c] sm:$0xf] }
  0x3f   :  { %1262 = vmatpush.bf16.msrb.mxu1 %v2079_v63  ;;  %v1478_v63 = vld [vmem:[%s2360_s0 + $0x6c] sm:$0xf0] }
  0x40   :  { %1249 = vmatpush.bf16.msrb.mxu0 %v2070_v0  ;;  %v2108_v0 = vld [vmem:[#allocation2 + $0x240] sm:$0xff] }
  0x41   :  { %1277 = vmatpush.bf16.msrb.mxu2 %v2086_v1  ;;  %v2023_v1 = vld [vmem:[%s2360_s0 + $0x24] sm:$0xf] }
  0x42   :  { %1291 = vmatpush.bf16.msrb.mxu3 %v2094_v2  ;;  %v1470_v2 = vld [vmem:[%s2360_s0 + $0x64] sm:$0xf0] }
  0x43   :  { %1263 = vmatpush.bf16.msrb.mxu1 %v2078_v3  ;;  %v1469_v3 = vor.u32 %v2031_v58, %v1468_v57  ;;  %v2169_v58 = vld [vmem:[#allocation4] ss:$0 sm:$0xff] }
  0x44   :  { %1250 = vmatpush.bf16.msrb.mxu0 %v2069_v4  ;;  %v1477_v4 = vor.u32 %v2032_v60, %v1476_v59 }
  0x45   :  { %1278 = vmatpush.bf16.msrb.mxu2 %v2085_v5  ;;  %v2147_v5 = vld [vmem:[#allocation2 + $0x378] sm:$0xff] }
  0x46   :  { %1292 = vmatpush.bf16.msrb.mxu3 %v2093_v6  ;;  %v1481_v6 = vor.u32 %v2024_v62, %v1478_v63 }
  0x47   :  { %1264 = vmatpush.bf16.msrb.mxu1 %v2077_v7  ;;  %v1473_v7 = vor.u32 %v2023_v1, %v1470_v2 }
  0x48   :  { %1251 = vmatpush.bf16.msrb.mxu0 %v2068_v8  ;;  %v2138_v8 = vld [vmem:[#allocation2 + $0x330] sm:$0xff] }
  0x49   :  { %1279 = vmatpush.bf16.msrb.mxu2 %v2084_v9  ;;  %v2154_v9 = vld [vmem:[#allocation2 + $0x3b0] sm:$0xff] }
  0x4a   :  { %1293 = vmatpush.bf16.msrb.mxu3 %v2092_v10  ;;  %v2162_v10 = vld [vmem:[#allocation2 + $0x3f0] sm:$0xff] }
  0x4b   :  { %1265 = vmatpush.bf16.msrb.mxu1 %v2076_v20  ;;  %1252 = vmatmul.bf16.vlgmr.msrb.gmra.mxu0 %v1453_v23  ;;  %v2135_v20 = vld [vmem:[#allocation2 + $0x318] sm:$0xff] }
  0x4c   :  { %1300 = vmatpush.bf16.msra.mxu0 %v2107_v11  ;;  %1280 = vmatmul.bf16.vlgmr.msrb.gmra.mxu2 %v1461_v24  ;;  %v2146_v11 = vld [vmem:[#allocation2 + $0x370] sm:$0xff]  ;;  %v2143_v23 = vld [vmem:[#allocation2 + $0x358] sm:$0xff] }
  0x4d   :  { %1328 = vmatpush.bf16.msra.mxu2 %v2123_v12  ;;  %1294 = vmatmul.bf16.vlgmr.msrb.gmra.mxu3 %v1465_v26  ;;  %v2137_v12 = vld [vmem:[#allocation2 + $0x328] sm:$0xff]  ;;  %v2134_v24 = vld [vmem:[#allocation2 + $0x310] sm:$0xff] }
  0x4e   :  { %1342 = vmatpush.bf16.msra.mxu3 %v2131_v17  ;;  %1266 = vmatmul.bf16.vlgmr.msrb.gmra.mxu1 %v1457_v27  ;;  %v2152_v17 = vld [vmem:[#allocation2 + $0x3a0] sm:$0xff]  ;;  %v2158_v26 = vld [vmem:[#allocation2 + $0x3d0] sm:$0xff] }
  0x4f   :  { %1314 = vmatpush.bf16.msra.mxu1 %v2115_v25  ;;  %v2150_v25 = vld [vmem:[#allocation2 + $0x390] sm:$0xff] }
  0x50   :  { %1301 = vmatpush.bf16.msra.mxu0 %v2106_v28  ;;  %v2142_v27 = vld [vmem:[#allocation2 + $0x350] sm:$0xff]  ;;  %v2133_v28 = vld [vmem:[#allocation2 + $0x308] sm:$0xff] }
  0x51   :  { %1329 = vmatpush.bf16.msra.mxu2 %v2122_v29  ;;  %v2149_v29 = vld [vmem:[#allocation2 + $0x388] sm:$0xff] }
  0x52   :  { %1343 = vmatpush.bf16.msra.mxu3 %v2130_v30  ;;  %v2157_v30 = vld [vmem:[#allocation2 + $0x3c8] sm:$0xff] }
  0x53   :  { %1315 = vmatpush.bf16.msra.mxu1 %v2114_v31  ;;  %v2141_v31 = vld [vmem:[#allocation2 + $0x348] sm:$0xff] }
  0x54   :  { %1302 = vmatpush.bf16.msra.mxu0 %v2105_v32  ;;  %v2132_v32 = vld [vmem:[#allocation2 + $0x300] sm:$0xff] }
  0x55   :  { %1330 = vmatpush.bf16.msra.mxu2 %v2121_v33  ;;  %v2148_v33 = vld [vmem:[#allocation2 + $0x380] sm:$0xff] }
  0x56   :  { %1344 = vmatpush.bf16.msra.mxu3 %v2129_v34  ;;  %v2156_v34 = vld [vmem:[#allocation2 + $0x3c0] sm:$0xff] }
  0x57   :  { %1316 = vmatpush.bf16.msra.mxu1 %v2113_v35  ;;  %v1484_v35 = vld [vmem:[%s2360_s0 + $0x30] sm:$0xf] }
  0x58   :  { %1303 = vmatpush.bf16.msra.mxu0 %v2104_v36  ;;  %v2033_v36 = vld [vmem:[%s2360_s0 + $0x70] sm:$0xf0] }
  0x59   :  { %1331 = vmatpush.bf16.msra.mxu2 %v2120_v37  ;;  %v1492_v37 = vld [vmem:[%s2360_s0 + $0x38] sm:$0xf] }
  0x5a   :  { %1345 = vmatpush.bf16.msra.mxu3 %v2128_v38  ;;  %v2034_v38 = vld [vmem:[%s2360_s0 + $0x78] sm:$0xf0] }
  0x5b   :  { %1317 = vmatpush.bf16.msra.mxu1 %v2112_v39  ;;  %v2026_v39 = vld [vmem:[%s2360_s0 + $0x3c] sm:$0xf] }
  0x5c   :  { %1304 = vmatpush.bf16.msra.mxu0 %v2103_v40  ;;  %v1494_v40 = vld [vmem:[%s2360_s0 + $0x7c] sm:$0xf0] }
  0x5d   :  { %1332 = vmatpush.bf16.msra.mxu2 %v2119_v41  ;;  %v2164_v41 = vld [vmem:[#allocation2 + $0x400] sm:$0xff] }
  0x5e   :  { %1346 = vmatpush.bf16.msra.mxu3 %v2127_v42  ;;  %v2140_v42 = vld [vmem:[#allocation2 + $0x340] sm:$0xff] }
  0x5f   :  { %1318 = vmatpush.bf16.msra.mxu1 %v2111_v43  ;;  %v1485_v43 = vor.u32 %v2033_v36, %v1484_v35 }
  0x60   :  { %1305 = vmatpush.bf16.msra.mxu0 %v2102_v44  ;;  %v2025_v44 = vld [vmem:[%s2360_s0 + $0x34] sm:$0xf] }
  0x61   :  { %1333 = vmatpush.bf16.msra.mxu2 %v2118_v45  ;;  %v1486_v45 = vld [vmem:[%s2360_s0 + $0x74] sm:$0xf0] }
  0x62   :  { %1347 = vmatpush.bf16.msra.mxu3 %v2126_v46  ;;  %v1493_v46 = vor.u32 %v2034_v38, %v1492_v37 }
  0x63   :  { %1319 = vmatpush.bf16.msra.mxu1 %v2110_v47  ;;  %v1497_v47 = vor.u32 %v2026_v39, %v1494_v40 }
  0x64   :  { %1306 = vmatpush.bf16.msra.mxu0 %v2101_v48  ;;  %v1489_v48 = vor.u32 %v2025_v44, %v1486_v45 }
  0x65   :  { %1334 = vmatpush.bf16.msra.mxu2 %v2117_v49  ;;  %v1500_v49 = vld [vmem:[%s2360_s0 + $0x40] sm:$0xf] }
  0x66   :  { %1348 = vmatpush.bf16.msra.mxu3 %v2125_v50  ;;  %v2035_v50 = vld [vmem:[%s2360_s0 + $0x80] sm:$0xf0] }
  0x67   :  { %1320 = vmatpush.bf16.msra.mxu1 %v2109_v51  ;;  %v1501_v51 = vor.u32 %v2035_v50, %v1500_v49 }
  0x68   :  { %1307 = vmatpush.bf16.msra.mxu0 %v2100_v52 }
  0x69   :  { %1335 = vmatpush.bf16.msra.mxu2 %v2116_v53 }
  0x6a   :  { %1349 = vmatpush.bf16.msra.mxu3 %v2124_v54 }
  0x6b   :  { %1321 = vmatpush.bf16.msra.mxu1 %v2108_v0  ;;  %1308 = vmatmul.bf16.vlgmr.msra.gmra.mxu0 %v1469_v3 }
  0x6c   :  { %1356 = vmatpush.bf16.msrb.mxu0 %v2139_v55  ;;  %1336 = vmatmul.bf16.vlgmr.msra.gmra.mxu2 %v1477_v4 }
  0x6d   :  { %1384 = vmatpush.bf16.msrb.mxu2 %v2155_v56  ;;  %1350 = vmatmul.bf16.vlgmr.msra.gmra.mxu3 %v1481_v6 }
  0x6e   :  { %1398 = vmatpush.bf16.msrb.mxu3 %v2163_v61  ;;  %1322 = vmatmul.bf16.vlgmr.msra.gmra.mxu1 %v1473_v7 }
  0x6f   :  { %1370 = vmatpush.bf16.msrb.mxu1 %v2147_v5 }
  0x70   :  { %1357 = vmatpush.bf16.msrb.mxu0 %v2138_v8 }
  0x71   :  { %1385 = vmatpush.bf16.msrb.mxu2 %v2154_v9 }
  0x72   :  { %1399 = vmatpush.bf16.msrb.mxu3 %v2162_v10 }
  0x73   :  { %1371 = vmatpush.bf16.msrb.mxu1 %v2146_v11 }
  0x74   :  { %1358 = vmatpush.bf16.msrb.mxu0 %v2137_v12 }
  0x75   :  { %1386 = vmatpush.bf16.msrb.mxu2 %v2153_v13 }
  0x76   :  { %1400 = vmatpush.bf16.msrb.mxu3 %v2161_v14 }
  0x77   :  { %1372 = vmatpush.bf16.msrb.mxu1 %v2145_v15 }
  0x78   :  { %1359 = vmatpush.bf16.msrb.mxu0 %v2136_v16 }
  0x79   :  { %1387 = vmatpush.bf16.msrb.mxu2 %v2152_v17 }
  0x7a   :  { %1401 = vmatpush.bf16.msrb.mxu3 %v2160_v18 }
  0x7b   :  { %1373 = vmatpush.bf16.msrb.mxu1 %v2144_v19 }
  0x7c   :  { %1360 = vmatpush.bf16.msrb.mxu0 %v2135_v20 }
  0x7d   :  { %1388 = vmatpush.bf16.msrb.mxu2 %v2151_v21 }
  0x7e   :  { %1402 = vmatpush.bf16.msrb.mxu3 %v2159_v22 }
  0x7f   :  { %1374 = vmatpush.bf16.msrb.mxu1 %v2143_v23 }
  0x80   :  { %1361 = vmatpush.bf16.msrb.mxu0 %v2134_v24 }
  0x81   :  { %1389 = vmatpush.bf16.msrb.mxu2 %v2150_v25 }
  0x82   :  { %1403 = vmatpush.bf16.msrb.mxu3 %v2158_v26 }
  0x83   :  { %1375 = vmatpush.bf16.msrb.mxu1 %v2142_v27 }
  0x84   :  { %1362 = vmatpush.bf16.msrb.mxu0 %v2133_v28 }
  0x85   :  { %1390 = vmatpush.bf16.msrb.mxu2 %v2149_v29 }
  0x86   :  { %1404 = vmatpush.bf16.msrb.mxu3 %v2157_v30 }
  0x87   :  { %1376 = vmatpush.bf16.msrb.mxu1 %v2141_v31 }
  0x88   :  { %1363 = vmatpush.bf16.msrb.mxu0 %v2132_v32 }
  0x89   :  { %1391 = vmatpush.bf16.msrb.mxu2 %v2148_v33 }
  0x8a   :  { %1405 = vmatpush.bf16.msrb.mxu3 %v2156_v34 }
  0x8b   :  { %1377 = vmatpush.bf16.msrb.mxu1 %v2140_v42  ;;  %1364 = vmatmul.bf16.vlgmr.msrb.gmra.mxu0 %v1485_v43 }
  0x8c   :  { %1419 = vmatpush.bf16.msra.mxu0 %v2164_v41  ;;  %1392 = vmatmul.bf16.vlgmr.msrb.gmra.mxu2 %v1493_v46 }
  0x8d   :  { %1406 = vmatmul.bf16.vlgmr.msrb.gmra.mxu3 %v1497_v47 }
  0x8e   :  { %1378 = vmatmul.bf16.vlgmr.msrb.gmra.mxu1 %v1489_v48 }
  0x9b   :  { %2018 = vmatmul.msk.bf16.vlgmr.msra.gmra.mxu0 %vm1184_vm0, %v1501_v51 }
  0xa8   :  { %v1197_v52 = vpop.f32.mrf.mxu0 }
  0xa9   :  { %v1198_v60 = vadd.f32 %v2169_v58, %v1197_v52 }
  0xab   :  { %v1211_v53 = vpop.f32.mrf.mxu1 }
  0xac   :  { %v1212_v63 = vadd.f32 %v1211_v53, %v1198_v60 }
  0xaf   :  { %v1225_v54 = vpop.f32.mrf.mxu2 }
  0xb0   :  { %v1199_v55 = vpop.f32.mrf.mxu0  ;;  %v1239_v56 = vpop.f32.mrf.mxu3  ;;  %v1226_v1 = vadd.f32 %v1225_v54, %v1212_v63 }
  0xb1   :  { %v1200_v4 = vadd.f32 %v2169_v58, %v1199_v55 }
  0xb2   :  { %v1240_v5 = vadd.f32 %v1239_v56, %v1226_v1 }
  0xb3   :  { %v1213_v57 = vpop.f32.mrf.mxu1 }
  0xb4   :  { %v1214_v8 = vadd.f32 %v1213_v57, %v1200_v4 }
  0xb7   :  { %v1227_v59 = vpop.f32.mrf.mxu2 }
  0xb8   :  { %v1241_v62 = vpop.f32.mrf.mxu3  ;;  %v1228_v12 = vadd.f32 %v1227_v59, %v1214_v8 }
  0xba   :  { %v1242_v16 = vadd.f32 %v1241_v62, %v1228_v12 }
  0xc8   :  { %v1253_v61 = vpop.f32.mrf.mxu0 }
  0xc9   :  { %v1254_v9 = vadd.f32 %v1253_v61, %v1240_v5 }
  0xcb   :  { %v1267_v0 = vpop.f32.mrf.mxu1 }
  0xcc   :  { %v1268_v13 = vadd.f32 %v1267_v0, %v1254_v9 }
  0xcf   :  { %v1281_v2 = vpop.f32.mrf.mxu2 }
  0xd0   :  { %v1255_v3 = vpop.f32.mrf.mxu0  ;;  %v1295_v6 = vpop.f32.mrf.mxu3  ;;  %v1282_v17 = vadd.f32 %v1281_v2, %v1268_v13 }
  0xd1   :  { %v1256_v18 = vadd.f32 %v1255_v3, %v1242_v16 }
  0xd2   :  { %v1296_v20 = vadd.f32 %v1295_v6, %v1282_v17 }
  0xd3   :  { %v1269_v7 = vpop.f32.mrf.mxu1 }
  0xd4   :  { %v1270_v22 = vadd.f32 %v1269_v7, %v1256_v18 }
  0xd7   :  { %v1283_v10 = vpop.f32.mrf.mxu2 }
  0xd8   :  { %v1297_v14 = vpop.f32.mrf.mxu3  ;;  %v1284_v25 = vadd.f32 %v1283_v10, %v1270_v22 }
  0xda   :  { %v1298_v28 = vadd.f32 %v1297_v14, %v1284_v25 }
  0xe8   :  { %v1309_v11 = vpop.f32.mrf.mxu0 }
  0xe9   :  { %v1310_v23 = vadd.f32 %v1309_v11, %v1296_v20 }
  0xeb   :  { %v1323_v15 = vpop.f32.mrf.mxu1 }
  0xec   :  { %v1324_v27 = vadd.f32 %v1323_v15, %v1310_v23 }
  0xef   :  { %v1337_v19 = vpop.f32.mrf.mxu2 }
  0xf0   :  { %v1311_v21 = vpop.f32.mrf.mxu0  ;;  %v1351_v24 = vpop.f32.mrf.mxu3  ;;  %v1338_v29 = vadd.f32 %v1337_v19, %v1324_v27 }
  0xf1   :  { %v1312_v32 = vadd.f32 %v1311_v21, %v1298_v28 }
  0xf2   :  { %v1352_v33 = vadd.f32 %v1351_v24, %v1338_v29 }
  0xf3   :  { %v1325_v26 = vpop.f32.mrf.mxu1 }
  0xf4   :  { %v1326_v36 = vadd.f32 %v1325_v26, %v1312_v32 }
  0xf7   :  { %v1339_v30 = vpop.f32.mrf.mxu2 }
  0xf8   :  { %v1353_v34 = vpop.f32.mrf.mxu3  ;;  %v1340_v38 = vadd.f32 %v1339_v30, %v1326_v36 }
  0xfa   :  { %v1354_v42 = vadd.f32 %v1353_v34, %v1340_v38 }
 0x108   :  { %v1365_v31 = vpop.f32.mrf.mxu0 }
 0x109   :  { %v1366_v37 = vadd.f32 %v1365_v31, %v1352_v33 }
 0x10b   :  { %v1379_v35 = vpop.f32.mrf.mxu1 }
 0x10c   :  { %v1380_v41 = vadd.f32 %v1379_v35, %v1366_v37 }
 0x10f   :  { %v1393_v39 = vpop.f32.mrf.mxu2 }
 0x110   :  { %v1367_v40 = vpop.f32.mrf.mxu0  ;;  %v1394_v43 = vadd.f32 %v1393_v39, %v1380_v41  ;;  %v1407_v44 = vpop.f32.mrf.mxu3 }
 0x111   :  { %v1368_v45 = vadd.f32 %v1367_v40, %v1354_v42 }
 0x112   :  { %v1408_v47 = vadd.f32 %v1407_v44, %v1394_v43 }
 0x113   :  { %v1381_v46 = vpop.f32.mrf.mxu1 }
 0x114   :  { %v1382_v50 = vadd.f32 %v1381_v46, %v1368_v45 }
 0x117   :  { %v1395_v48 = vpop.f32.mrf.mxu2 }
 0x118   :  { %v1421_v49 = vpop.f32.mrf.mxu0  ;;  %v1396_v52 = vadd.f32 %v1395_v48, %v1382_v50  ;;  %v1409_v53 = vpop.f32.mrf.mxu3 }
 0x119   :  { %v1422_v51 = vadd.f32 %v1421_v49, %v1408_v47 }
 0x11a   :  { %v1410_v54 = vadd.f32 %v1409_v53, %v1396_v52 }
 0x11b   :  { %1426 = vst [vmem:[%s2363_s3] sm:$0xff] %v1422_v51 }
 0x120   :  { %v1423_v55 = vpop.f32.mrf.mxu0 }
 0x121   :  { %v1424_v56 = vadd.f32 %v1423_v55, %v1410_v54 }
 0x123   :  { %1427 = vst [vmem:[%s2363_s3 + $0x8] sm:$0xff] %v1424_v56 }
 0x124   :  { %1432 = vsyncpa [#allocation3], 1 }
 0x125   :  { %1433 = vsyncpa [#allocation5], 1 }

// kernel: csn_forward.10
= control target key start
LH: loop header
LB: loop body
LE: loop exit
PB: predicated region body
PF: predicated region fallthrough
CT: control target
= control target key end

     0   :  { %8 = vsyncpa [#allocation3], 0  ;;  %s431_s15 = smov [#allocation2]   ;;  %s536_s0 = inlined_call_operand.vmem [shape: bf16[8,384], index: 0, kind: input, shape index: {}]   ;;  %s537_s1 = inlined_call_operand.vmem [shape: bf16[384,27], index: 1, kind: input, shape index: {}]   ;;  %s538_s2 = inlined_call_operand.hbm [shape: f32[1,27], index: 2, kind: input, shape index: {}]   ;;  %s539_s3 = inlined_call_operand.vmem [shape: f32[8,27], index: 3, kind: output, shape index: {}]  }
   0x1   :  { %s18_s14 = sshll.u32 %s538_s2, 4  ;;  %s20_s16 = sshll.u32 %s431_s15, 4  ;;  %s19_s14 = int_to_ptr.hbm [resolvable:$true] %s18_s14  ;;  %s21_s16 = int_to_ptr.vmem [resolvable:$true] %s20_s16 }
   0x2   :  { %23 = dma.hbm_to_vmem [thread:$0]  %s19_s14, 16, %s21_s16, [#allocation3]  }
   0x3   :  { %429 = dma.done.wait [#allocation3], 16  }
   0x4   :  { %430 = vsyncadd [#allocation3], 4294967280  ;;  %v386_v0 = vld [vmem:[%s537_s1 + $0x38] sm:$0xff]  ;;  %v385_v3 = vld [vmem:[%s537_s1 + $0x30] sm:$0xff]  ;;  %vm276_vm0 = vcmask 220160  }
   0x5   :  { %v394_v1 = vld [vmem:[%s537_s1 + $0x78] sm:$0xff]  ;;  %237 = vmatpush.bf16.msra.mxu0 %v386_v0  ;;  %v393_v4 = vld [vmem:[%s537_s1 + $0x70] sm:$0xff]  ;;  %v384_v6 = vld [vmem:[%s537_s1 + $0x28] sm:$0xff] }
   0x6   :  { %v402_v2 = vld [vmem:[%s537_s1 + $0xb8] sm:$0xff]  ;;  %250 = vmatpush.bf16.msra.mxu1 %v394_v1  ;;  %v401_v5 = vld [vmem:[%s537_s1 + $0xb0] sm:$0xff]  ;;  %v392_v7 = vld [vmem:[%s537_s1 + $0x68] sm:$0xff] }
   0x7   :  { %263 = vmatpush.bf16.msra.mxu2 %v402_v2  ;;  %v400_v8 = vld [vmem:[%s537_s1 + $0xa8] sm:$0xff]  ;;  %v383_v9 = vld [vmem:[%s537_s1 + $0x20] sm:$0xff]  ;;  %v382_v12 = vld [vmem:[%s537_s1 + $0x18] sm:$0xff] }
   0x8   :  { %v391_v10 = vld [vmem:[%s537_s1 + $0x60] sm:$0xff]  ;;  %v390_v13 = vld [vmem:[%s537_s1 + $0x58] sm:$0xff]  ;;  %v381_v15 = vld [vmem:[%s537_s1 + $0x10] sm:$0xff] }
   0x9   :  { %238 = vmatpush.bf16.msra.mxu0 %v385_v3  ;;  %v399_v11 = vld [vmem:[%s537_s1 + $0xa0] sm:$0xff]  ;;  %v398_v14 = vld [vmem:[%s537_s1 + $0x98] sm:$0xff]  ;;  %v389_v16 = vld [vmem:[%s537_s1 + $0x50] sm:$0xff] }
   0xa   :  { %251 = vmatpush.bf16.msra.mxu1 %v393_v4  ;;  %v397_v17 = vld [vmem:[%s537_s1 + $0x90] sm:$0xff]  ;;  %v380_v18 = vld [vmem:[%s537_s1 + $0x8] sm:$0xff]  ;;  %v28_v20 = vld [vmem:[%s536_s0] sm:$0xff] }
   0xb   :  { %264 = vmatpush.bf16.msra.mxu2 %v401_v5  ;;  %v388_v19 = vld [vmem:[%s537_s1 + $0x48] sm:$0xff]  ;;  %v84_v23 = vunpack.c.l.b16 %v28_v20  ;;  %v85_v24 = vunpack.c.h.b16 %v28_v20  ;;  %v379_v25 = vld [vmem:[%s537_s1] sm:$0xff] }
   0xc   :  { %v396_v21 = vld [vmem:[%s537_s1 + $0x88] sm:$0xff]  ;;  %v387_v26 = vld [vmem:[%s537_s1 + $0x40] sm:$0xff] }
   0xd   :  { %239 = vmatpush.bf16.msra.mxu0 %v384_v6  ;;  %v29_v22 = vld [vmem:[%s536_s0 + $0x8] sm:$0xf]  ;;  %v395_v28 = vld [vmem:[%s537_s1 + $0x80] sm:$0xff]  ;;  %v87_v29 = vpack.c.b16 %v84_v23, %v84_v23  ;;  %v88_v30 = vpack.c.b16 %v85_v24, %v85_v24 }
   0xe   :  { %252 = vmatpush.bf16.msra.mxu1 %v392_v7  ;;  %v86_v27 = vunpack.c.l.b16 %v29_v22  ;;  %v404_v32 = vld [vmem:[#allocation2] ss:$0 sm:$0xff] }
   0xf   :  { %265 = vmatpush.bf16.msra.mxu2 %v400_v8 }
  0x10   :  { %v89_v31 = vpack.c.b16 %v86_v27, %v86_v27 }
  0x11   :  { %240 = vmatpush.bf16.msra.mxu0 %v383_v9 }
  0x12   :  { %253 = vmatpush.bf16.msra.mxu1 %v391_v10 }
  0x13   :  { %266 = vmatpush.bf16.msra.mxu2 %v399_v11 }
  0x15   :  { %241 = vmatpush.bf16.msra.mxu0 %v382_v12 }
  0x16   :  { %254 = vmatpush.bf16.msra.mxu1 %v390_v13 }
  0x17   :  { %267 = vmatpush.bf16.msra.mxu2 %v398_v14 }
  0x19   :  { %242 = vmatpush.bf16.msra.mxu0 %v381_v15 }
  0x1a   :  { %255 = vmatpush.bf16.msra.mxu1 %v389_v16 }
  0x1b   :  { %268 = vmatpush.bf16.msra.mxu2 %v397_v17 }
  0x1d   :  { %243 = vmatpush.bf16.msra.mxu0 %v380_v18 }
  0x1e   :  { %256 = vmatpush.bf16.msra.mxu1 %v388_v19 }
  0x1f   :  { %269 = vmatpush.bf16.msra.mxu2 %v396_v21 }
  0x21   :  { %244 = vmatpush.bf16.msra.mxu0 %v379_v25 }
  0x22   :  { %257 = vmatpush.bf16.msra.mxu1 %v387_v26 }
  0x23   :  { %270 = vmatpush.bf16.msra.mxu2 %v395_v28 }
  0x24   :  { %245 = vmatmul.bf16.vlgmr.msra.gmra.mxu0 %v87_v29 }
  0x25   :  { %258 = vmatmul.bf16.vlgmr.msra.gmra.mxu1 %v88_v30 }
  0x26   :  { %271 = vmatmul.bf16.vlgmr.msra.gmra.mxu2 %v89_v31 }
  0xa1   :  { %v246_v33 = vpop.f32.mrf.mxu0 }
  0xa2   :  { %v259_v34 = vpop.f32.mrf.mxu1  ;;  %v247_v35 = vadd.f32 %v404_v32, %v246_v33 }
  0xa4   :  { %v260_v36 = vadd.f32 %v259_v34, %v247_v35 }
  0xa9   :  { %v272_v37 = vpop.f32.mrf.mxu2  ;;  %v248_v39 = vpop.f32.mrf.mxu0 }
  0xaa   :  { %v273_v38 = vadd.f32 %v272_v37, %v260_v36  ;;  %v261_v40 = vpop.f32.mrf.mxu1 }
  0xac   :  { %277 = vst.msk [vmem:[%s539_s3] sm:$0xff] %vm276_vm0, %v273_v38 }
  0xb1   :  { %v274_v41 = vpop.f32.mrf.mxu2 }
  0xb2   :  { %282 = vsyncpa [#allocation3], 1 }

// kernel: csn_forward.11
= control target key start
LH: loop header
LB: loop body
LE: loop exit
PB: predicated region body
PF: predicated region fallthrough
CT: control target
= control target key end

     0   :  { %8 = vsyncpa [#allocation3], 0  ;;  %s312_s15 = smov [#allocation2]   ;;  %s391_s0 = inlined_call_operand.vmem [shape: bf16[8,243], index: 0, kind: input, shape index: {}]   ;;  %s392_s1 = inlined_call_operand.vmem [shape: bf16[243,96], index: 1, kind: input, shape index: {}]   ;;  %s393_s2 = inlined_call_operand.hbm [shape: f32[1,96], index: 2, kind: input, shape index: {}]   ;;  %s394_s3 = inlined_call_operand.vmem [shape: f32[8,96], index: 3, kind: output, shape index: {}]  }
   0x1   :  { %s18_s14 = sshll.u32 %s393_s2, 4  ;;  %s20_s16 = sshll.u32 %s312_s15, 4  ;;  %s19_s14 = int_to_ptr.hbm [resolvable:$true] %s18_s14  ;;  %s21_s16 = int_to_ptr.vmem [resolvable:$true] %s20_s16 }
   0x2   :  { %23 = dma.hbm_to_vmem [thread:$0]  %s19_s14, 16, %s21_s16, [#allocation3]  }
   0x3   :  { %310 = dma.done.wait [#allocation3], 16  }
   0x4   :  { %311 = vsyncadd [#allocation3], 4294967280  ;;  %vm167_vm0 = vcmask 1040384   ;;  %vm168_vm1 = vcmask 1041408   ;;  %v313_v0 = vmov 65535   ;;  %v275_v2 = vld [vmem:[%s392_s1 + $0x38] sm:$0xff] }
   0x5   :  { %v169_v1 = vsel %vm167_vm0, 4294967295, %v313_v0  ;;  %v59_v3 = vld [vmem:[%s392_s1 + $0x78] sm:$0x3]  ;;  %174 = vmatpush.bf16.msra.mxu0 %v275_v2  ;;  %v274_v5 = vld [vmem:[%s392_s1 + $0x30] sm:$0xff]  ;;  %v273_v9 = vld [vmem:[%s392_s1 + $0x28] sm:$0xff]  ;;  %vm163_vm2 = vcmask 941056  }
   0x6   :  { %v131_v4 = vunpack.c.l.b16 %v59_v3  ;;  %v170_v6 = vsel %vm168_vm1, %v169_v1, 0  ;;  %v282_v10 = vld [vmem:[%s392_s1 + $0x70] sm:$0xff]  ;;  %v272_v11 = vld [vmem:[%s392_s1 + $0x20] sm:$0xff]  ;;  %v281_v12 = vld [vmem:[%s392_s1 + $0x68] sm:$0xff]  ;;  %vm200_vm3 = vcmask 785408  }
   0x7   :  { %v271_v13 = vld [vmem:[%s392_s1 + $0x18] sm:$0xff]  ;;  %v280_v14 = vld [vmem:[%s392_s1 + $0x60] sm:$0xff]  ;;  %v270_v15 = vld [vmem:[%s392_s1 + $0x10] sm:$0xff] }
   0x8   :  { %v147_v7 = vpack.c.b16 %v131_v4, %v131_v4  ;;  %v279_v16 = vld [vmem:[%s392_s1 + $0x58] sm:$0xff]  ;;  %v269_v17 = vld [vmem:[%s392_s1 + $0x8] sm:$0xff]  ;;  %v28_v18 = vld [vmem:[%s391_s0] sm:$0xff] }
   0x9   :  { %175 = vmatpush.bf16.msra.mxu0 %v274_v5  ;;  %v278_v19 = vld [vmem:[%s392_s1 + $0x50] sm:$0xff]  ;;  %v65_v20 = vunpack.c.l.b16 %v28_v18  ;;  %v268_v21 = vld [vmem:[%s392_s1] sm:$0xff]  ;;  %v277_v22 = vld [vmem:[%s392_s1 + $0x48] sm:$0xff]  ;;  %v66_v24 = vunpack.c.h.b16 %v28_v18 }
   0xa   :  { %v172_v8 = vand.u32 %v170_v6, %v147_v7  ;;  %v276_v25 = vld [vmem:[%s392_s1 + $0x40] sm:$0xff] }
   0xb   :  { %v67_v23 = vpack.c.b16 %v65_v20, %v65_v20  ;;  %v68_v26 = vpack.c.b16 %v66_v24, %v66_v24  ;;  %v285_v27 = vld [vmem:[#allocation2] ss:$0 sm:$0xff] }
   0xc   :  { %187 = vmatpush.bf16.msra.mxu1 %v172_v8 }
   0xd   :  { %176 = vmatpush.bf16.msra.mxu0 %v273_v9 }
  0x10   :  { %188 = vmatpush.bf16.msra.mxu1 %v282_v10 }
  0x11   :  { %177 = vmatpush.bf16.msra.mxu0 %v272_v11 }
  0x14   :  { %189 = vmatpush.bf16.msra.mxu1 %v281_v12 }
  0x15   :  { %178 = vmatpush.bf16.msra.mxu0 %v271_v13 }
  0x18   :  { %190 = vmatpush.bf16.msra.mxu1 %v280_v14 }
  0x19   :  { %179 = vmatpush.bf16.msra.mxu0 %v270_v15 }
  0x1c   :  { %191 = vmatpush.bf16.msra.mxu1 %v279_v16 }
  0x1d   :  { %180 = vmatpush.bf16.msra.mxu0 %v269_v17 }
  0x20   :  { %192 = vmatpush.bf16.msra.mxu1 %v278_v19 }
  0x21   :  { %181 = vmatpush.bf16.msra.mxu0 %v268_v21 }
  0x24   :  { %193 = vmatpush.bf16.msra.mxu1 %v277_v22  ;;  %182 = vmatmul.bf16.vlgmr.msra.gmra.mxu0 %v67_v23 }
  0x28   :  { %194 = vmatpush.bf16.msra.mxu1 %v276_v25 }
  0x2b   :  { %267 = vmatmul.msk.bf16.vlgmr.msra.gmra.mxu1 %vm163_vm2, %v68_v26 }
  0xa1   :  { %v183_v28 = vpop.f32.mrf.mxu0 }
  0xa2   :  { %v184_v29 = vadd.f32 %v285_v27, %v183_v28 }
  0xa8   :  { %v196_v30 = vpop.f32.mrf.mxu1 }
  0xa9   :  { %v197_v31 = vadd.f32 %v196_v30, %v184_v29  ;;  %v185_v32 = vpop.f32.mrf.mxu0 }
  0xab   :  { %201 = vst.msk [vmem:[%s394_s3] sm:$0xff] %vm200_vm3, %v197_v31 }
  0xb0   :  { %v198_v33 = vpop.f32.mrf.mxu1 }
  0xb1   :  { %206 = vsyncpa [#allocation3], 1 }

// kernel: csn_forward.12
= control target key start
LH: loop header
LB: loop body
LE: loop exit
PB: predicated region body
PF: predicated region fallthrough
CT: control target
= control target key end

     0   :  { %8 = vsyncpa [#allocation5], 0  ;;  %s3856_s0 = inlined_call_operand.vmem [shape: f32[8,160], index: 0, kind: input, shape index: {}]   ;;  %s3857_s1 = inlined_call_operand.hbm [shape: bf16[8,3,5,3,160,128], index: 1, kind: input, shape index: {}]   ;;  %s3858_s2 = inlined_call_operand.vmem [shape: f32[8,3,5,128], index: 2, kind: input, shape index: {}]   ;;  %s3859_s3 = inlined_call_operand.vmem [shape: f32[8,160], index: 3, kind: output, shape index: {}]  }
   0x1   :  { %10 = vsyncpa [#allocation5 + $0x1], 0  ;;  %s3468_s12 = smov 0   ;;  %s3470_s13 = smov 0  }
   0x2   :  { %s3472_s14 = smov 0   ;;  %s3474_s15 = smov 0  }
   0x3   :  { %s3476_s16 = smov 0   ;;  %s3478_s17 = smov 0  }
   0x4   :  { %s3480_s18 = smov 0   ;;  %s3482_s19 = smov 0  }
   0x5 LB: > { %s2200_s20 = sadd.s32 4294967295, %s3440_s19   ;;  %s25_s21 = sadd.s32 1, %s3432_s17  ;;  %s3440_s19 = sphi %s3482_s19, %s16_s19   ;;  %s3436_s18 = sphi %s3480_s18, %s3868_s18   ;;  %s3432_s17 = sphi %s3478_s17, %s3867_s17   ;;  %s3428_s16 = sphi %s3476_s16, %s3866_s16   ;;  %s3424_s15 = sphi %s3474_s15, %s3865_s15   ;;  %s3420_s14 = sphi %s3472_s14, %s3864_s14   ;;  %s3416_s13 = sphi %s3470_s13, %s3863_s13   ;;  %s3412_s12 = sphi %s3468_s12, %s3862_s12  }
   0x6   : > { %p26_p0 = scmp.ge.s32.totalorder %s25_s21, 3  ;;  %s28_s22 = sadd.s32 1, %s3436_s18 }
   0x7   : > { %s58_s23 = sadd.s32 1, %s3420_s14  ;;  %p65_p1 = scmp.ne.s32.totalorder %s3420_s14, %s3416_s13 }
   0x8   : > { %s3870_s21 = smov (%p26_p0, %s25_s21), 0  ;;  %s3872_s22 = smov (!%p26_p0, %s28_s22), %s3436_s18 }
   0x9   : > { %s54_s24 = ssub.s32 %s3432_s17, %s3870_s21  ;;  %p66_p2 = scmp.eq.s32.totalorder %s3440_s19, 0 }
   0xa   : > { %p30_p3 = scmp.ge.s32.totalorder %s3872_s22, 8  ;;  %p71_p4 = scmp.ne.s32.totalorder %s3416_s13, %s3412_s12 }
   0xb   : > { %p67_p5 = por %p66_p2, %p65_p1  ;;  %p72_p6 = scmp.eq.s32.totalorder %s2200_s20, 0 }
   0xc   : > { %s3874_s22 = smov (%p30_p3, %s3872_s22), 0  ;;  %p3268_p8 = scmp.lt.s32.totalorder %s3440_s19, 24 }
   0xd   : > { %p3521_p7 = por %p72_p6, %p71_p4  ;;  %s53_s26 = ssub.s32 %s3436_s18, %s3874_s22 }
   0xe   : > { %s55_s27 = sor.u32 %s54_s24, %s53_s26  ;;  %s147_s28 = sand.u32 1, %s3420_s14  }
   0xf   : > { %p56_p9 = scmp.eq.s32.totalorder %s55_s27, 0  ;;  %s3257_s29 = smul.u32 1200, %s147_s28 }
  0x10   : > { %p3529_p10 = pnand %p3268_p8, %p67_p5  ;;  %s3258_s5 = smul.u32 300, %s3432_s17 }
  0x11   : > { %s3534_s4 = scalar_select %p56_p9, %s3420_s14, %s58_s23  }
  0x12   : > { %s3259_s6 = smul.u32 900, %s3436_s18  ;;  %s151_s7 = scalar_lea.vmem [#allocation4], %s3257_s29 }
  0x13   : > { %s161_s8 = sshll.u32 %s151_s7, 4  ;;  %p2204_p11 = scmp.ge.s32.totalorder %s3440_s19, 1  ;;  %s162_s8 = int_to_ptr.vmem [resolvable:$true] %s161_s8 }
  0x14   : > { %s156_s9 = sadd.s32 %s3259_s6, %s3258_s5  ;;  %p180_p12 = scmp.lt.s32.totalorder %s3440_s19, 25 }
  0x15   : > { %s2203_s10 = sshll.u32 %s156_s9, 2  ;;  %s148_s26 = scalar_lea.sflag [#allocation5], %s147_s28 }
  0x16   : > { %s158_s20 = scalar_lea.hbm %s3857_s1, %s2203_s10  ;;  %s3442_s27 = smov 64  }
  0x17   : > { %s159_s24 = sshll.u32 %s158_s20, 4  ;;  %s3443_s23 = smov 4   ;;  %s160_s24 = int_to_ptr.hbm [resolvable:$true] %s159_s24 }
  0x18   : > { %3267 = dma.hbm_to_vmem [thread:$0]  (!%p3529_p10), %s160_s24, 19200, %s162_s8, %s148_s26, %s3442_s27, %s3442_s27, %s3443_s23  }
  0x19   : > { %p181_p13 = pnand %p2204_p11, %p180_p12 }
  0x1a   : > { %s186_s29 = sand.u32 (!%p181_p13), 1, %s3416_s13  }
  0x1b   : > { %184 = sbr.rel (%p181_p13) target bundleno = 1258 (0x4ea), region = 32  ;;  %s187_s6 = scalar_lea.sflag (!%p181_p13), [#allocation5], %s186_s29 }
  0x1c   : > { %s3260_s5 = smul.u32 (!%p181_p13), 1200, %s186_s29 }
  0x1e   : > { %s3546_s7 = scalar_lea.vmem (!%p181_p13), [#allocation4], %s3260_s5 }
  0x20   : > { %3407 = dma.done.wait (%p3521_p7), %s187_s6, 19200  }
  0x21   : > { %3409 = vsyncadd (%p3521_p7), %s187_s6, 4294948096  ;;  %p217_p0 = scmp.lt.s32.totalorder %s3428_s16, 7  ;;  %p219_p1 = scmp.lt.s32.totalorder %s3424_s15, 2 }
  0x22   : > { %p226_p2 = scmp.eq.s32.totalorder %s3428_s16, 0  ;;  %p227_p3 = scmp.eq.s32.totalorder %s3424_s15, 0 }
  0x23   : > { %s218_s28 = scalar_select %p217_p0, %s3428_s16, 7 }
  0x24   : > { %s220_s30 = scalar_select %p219_p1, %s3424_s15, 2 }
  0x25   : > { %s3261_s8 = smul.u32 3, %s218_s28  ;;  %p228_p4 = pnand %p227_p3, %p226_p2 }
  0x27   : > { %s222_s9 = sadd.s32 %s3261_s8, %s220_s30  ;;  %231 = sbr.rel (%p228_p4) target bundleno = 47 (0x2f), region = 40 }
  0x28   : > { %s2205_s10 = sshll.u32 %s222_s9, 3 }
  0x29   : > { %s3561_s25 = scalar_lea.vmem %s3858_s2, %s2205_s10 }
  0x2c   : > { %v232_v0 = vld [vmem:[%s3856_s0] sm:$0xff]  ;;  %v233_v1 = vld [vmem:[%s3856_s0 + $0x8] sm:$0xff]  ;;  %vm235_vm0 = vcmask 261120  }
  0x2d   : > { %234 = vst [vmem:[#allocation2] sm:$0xff] %v232_v0 }
  0x2e   : > { %236 = vst.msk [vmem:[#allocation2 + $0x8] sm:$0xff] %vm235_vm0, %v233_v1 }
  0x2f PF: > { %p2206_p5 = scmp.ne.s32.totalorder %s3424_s15, 0 }
  0x31   : > { %239 = sbr.rel (%p2206_p5) target bundleno = 56 (0x38), region = 44 }
  0x36   : > { %v240_v2 = vld [vmem:[#allocation2] sm:$0xff] }
  0x37   : > { %242 = vst [vmem:[#allocation3] sm:$0xff] %v240_v2 }
  0x38 PF: > { %v3124_v3 = vld [vmem:[%s3546_s7 + $0x88] sm:$0xff]  ;;  %v3126_v4 = vld [vmem:[%s3546_s7 + $0x98] sm:$0xff]  ;;  %v245_v6 = vlaneseq  ;;  %v3123_v7 = vld [vmem:[%s3546_s7 + $0x80] sm:$0xff]  ;;  %vm279_vm1 = vcmask 1040384   ;;  %vm389_vm3 = vcmask 261120   ;;  %v3444_v24 = vmov 0.0  }
  0x39   : > { %v3114_v5 = vld [vmem:[%s3546_s7 + $0x38] sm:$0xff]  ;;  %393 = vmatpush.bf16.msra.mxu0 %v3124_v3  ;;  %412 = vmatpush.bf16.msra.mxu1 %v3126_v4  ;;  %v3125_v8 = vld [vmem:[%s3546_s7 + $0x90] sm:$0xff]  ;;  %v3116_v9 = vld [vmem:[%s3546_s7 + $0x48] sm:$0xff]  ;;  %vm512_vm5 = vcmask 1046528   ;;  %s3445_s23 = smov 96   ;;  %vm640_vm7 = vcmask 917248  }
  0x3a   : > { %v246_v10 = vshrl.u32 %v245_v6, 7  ;;  %482 = vmatpush.bf16.msra.mxu2 %v3114_v5  ;;  %v3113_v11 = vld [vmem:[%s3546_s7 + $0x30] sm:$0xff]  ;;  %v3134_v12 = vld [vmem:[%s3546_s7 + $0xd8] sm:$0xff]  ;;  %501 = vmatpush.bf16.msra.mxu3 %v3116_v9  ;;  %v3115_v13 = vld [vmem:[%s3546_s7 + $0x40] sm:$0xff]  ;;  %s3446_s29 = smov 112   ;;  %vm1009_vm9 = vcmask 1048448  }
  0x3b   : > { %v272_v15 = vld [vmem:[#allocation2 + $0x8] sm:$0xff]  ;;  %v3133_v22 = vld [vmem:[%s3546_s7 + $0xd0] sm:$0xff]  ;;  %v3135_v26 = vld [vmem:[%s3546_s7 + $0xe0] sm:$0xff]  ;;  %vm1374_vm11 = vcmask 130048   ;;  %s3447_s5 = smov 16   ;;  %vm1743_vm13 = vcmask 261248  }
  0x3c   : > { %v251_v14 = vand.u32 1, %v246_v10  ;;  %v276_v16 = vrot.slane %v272_v15, 7  ;;  %v3579_v17 = vpack.c.bf16 %v272_v15, %v272_v15  ;;  %v3122_v18 = vld [vmem:[%s3546_s7 + $0x78] sm:$0xff]  ;;  %v3136_v20 = vld [vmem:[%s3546_s7 + $0xe8] sm:$0xff]  ;;  %v3121_v28 = vld [vmem:[%s3546_s7 + $0x70] sm:$0xff]  ;;  %v509_v36 = vrot.slane %v272_v15, 1 }
  0x3d   : > { %394 = vmatpush.bf16.msra.mxu0 %v3123_v7  ;;  %413 = vmatpush.bf16.msra.mxu1 %v3125_v8  ;;  %v3112_v21 = vld [vmem:[%s3546_s7 + $0x28] sm:$0xff]  ;;  %v3111_v29 = vld [vmem:[%s3546_s7 + $0x20] sm:$0xff]  ;;  %v3110_v34 = vld [vmem:[%s3546_s7 + $0x18] sm:$0xff]  ;;  %p2109_p6 = scmp.eq.s32.totalorder %s3424_s15, 2  ;;  %vm2107_vm14 = vcmask 785408   ;;  %p3104_p7 = scmp.ne.s32.totalorder %s3424_s15, 2 }
  0x3e   : > { %v259_v19 = vadd.s32 4294967295, %v251_v14  ;;  %483 = vmatpush.bf16.msra.mxu2 %v3113_v11  ;;  %v281_v23 = vsel %vm279_vm1, 0.0, %v276_v16  ;;  %502 = vmatpush.bf16.msra.mxu3 %v3115_v13  ;;  %v3132_v30 = vld [vmem:[%s3546_s7 + $0xc8] sm:$0xff]  ;;  %v265_v31 = vadd.s32 1, %v251_v14  ;;  %v3131_v35 = vld [vmem:[%s3546_s7 + $0xc0] sm:$0xff]  ;;  %v3109_v40 = vld [vmem:[%s3546_s7 + $0x10] sm:$0xff] }
  0x3f   : > { %v3120_v33 = vld [vmem:[%s3546_s7 + $0x68] sm:$0xff]  ;;  %v271_v37 = vld [vmem:[#allocation2] sm:$0xff]  ;;  %v3130_v41 = vld [vmem:[%s3546_s7 + $0xb8] sm:$0xff]  ;;  %v514_v42 = vsel %vm512_vm5, %v509_v36, 0.0 }
  0x40   : > { %vm260_vm2 = vcmp.ge.s32.totalorder %v259_v19, 0  ;;  %2269 = vmatmul.msk.bf16.vlgmr.msra.gmra.mxu1 %vm389_vm3, %v3579_v17  ;;  %vm267_vm4 = vcmp.lt.s32.totalorder %v265_v31, 2  ;;  %v3119_v38 = vld [vmem:[%s3546_s7 + $0x60] sm:$0xff]  ;;  %v275_v43 = vrot.slane %v271_v37, 7  ;;  %v3118_v44 = vld [vmem:[%s3546_s7 + $0x58] sm:$0xff]  ;;  %v3108_v46 = vld [vmem:[%s3546_s7 + $0x8] sm:$0xff]  ;;  %v306_v56 = vpack.c.bf16 %v271_v37, %v271_v37 }
  0x41   : > { %603 = vmatpush.bf16.msrb.mxu1 %v3134_v12  ;;  %v3586_v25 = vsel %vm260_vm2, 1.0, %v3444_v24  ;;  %395 = vmatpush.bf16.msra.mxu0 %v3122_v18  ;;  %v3603_v39 = vsel %vm267_vm4, 1.0, %v3444_v24  ;;  %v3129_v47 = vld [vmem:[%s3546_s7 + $0xb0] sm:$0xff]  ;;  %v508_v49 = vrot.slane %v271_v37, 1  ;;  %v3107_v53 = vld [vmem:[%s3546_s7] sm:$0xff]  ;;  %v3128_v54 = vld [vmem:[%s3546_s7 + $0xa8] sm:$0xff] }
  0x42   : > { %622 = vmatpush.bf16.msrb.mxu3 %v3136_v20  ;;  %v283_v27 = vmul.f32 %v3586_v25, %v281_v23  ;;  %484 = vmatpush.bf16.msra.mxu2 %v3112_v21  ;;  %v516_v45 = vmul.f32 %v3603_v39, %v514_v42  ;;  %v280_v48 = vsel %vm279_vm1, 0.0, %v275_v43  ;;  %v3117_v51 = vld [vmem:[%s3546_s7 + $0x50] sm:$0xff]  ;;  %v3127_v59 = vld [vmem:[%s3546_s7 + $0xa0] sm:$0xff]  ;;  %v3154_v0 = vld [vmem:[%s3546_s7 + $0x178] sm:$0xff] }
  0x43   : > { %v282_v52 = vmul.f32 %v3586_v25, %v280_v48  ;;  %v513_v55 = vsel %vm512_vm5, %v508_v49, 0.0  ;;  %v3156_v1 = vld [vmem:[%s3546_s7 + $0x188] sm:$0xff]  ;;  %v3153_v3 = vld [vmem:[%s3546_s7 + $0x170] sm:$0xff]  ;;  %v3155_v4 = vld [vmem:[%s3546_s7 + $0x180] sm:$0xff] }
  0x44   : > { %v3595_v32 = vpack.c.bf16 %v283_v27, %v283_v27  ;;  %v3613_v50 = vpack.c.bf16 %v516_v45, %v516_v45  ;;  %v515_v58 = vmul.f32 %v3603_v39, %v513_v55  ;;  %v3144_v2 = vld [vmem:[%s3546_s7 + $0x128] sm:$0xff]  ;;  %v3143_v6 = vld [vmem:[%s3546_s7 + $0x120] sm:$0xff]  ;;  %v3146_v7 = vld [vmem:[%s3546_s7 + $0x138] sm:$0xff] }
  0x45   : > { %604 = vmatpush.bf16.msrb.mxu1 %v3133_v22  ;;  %396 = vmatpush.bf16.msra.mxu0 %v3121_v28  ;;  %v284_v57 = vpack.c.bf16 %v282_v52, %v282_v52  ;;  %v3164_v5 = vld [vmem:[%s3546_s7 + $0x1c8] sm:$0xff]  ;;  %v3145_v8 = vld [vmem:[%s3546_s7 + $0x130] sm:$0xff]  ;;  %v3163_v10 = vld [vmem:[%s3546_s7 + $0x1c0] sm:$0xff] }
  0x46   : > { %623 = vmatpush.bf16.msrb.mxu3 %v3135_v26  ;;  %485 = vmatpush.bf16.msra.mxu2 %v3111_v29  ;;  %v517_v60 = vpack.c.bf16 %v515_v58, %v515_v58  ;;  %v3152_v9 = vld [vmem:[%s3546_s7 + $0x168] sm:$0xff]  ;;  %v3142_v11 = vld [vmem:[%s3546_s7 + $0x118] sm:$0xff]  ;;  %v3151_v13 = vld [vmem:[%s3546_s7 + $0x160] sm:$0xff] }
  0x47   : > { %2310 = vmatmul.msk.bf16.vlgmr.msra.gmra.mxu3 %vm389_vm3, %v3595_v32  ;;  %v3162_v14 = vld [vmem:[%s3546_s7 + $0x1b8] sm:$0xff]  ;;  %v3141_v15 = vld [vmem:[%s3546_s7 + $0x110] sm:$0xff]  ;;  %v3148_v42 = vld [vmem:[%s3546_s7 + $0x148] sm:$0xff] }
  0x48   : > { %v3150_v18 = vld [vmem:[%s3546_s7 + $0x158] sm:$0xff]  ;;  %v3161_v19 = vld [vmem:[%s3546_s7 + $0x1b0] sm:$0xff]  ;;  %v3139_v43 = vld [vmem:[%s3546_s7 + $0x100] sm:$0xff] }
  0x49   : > { %605 = vmatpush.bf16.msrb.mxu1 %v3132_v30  ;;  %397 = vmatpush.bf16.msra.mxu0 %v3120_v33  ;;  %v3149_v22 = vld [vmem:[%s3546_s7 + $0x150] sm:$0xff]  ;;  %v3166_v45 = vld [vmem:[%s3546_s7 + $0x1d8] sm:$0xff] }
  0x4a   : > { %486 = vmatpush.bf16.msra.mxu2 %v3110_v34  ;;  %763 = vmatpush.bf16.msra.mxu3 %v3154_v0  ;;  %v3339_v30 = vld [vmem:[%s3561_s25] ss:$0 sm:$0xff]  ;;  %v3158_v48 = vld [vmem:[%s3546_s7 + $0x198] sm:$0xff] }
  0x4b   : > { %v3137_v49 = vld [vmem:[%s3546_s7 + $0xf0] sm:$0xff] }
  0x4c   : > { %v3165_v52 = vld [vmem:[%s3546_s7 + $0x1d0] sm:$0xff] }
  0x4d   : > { %606 = vmatpush.bf16.msrb.mxu1 %v3131_v35  ;;  %398 = vmatpush.bf16.msra.mxu0 %v3119_v38 }
  0x4e   : > { %487 = vmatpush.bf16.msra.mxu2 %v3109_v40  ;;  %764 = vmatpush.bf16.msra.mxu3 %v3153_v3  ;;  %v3140_v40 = vld [vmem:[%s3546_s7 + $0x108] sm:$0xff] }
  0x51   : > { %607 = vmatpush.bf16.msrb.mxu1 %v3130_v41  ;;  %399 = vmatpush.bf16.msra.mxu0 %v3118_v44  ;;  %v3160_v41 = vld [vmem:[%s3546_s7 + $0x1a8] sm:$0xff]  ;;  %v3159_v44 = vld [vmem:[%s3546_s7 + $0x1a0] sm:$0xff] }
  0x52   : > { %488 = vmatpush.bf16.msra.mxu2 %v3108_v46  ;;  %765 = vmatpush.bf16.msra.mxu3 %v3152_v9  ;;  %v3147_v46 = vld [vmem:[%s3546_s7 + $0x140] sm:$0xff] }
  0x53   : > { %v3175_v9 = vld [vmem:[%s3546_s7 + $0x220] sm:$0xff] }
  0x55   : > { %608 = vmatpush.bf16.msrb.mxu1 %v3129_v47  ;;  %400 = vmatpush.bf16.msra.mxu0 %v3117_v51  ;;  %v3138_v47 = vld [vmem:[%s3546_s7 + $0xf8] sm:$0xff]  ;;  %v3157_v51 = vld [vmem:[%s3546_s7 + $0x190] sm:$0xff] }
  0x56   : > { %489 = vmatpush.bf16.msra.mxu2 %v3107_v53  ;;  %766 = vmatpush.bf16.msra.mxu3 %v3151_v13  ;;  %v3185_v13 = vld [vmem:[%s3546_s7 + $0x270] sm:$0xff] }
  0x57   : > { %2371 = vmatmul.msk.bf16.vlgmr.msrb.gmra.mxu3 %vm389_vm3, %v3613_v50 }
  0x58   : > { %401 = vmatmul.bf16.vlgmr.msra.gmra.mxu0 %v306_v56 }
  0x59   : > { %609 = vmatpush.bf16.msrb.mxu1 %v3128_v54  ;;  %490 = vmatmul.bf16.vlgmr.msra.gmra.mxu2 %v284_v57 }
  0x5a   : > { %782 = vmatpush.bf16.msrb.mxu0 %v3156_v1  ;;  %852 = vmatpush.bf16.msrb.mxu2 %v3144_v2 }
  0x5b   : > { %767 = vmatpush.bf16.msra.mxu3 %v3150_v18  ;;  %v3213_v18 = vld [vmem:[%s3546_s7 + $0x350] sm:$0xff] }
  0x5d   : > { %610 = vmatpush.bf16.msrb.mxu1 %v3127_v59 }
  0x5e   : > { %783 = vmatpush.bf16.msrb.mxu0 %v3155_v4  ;;  %853 = vmatpush.bf16.msrb.mxu2 %v3143_v6  ;;  %v3176_v6 = vld [vmem:[%s3546_s7 + $0x228] sm:$0xff] }
  0x5f   : > { %768 = vmatpush.bf16.msra.mxu3 %v3149_v22  ;;  %v3212_v22 = vld [vmem:[%s3546_s7 + $0x348] sm:$0xff] }
  0x60   : > { %611 = vmatmul.bf16.vlgmr.msrb.gmra.mxu1 %v517_v60 }
  0x61   : > { %871 = vmatpush.bf16.msra.mxu1 %v3146_v7  ;;  %v3184_v7 = vld [vmem:[%s3546_s7 + $0x268] sm:$0xff] }
  0x62   : > { %972 = vmatpush.bf16.msra.mxu0 %v3164_v5  ;;  %854 = vmatpush.bf16.msrb.mxu2 %v3142_v11  ;;  %v3174_v11 = vld [vmem:[%s3546_s7 + $0x218] sm:$0xff] }
  0x63   : > { %769 = vmatpush.bf16.msra.mxu3 %v3148_v42 }
  0x65   : > { %872 = vmatpush.bf16.msra.mxu1 %v3145_v8  ;;  %v3186_v8 = vld [vmem:[%s3546_s7 + $0x278] sm:$0xff] }
  0x66   : > { %973 = vmatpush.bf16.msra.mxu0 %v3163_v10  ;;  %855 = vmatpush.bf16.msrb.mxu2 %v3141_v15  ;;  %v3183_v10 = vld [vmem:[%s3546_s7 + $0x260] sm:$0xff]  ;;  %v3173_v15 = vld [vmem:[%s3546_s7 + $0x210] sm:$0xff] }
  0x67   : > { %770 = vmatpush.bf16.msra.mxu3 %v3147_v46 }
  0x68   : > { %2452 = vmatmul.msk.bf16.vlgmr.msrb.gmra.mxu0 %vm389_vm3, %v3579_v17 }
  0x69   : > { %991 = vmatpush.bf16.msrb.mxu1 %v3166_v45 }
  0x6a   : > { %974 = vmatpush.bf16.msra.mxu0 %v3162_v14  ;;  %856 = vmatpush.bf16.msrb.mxu2 %v3140_v40  ;;  %v3194_v14 = vld [vmem:[%s3546_s7 + $0x2b8] sm:$0xff]  ;;  %v3340_v40 = vld [vmem:[%s3561_s25 + $0x1] ss:$0 sm:$0xff] }
  0x6b   : > { %1132 = vmatpush.bf16.msrb.mxu3 %v3184_v7 }
  0x6d   : > { %992 = vmatpush.bf16.msrb.mxu1 %v3165_v52  ;;  %v3169_v52 = vld [vmem:[%s3546_s7 + $0x1f0] sm:$0xff] }
  0x6e   : > { %975 = vmatpush.bf16.msra.mxu0 %v3161_v19  ;;  %857 = vmatpush.bf16.msrb.mxu2 %v3139_v43  ;;  %v3193_v19 = vld [vmem:[%s3546_s7 + $0x2b0] sm:$0xff] }
  0x6f   : > { %1133 = vmatpush.bf16.msrb.mxu3 %v3183_v10  ;;  %v3203_v10 = vld [vmem:[%s3546_s7 + $0x300] sm:$0xff] }
  0x70   : > { %2493 = vmatmul.msk.bf16.vlgmr.msra.gmra.mxu1 %vm389_vm3, %v3595_v32 }
  0x71   : > { %1221 = vmatpush.bf16.msra.mxu1 %v3174_v11 }
  0x72   : > { %976 = vmatpush.bf16.msra.mxu0 %v3160_v41  ;;  %858 = vmatpush.bf16.msrb.mxu2 %v3138_v47  ;;  %v3209_v41 = vld [vmem:[%s3546_s7 + $0x330] sm:$0xff]  ;;  %v3170_v47 = vld [vmem:[%s3546_s7 + $0x1f8] sm:$0xff] }
  0x75   : > { %1222 = vmatpush.bf16.msra.mxu1 %v3173_v15 }
  0x76   : > { %977 = vmatpush.bf16.msra.mxu0 %v3159_v44  ;;  %859 = vmatpush.bf16.msrb.mxu2 %v3137_v49  ;;  %v3178_v49 = vld [vmem:[%s3546_s7 + $0x238] sm:$0xff] }
  0x7a   : > { %978 = vmatpush.bf16.msra.mxu0 %v3158_v48  ;;  %1151 = vmatpush.bf16.msra.mxu2 %v3186_v8  ;;  %v3190_v48 = vld [vmem:[%s3546_s7 + $0x298] sm:$0xff] }
  0x7e   : > { %979 = vmatpush.bf16.msra.mxu0 %v3157_v51  ;;  %1152 = vmatpush.bf16.msra.mxu2 %v3185_v13  ;;  %v3208_v51 = vld [vmem:[%s3546_s7 + $0x328] sm:$0xff]  ;;  %v3202_v13 = vld [vmem:[%s3546_s7 + $0x2f8] sm:$0xff] }
  0x80   : > { %2554 = vmatmul.msk.bf16.vlgmr.msrb.gmra.mxu1 %vm389_vm3, %v3613_v50 }
  0x82   : > { %1240 = vmatpush.bf16.msrb.mxu0 %v3176_v6 }
  0x86   : > { %1241 = vmatpush.bf16.msrb.mxu0 %v3175_v9 }
  0xbd   : > { %v415_v61 = vpop.f32.mrf.mxu1 }
  0xc5   : > { %v417_v62 = vpop.f32.mrf.mxu1 }
  0xca   : > { %v504_v63 = vpop.f32.mrf.mxu3 }
  0xd2   : > { %v506_v12 = vpop.f32.mrf.mxu3 }
  0xd3   : > { %v3214_v12 = vld [vmem:[%s3546_s7 + $0x358] sm:$0xff] }
  0xd5   : > { %v402_v16 = vpop.f32.mrf.mxu0 }
  0xd6   : > { %v416_v23 = vadd.f32 %v415_v61, %v402_v16  ;;  %v3182_v16 = vld [vmem:[%s3546_s7 + $0x258] sm:$0xff] }
  0xd7   : > { %1134 = vmatpush.bf16.msrb.mxu3 %v3182_v16  ;;  %v3201_v16 = vld [vmem:[%s3546_s7 + $0x2f0] sm:$0xff] }
  0xda   : > { %v625_v20 = vpop.f32.mrf.mxu3 }
  0xdc   : > { %v491_v24 = vpop.f32.mrf.mxu2 }
  0xdd   : > { %v612_v21 = vpop.f32.mrf.mxu1  ;;  %v492_v27 = vadd.f32 %v491_v24, %v416_v23  ;;  %v404_v28 = vpop.f32.mrf.mxu0  ;;  %v3192_v23 = vld [vmem:[%s3546_s7 + $0x2a8] sm:$0xff]  ;;  %v3171_v24 = vld [vmem:[%s3546_s7 + $0x200] sm:$0xff] }
  0xde   : > { %v626_v26 = vadd.f32 %v625_v20, %v612_v21  ;;  %v3172_v20 = vld [vmem:[%s3546_s7 + $0x208] sm:$0xff]  ;;  %v3181_v21 = vld [vmem:[%s3546_s7 + $0x250] sm:$0xff] }
  0xdf   : > { %v505_v29 = vadd.f32 %v504_v63, %v492_v27  ;;  %1223 = vmatpush.bf16.msra.mxu1 %v3172_v20  ;;  %1135 = vmatpush.bf16.msrb.mxu3 %v3181_v21  ;;  %v3180_v27 = vld [vmem:[%s3546_s7 + $0x248] sm:$0xff]  ;;  %v3198_v20 = vld [vmem:[%s3546_s7 + $0x2d8] sm:$0xff]  ;;  %v3197_v21 = vld [vmem:[%s3546_s7 + $0x2d0] sm:$0xff] }
  0xe1   : > { %v629_v33 = vadd.f32 %v626_v26, %v505_v29  ;;  %v3191_v29 = vld [vmem:[%s3546_s7 + $0x2a0] sm:$0xff] }
  0xe2   : > { %v627_v31 = vpop.f32.mrf.mxu3 }
  0xe3   : > { %v632_v35 = vadd.f32 %v3339_v30, %v629_v33  ;;  %1224 = vmatpush.bf16.msra.mxu1 %v3171_v24  ;;  %1136 = vmatpush.bf16.msrb.mxu3 %v3180_v27  ;;  %v3210_v31 = vld [vmem:[%s3546_s7 + $0x338] sm:$0xff]  ;;  %v3205_v27 = vld [vmem:[%s3546_s7 + $0x310] sm:$0xff] }
  0xe4   : > { %v493_v36 = vpop.f32.mrf.mxu2  ;;  %v3206_v24 = vld [vmem:[%s3546_s7 + $0x318] sm:$0xff] }
  0xe5   : > { %v614_v34 = vpop.f32.mrf.mxu1  ;;  %vm633_vm6 = vcmp.ge.f32.partialorder %v632_v35, 0.0  ;;  %v634_v37 = vmul.f32 0.2, %v632_v35  ;;  %v3661_v53 = vpop.f32.mrf.mxu0 }
  0xe7   : > { %v635_v38 = vsel %vm633_vm6, %v632_v35, %v634_v37  ;;  %1225 = vmatpush.bf16.msra.mxu1 %v3170_v47 }
  0xe8   : > { %637 = vrot.lane.b32.xlu0 %v635_v38, %s3445_s23 }
  0xeb   : > { %1226 = vmatpush.bf16.msra.mxu1 %v3169_v52  ;;  %v3230_v52 = vld [vmem:[%s3546_s7 + $0x3d8] sm:$0xff] }
  0xed   : > { %v3663_v54 = vpop.f32.mrf.mxu1  ;;  %v787_v55 = vpop.f32.mrf.mxu0 }
  0xee   : > { %v3196_v55 = vld [vmem:[%s3546_s7 + $0x2c8] sm:$0xff] }
  0xf5   : > { %v876_v56 = vpop.f32.mrf.mxu1 }
  0xf6   : > { %v3207_v56 = vld [vmem:[%s3546_s7 + $0x320] sm:$0xff] }
  0xfd   : > { %v994_v4 = vpop.f32.mrf.mxu1 }
 0x105   : > { %v996_v5 = vpop.f32.mrf.mxu1 }
 0x15a   : > { %v638_v57 = vpop.permute.xlu0 %637 }
 0x15b   : > { %641 = vst.msk [vmem:[#allocation2] sm:$0xff] %vm640_vm7, %v638_v57  ;;  %v3168_v57 = vld [vmem:[%s3546_s7 + $0x1e8] sm:$0xff] }
 0x15c   : > { %1227 = vmatpush.bf16.msra.mxu1 %v3168_v57 }
 0x162   : > { %v642_v58 = vld [vmem:[#allocation2] sm:$0xff] }
 0x163   : > { %v677_v59 = vpack.c.bf16 %v642_v58, %v642_v58  ;;  %v646_v60 = vrot.slane %v642_v58, 7  ;;  %v878_v61 = vrot.slane %v642_v58, 1  ;;  %v3188_v58 = vld [vmem:[%s3546_s7 + $0x288] sm:$0xff] }
 0x165   : > { %771 = vmatmul.bf16.vlgmr.msra.gmra.mxu3 %v677_v59  ;;  %v650_v62 = vsel %vm279_vm1, 0.0, %v646_v60  ;;  %v882_v63 = vsel %vm512_vm5, %v878_v61, 0.0  ;;  %v3195_v59 = vld [vmem:[%s3546_s7 + $0x2c0] sm:$0xff] }
 0x166   : > { %v652_v0 = vmul.f32 %v3586_v25, %v650_v62  ;;  %v884_v1 = vmul.f32 %v3603_v39, %v882_v63  ;;  %v3167_v60 = vld [vmem:[%s3546_s7 + $0x1e0] sm:$0xff] }
 0x167   : > { %v3187_v61 = vld [vmem:[%s3546_s7 + $0x280] sm:$0xff]  ;;  %1228 = vmatpush.bf16.msra.mxu1 %v3167_v60 }
 0x168   : > { %v654_v2 = vpack.c.bf16 %v652_v0, %v652_v0  ;;  %v886_v3 = vpack.c.bf16 %v884_v1, %v884_v1  ;;  %v3204_v0 = vld [vmem:[%s3546_s7 + $0x308] sm:$0xff] }
 0x16a   : > { %860 = vmatmul.bf16.vlgmr.msrb.gmra.mxu2 %v654_v2  ;;  %980 = vmatmul.bf16.vlgmr.msra.gmra.mxu0 %v886_v3 }
 0x16b   : > { %1497 = vmatpush.bf16.msra.mxu0 %v3214_v12  ;;  %1341 = vmatpush.bf16.msrb.mxu2 %v3194_v14 }
 0x16f   : > { %1498 = vmatpush.bf16.msra.mxu0 %v3213_v18  ;;  %1342 = vmatpush.bf16.msrb.mxu2 %v3193_v19  ;;  %v3200_v18 = vld [vmem:[%s3546_s7 + $0x2e8] sm:$0xff]  ;;  %v3199_v19 = vld [vmem:[%s3546_s7 + $0x2e0] sm:$0xff] }
 0x173   : > { %1499 = vmatpush.bf16.msra.mxu0 %v3212_v22  ;;  %1343 = vmatpush.bf16.msrb.mxu2 %v3192_v23  ;;  %v3216_v22 = vld [vmem:[%s3546_s7 + $0x368] sm:$0xff]  ;;  %v3215_v23 = vld [vmem:[%s3546_s7 + $0x360] sm:$0xff] }
 0x174   : > { %1516 = vmatpush.bf16.msrb.mxu1 %v3216_v22 }
 0x177   : > { %1344 = vmatpush.bf16.msrb.mxu2 %v3191_v29  ;;  %v3244_v29 = vld [vmem:[%s3546_s7 + $0x448] sm:$0xff] }
 0x178   : > { %1517 = vmatpush.bf16.msrb.mxu1 %v3215_v23 }
 0x17a   : > { %2676 = vmatmul.msk.bf16.vlgmr.msrb.gmra.mxu0 %vm389_vm3, %v3595_v32  ;;  %2635 = vmatmul.msk.bf16.vlgmr.msra.gmra.mxu2 %vm389_vm3, %v3579_v17  ;;  %v3211_v32 = vld [vmem:[%s3546_s7 + $0x340] sm:$0xff] }
 0x17b   : > { %v3179_v17 = vld [vmem:[%s3546_s7 + $0x240] sm:$0xff]  ;;  %1500 = vmatpush.bf16.msra.mxu0 %v3211_v32  ;;  %1345 = vmatpush.bf16.msrb.mxu2 %v3190_v48  ;;  %v3225_v32 = vld [vmem:[%s3546_s7 + $0x3b0] sm:$0xff] }
 0x17c   : > { %1137 = vmatpush.bf16.msrb.mxu3 %v3179_v17  ;;  %v3234_v17 = vld [vmem:[%s3546_s7 + $0x3f8] sm:$0xff]  ;;  %v3219_v48 = vld [vmem:[%s3546_s7 + $0x380] sm:$0xff] }
 0x17f   : > { %1501 = vmatpush.bf16.msra.mxu0 %v3210_v31  ;;  %v3222_v31 = vld [vmem:[%s3546_s7 + $0x398] sm:$0xff] }
 0x180   : > { %1138 = vmatpush.bf16.msrb.mxu3 %v3178_v49 }
 0x183   : > { %1502 = vmatpush.bf16.msra.mxu0 %v3209_v41 }
 0x187   : > { %1503 = vmatpush.bf16.msra.mxu0 %v3208_v51  ;;  %v3240_v51 = vld [vmem:[%s3546_s7 + $0x428] sm:$0xff] }
 0x18b   : > { %1504 = vmatpush.bf16.msra.mxu0 %v3207_v56 }
 0x1e7   : > { %v981_v26 = vpop.f32.mrf.mxu0 }
 0x1e8   : > { %v772_v28 = vpop.f32.mrf.mxu3  ;;  %v995_v36 = vadd.f32 %v994_v4, %v981_v26  ;;  %v3226_v26 = vld [vmem:[%s3546_s7 + $0x3b8] sm:$0xff] }
 0x1e9   : > { %v786_v30 = vadd.f32 %v3661_v53, %v772_v28  ;;  %v3189_v53 = vld [vmem:[%s3546_s7 + $0x290] sm:$0xff]  ;;  %1725 = vmatpush.bf16.msrb.mxu0 %v3226_v26  ;;  %v3223_v28 = vld [vmem:[%s3546_s7 + $0x3a0] sm:$0xff]  ;;  %v3246_v26 = vld [vmem:[%s3546_s7 + $0x458] sm:$0xff] }
 0x1ea   : > { %1346 = vmatpush.bf16.msrb.mxu2 %v3189_v53  ;;  %v3218_v53 = vld [vmem:[%s3546_s7 + $0x378] sm:$0xff] }
 0x1ed   : > { %v861_v33 = vpop.f32.mrf.mxu2  ;;  %1726 = vmatpush.bf16.msrb.mxu0 %v3225_v32  ;;  %v3254_v32 = vld [vmem:[%s3546_s7 + $0x498] sm:$0xff] }
 0x1ee   : > { %v862_v34 = vadd.f32 %v861_v33, %v786_v30  ;;  %1347 = vmatpush.bf16.msrb.mxu2 %v3188_v58  ;;  %v3243_v33 = vld [vmem:[%s3546_s7 + $0x440] sm:$0xff]  ;;  %v3217_v58 = vld [vmem:[%s3546_s7 + $0x370] sm:$0xff] }
 0x1ef   : > { %v983_v35 = vpop.f32.mrf.mxu0 }
 0x1f0   : > { %v875_v37 = vadd.f32 %v3663_v54, %v862_v34  ;;  %v774_v38 = vpop.f32.mrf.mxu3  ;;  %v3177_v54 = vld [vmem:[%s3546_s7 + $0x230] sm:$0xff] }
 0x1f1   : > { %1139 = vmatpush.bf16.msrb.mxu3 %v3177_v54  ;;  %v3233_v34 = vld [vmem:[%s3546_s7 + $0x3f0] sm:$0xff]  ;;  %v3242_v38 = vld [vmem:[%s3546_s7 + $0x438] sm:$0xff]  ;;  %v3239_v54 = vld [vmem:[%s3546_s7 + $0x420] sm:$0xff] }
 0x1f2   : > { %v998_v42 = vadd.f32 %v995_v36, %v875_v37  ;;  %1348 = vmatpush.bf16.msrb.mxu2 %v3187_v61  ;;  %v3221_v37 = vld [vmem:[%s3546_s7 + $0x390] sm:$0xff]  ;;  %v3228_v61 = vld [vmem:[%s3546_s7 + $0x3c8] sm:$0xff] }
 0x1f4   : > { %v1001_v43 = vadd.f32 %v3340_v40, %v998_v42  ;;  %v3232_v40 = vld [vmem:[%s3546_s7 + $0x3e8] sm:$0xff] }
 0x1f5   : > { %v863_v44 = vpop.f32.mrf.mxu2  ;;  %1360 = vmatpush.bf16.msra.mxu3 %v3196_v55  ;;  %v3220_v42 = vld [vmem:[%s3546_s7 + $0x388] sm:$0xff]  ;;  %v3229_v55 = vld [vmem:[%s3546_s7 + $0x3d0] sm:$0xff] }
 0x1f6   : > { %vm1002_vm8 = vcmp.ge.f32.partialorder %v1001_v43, 0.0  ;;  %v1003_v45 = vmul.f32 0.2, %v1001_v43  ;;  %1605 = vmatpush.bf16.msra.mxu2 %v3206_v24  ;;  %v3231_v44 = vld [vmem:[%s3546_s7 + $0x3e0] sm:$0xff] }
 0x1f7   : > { %v3729_v8 = vpop.f32.mrf.mxu0 }
 0x1f8   : > { %v1004_v46 = vsel %vm1002_vm8, %v1001_v43, %v1003_v45  ;;  %v3241_v43 = vld [vmem:[%s3546_s7 + $0x430] sm:$0xff] }
 0x1f9   : > { %1006 = vrot.lane.b32.xlu0 %v1004_v46, %s3446_s29  ;;  %1361 = vmatpush.bf16.msra.mxu3 %v3195_v59  ;;  %v3238_v59 = vld [vmem:[%s3546_s7 + $0x418] sm:$0xff] }
 0x1fa   : > { %1606 = vmatpush.bf16.msra.mxu2 %v3205_v27 }
 0x1fd   : > { %v3731_v9 = vpop.f32.mrf.mxu2 }
 0x1ff   : > { %v1245_v14 = vpop.f32.mrf.mxu0 }
 0x205   : > { %v1156_v15 = vpop.f32.mrf.mxu2 }
 0x26b   : > { %v1007_v62 = vpop.permute.xlu0 %1006 }
 0x26c   : > { %1010 = vst.msk [vmem:[#allocation2] sm:$0xff] %vm1009_vm9, %v1007_v62 }
 0x273   : > { %v3714_v63 = vld [vmem:[#allocation2] sm:$0xff] }
 0x274   : > { %v3719_v1 = vpack.c.bf16 %v3714_v63, %v3714_v63  ;;  %v1015_v2 = vrot.slane %v3714_v63, 7  ;;  %v1247_v3 = vrot.slane %v3714_v63, 1 }
 0x276   : > { %1140 = vmatmul.bf16.vlgmr.msrb.gmra.mxu3 %v3719_v1  ;;  %1505 = vmatmul.bf16.vlgmr.msra.gmra.mxu0 %v3719_v1  ;;  %v1019_v4 = vsel %vm279_vm1, 0.0, %v1015_v2  ;;  %v1251_v5 = vsel %vm512_vm5, %v1247_v3, 0.0  ;;  %v3341_v2 = vld [vmem:[%s3561_s25 + $0x2] ss:$0 sm:$0xff] }
 0x277   : > { %1586 = vmatpush.bf16.msrb.mxu3 %v3204_v0  ;;  %v1021_v6 = vmul.f32 %v3586_v25, %v1019_v4  ;;  %v1253_v7 = vmul.f32 %v3603_v39, %v1251_v5  ;;  %1955 = vmatpush.bf16.msra.mxu0 %v3234_v17  ;;  %v3237_v4 = vld [vmem:[%s3546_s7 + $0x410] sm:$0xff]  ;;  %v3227_v5 = vld [vmem:[%s3546_s7 + $0x3c0] sm:$0xff] }
 0x278   : > { %v3253_v17 = vld [vmem:[%s3546_s7 + $0x490] sm:$0xff] }
 0x279   : > { %v3734_v11 = vpack.c.bf16 %v1021_v6, %v1021_v6  ;;  %v3736_v12 = vpack.c.bf16 %v1253_v7, %v1253_v7 }
 0x27b   : > { %1229 = vmatmul.bf16.vlgmr.msra.gmra.mxu1 %v3734_v11  ;;  %1349 = vmatmul.bf16.vlgmr.msrb.gmra.mxu2 %v3736_v12 }
 0x27c   : > { %1587 = vmatpush.bf16.msrb.mxu3 %v3203_v10  ;;  %1866 = vmatpush.bf16.msrb.mxu2 %v3244_v29 }
 0x27d   : > { %1956 = vmatpush.bf16.msra.mxu0 %v3233_v34 }
 0x280   : > { %1588 = vmatpush.bf16.msrb.mxu3 %v3202_v13  ;;  %1867 = vmatpush.bf16.msrb.mxu2 %v3243_v33 }
 0x281   : > { %1957 = vmatpush.bf16.msra.mxu0 %v3232_v40 }
 0x284   : > { %1589 = vmatpush.bf16.msrb.mxu3 %v3201_v16  ;;  %1868 = vmatpush.bf16.msrb.mxu2 %v3242_v38 }
 0x285   : > { %1958 = vmatpush.bf16.msra.mxu0 %v3231_v44 }
 0x286   : > { %2737 = vmatmul.msk.bf16.vlgmr.msra.gmra.mxu3 %vm389_vm3, %v3613_v50  ;;  %v3224_v50 = vld [vmem:[%s3546_s7 + $0x3a8] sm:$0xff] }
 0x287   : > { %1706 = vmatpush.bf16.msra.mxu1 %v3224_v50 }
 0x288   : > { %1590 = vmatpush.bf16.msrb.mxu3 %v3200_v18  ;;  %1869 = vmatpush.bf16.msrb.mxu2 %v3241_v43 }
 0x289   : > { %1959 = vmatpush.bf16.msra.mxu0 %v3230_v52  ;;  %v3251_v52 = vld [vmem:[%s3546_s7 + $0x480] sm:$0xff] }
 0x28b   : > { %1707 = vmatpush.bf16.msra.mxu1 %v3223_v28  ;;  %v3245_v28 = vld [vmem:[%s3546_s7 + $0x450] sm:$0xff] }
 0x28c   : > { %1591 = vmatpush.bf16.msrb.mxu3 %v3199_v19  ;;  %1870 = vmatpush.bf16.msrb.mxu2 %v3240_v51  ;;  %v3256_v51 = vld [vmem:[%s3546_s7 + $0x4a8] sm:$0xff] }
 0x28d   : > { %1960 = vmatpush.bf16.msra.mxu0 %v3229_v55  ;;  %v3255_v55 = vld [vmem:[%s3546_s7 + $0x4a0] sm:$0xff] }
 0x28f   : > { %1708 = vmatpush.bf16.msra.mxu1 %v3222_v31 }
 0x290   : > { %1592 = vmatpush.bf16.msrb.mxu3 %v3198_v20  ;;  %1871 = vmatpush.bf16.msrb.mxu2 %v3239_v54  ;;  %v3235_v54 = vld [vmem:[%s3546_s7 + $0x400] sm:$0xff] }
 0x291   : > { %1961 = vmatpush.bf16.msra.mxu0 %v3228_v61 }
 0x293   : > { %1709 = vmatpush.bf16.msra.mxu1 %v3221_v37  ;;  %v3342_v37 = vld [vmem:[%s3561_s25 + $0x3] ss:$0 sm:$0xff] }
 0x294   : > { %1593 = vmatpush.bf16.msrb.mxu3 %v3197_v21  ;;  %1872 = vmatpush.bf16.msrb.mxu2 %v3238_v59 }
 0x295   : > { %1962 = vmatpush.bf16.msra.mxu0 %v3227_v5 }
 0x297   : > { %1594 = vmatmul.bf16.vlgmr.msrb.gmra.mxu3 %v3734_v11  ;;  %1710 = vmatpush.bf16.msra.mxu1 %v3220_v42 }
 0x298   : > { %1873 = vmatpush.bf16.msrb.mxu2 %v3237_v4  ;;  %1885 = vmatpush.bf16.msra.mxu3 %v3246_v26 }
 0x29b   : > { %1711 = vmatpush.bf16.msra.mxu1 %v3219_v48  ;;  %v3252_v48 = vld [vmem:[%s3546_s7 + $0x488] sm:$0xff] }
 0x29c   : > { %1886 = vmatpush.bf16.msra.mxu3 %v3245_v28 }
 0x29f   : > { %1712 = vmatpush.bf16.msra.mxu1 %v3218_v53  ;;  %v3250_v53 = vld [vmem:[%s3546_s7 + $0x478] sm:$0xff] }
 0x2a0   : > { %2075 = vmatpush.bf16.msrb.mxu3 %v3254_v32 }
 0x2a3   : > { %1713 = vmatpush.bf16.msra.mxu1 %v3217_v58  ;;  %v3247_v58 = vld [vmem:[%s3546_s7 + $0x460] sm:$0xff] }
 0x2a4   : > { %2076 = vmatpush.bf16.msrb.mxu3 %v3253_v17 }
 0x2a8   : > { %2077 = vmatpush.bf16.msrb.mxu3 %v3252_v48 }
 0x2ac   : > { %2078 = vmatpush.bf16.msrb.mxu3 %v3251_v52 }
 0x2b0   : > { %2079 = vmatpush.bf16.msrb.mxu3 %v3250_v53 }
 0x2f3   : > { %v3759_v30 = vpop.f32.mrf.mxu0 }
 0x2f8   : > { %v1230_v35 = vpop.f32.mrf.mxu1 }
 0x2f9   : > { %v1141_v36 = vpop.f32.mrf.mxu3 }
 0x2fa   : > { %v1155_v49 = vadd.f32 %v3731_v9, %v1141_v36 }
 0x2fb   : > { %v1508_v41 = vpop.f32.mrf.mxu0 }
 0x2fc   : > { %v1231_v56 = vadd.f32 %v1230_v35, %v1155_v49  ;;  %v3236_v49 = vld [vmem:[%s3546_s7 + $0x408] sm:$0xff] }
 0x2fe   : > { %v1350_v45 = vpop.f32.mrf.mxu2  ;;  %v1244_v62 = vadd.f32 %v3729_v8, %v1231_v56  ;;  %v3249_v56 = vld [vmem:[%s3546_s7 + $0x470] sm:$0xff] }
 0x2ff   : > { %2080 = vmatpush.bf16.msrb.mxu3 %v3249_v56 }
 0x300   : > { %v1232_v46 = vpop.f32.mrf.mxu1 }
 0x301   : > { %v1143_v47 = vpop.f32.mrf.mxu3 }
 0x306   : > { %v1352_v57 = vpop.f32.mrf.mxu2 }
 0x307   : > { %v3248_v57 = vld [vmem:[%s3546_s7 + $0x468] sm:$0xff] }
 0x308   : > { %2081 = vmatpush.bf16.msrb.mxu3 %v3248_v57 }
 0x309   : > { %v1363_v60 = vpop.f32.mrf.mxu3 }
 0x30a   : > { %v1364_v0 = vadd.f32 %v1363_v60, %v1350_v45 }
 0x30c   : > { %v1367_v3 = vadd.f32 %v1364_v0, %v1244_v62  ;;  %2082 = vmatpush.bf16.msrb.mxu3 %v3247_v58 }
 0x30e   : > { %v1370_v6 = vadd.f32 %v3341_v2, %v1367_v3 }
 0x310   : > { %vm1371_vm10 = vcmp.ge.f32.partialorder %v1370_v6, 0.0  ;;  %v1372_v7 = vmul.f32 0.2, %v1370_v6 }
 0x311   : > { %v1365_v9 = vpop.f32.mrf.mxu3 }
 0x312   : > { %v1373_v10 = vsel %vm1371_vm10, %v1370_v6, %v1372_v7 }
 0x313   : > { %1375 = vst.msk [vmem:[#allocation2 + $0x8] sm:$0xff] %vm1374_vm11, %v1373_v10 }
 0x31a   : > { %v1595_v13 = vpop.f32.mrf.mxu3  ;;  %v1377_v14 = vld [vmem:[#allocation2 + $0x8] sm:$0xff] }
 0x31b   : > { %v1412_v8 = vpack.c.bf16 %v1377_v14, %v1377_v14  ;;  %v1381_v15 = vrot.slane %v1377_v14, 7  ;;  %v1613_v16 = vrot.slane %v1377_v14, 1 }
 0x31d   : > { %2818 = vmatmul.msk.bf16.vlgmr.msrb.gmra.mxu1 %vm389_vm3, %v1412_v8  ;;  %v1385_v18 = vsel %vm279_vm1, 0.0, %v1381_v15  ;;  %v1617_v19 = vsel %vm512_vm5, %v1613_v16, 0.0 }
 0x31e   : > { %v1387_v20 = vmul.f32 %v3586_v25, %v1385_v18  ;;  %v1619_v21 = vmul.f32 %v3603_v39, %v1617_v19  ;;  %1974 = vmatpush.bf16.msrb.mxu1 %v3236_v49 }
 0x320   : > { %v1389_v22 = vpack.c.bf16 %v1387_v20, %v1387_v20  ;;  %v1621_v23 = vpack.c.bf16 %v1619_v21, %v1619_v21  ;;  %v3343_v20 = vld [vmem:[%s3561_s25 + $0x4] ss:$0 sm:$0xff] }
 0x322   : > { %v1597_v24 = vpop.f32.mrf.mxu3  ;;  %2859 = vmatmul.msk.bf16.vlgmr.msra.gmra.mxu2 %vm389_vm3, %v1389_v22  ;;  %2920 = vmatmul.msk.bf16.vlgmr.msrb.gmra.mxu0 %vm389_vm3, %v1621_v23 }
 0x323   : > { %2094 = vmatpush.bf16.msra.mxu2 %v3256_v51  ;;  %1975 = vmatpush.bf16.msrb.mxu1 %v3235_v54 }
 0x327   : > { %2095 = vmatpush.bf16.msra.mxu2 %v3255_v55 }
 0x32d   : > { %1714 = vmatmul.bf16.vlgmr.msra.gmra.mxu1 %v3736_v12 }
 0x332   : > { %1874 = vmatmul.bf16.vlgmr.msrb.gmra.mxu2 %v3719_v1  ;;  %1963 = vmatmul.bf16.vlgmr.msra.gmra.mxu0 %v3734_v11 }
 0x39a   : > { %v1519_v50 = vpop.f32.mrf.mxu1 }
 0x39b   : > { %v1520_v31 = vadd.f32 %v1519_v50, %v3759_v30 }
 0x39d   : > { %v1596_v35 = vadd.f32 %v1595_v13, %v1520_v31 }
 0x39f   : > { %v1728_v27 = vpop.f32.mrf.mxu0 }
 0x3a2   : > { %v1521_v29 = vpop.f32.mrf.mxu1 }
 0x3a5   : > { %v1608_v33 = vpop.f32.mrf.mxu2 }
 0x3a6   : > { %v1609_v36 = vadd.f32 %v1608_v33, %v1596_v35 }
 0x3a7   : > { %v1730_v34 = vpop.f32.mrf.mxu0 }
 0x3aa   : > { %v1715_v1 = vpop.f32.mrf.mxu1 }
 0x3ab   : > { %v1729_v11 = vadd.f32 %v1728_v27, %v1715_v1 }
 0x3ad   : > { %v1732_v38 = vadd.f32 %v1729_v11, %v1609_v36  ;;  %v1610_v40 = vpop.f32.mrf.mxu2 }
 0x3af   : > { %v1735_v41 = vadd.f32 %v3342_v37, %v1732_v38  ;;  %v1964_v42 = vpop.f32.mrf.mxu0 }
 0x3b1   : > { %vm1736_vm12 = vcmp.ge.f32.partialorder %v1735_v41, 0.0  ;;  %v1737_v43 = vmul.f32 0.2, %v1735_v41 }
 0x3b2   : > { %v1717_v30 = vpop.f32.mrf.mxu1 }
 0x3b3   : > { %v1738_v44 = vsel %vm1736_vm12, %v1735_v41, %v1737_v43 }
 0x3b4   : > { %1740 = vrot.lane.b32.xlu1 %v1738_v44, %s3447_s5 }
 0x3b5   : > { %v1875_v45 = vpop.f32.mrf.mxu2 }
 0x3b7   : > { %v1966_v46 = vpop.f32.mrf.mxu0 }
 0x3bd   : > { %v1877_v47 = vpop.f32.mrf.mxu2 }
 0x426   : > { %v1741_v59 = vpop.permute.xlu1 %1740 }
 0x427   : > { %1744 = vst.msk [vmem:[#allocation2 + $0x8] sm:$0xff] %vm1743_vm13, %v1741_v59 }
 0x42e   : > { %v1746_v60 = vld [vmem:[#allocation2 + $0x8] sm:$0xff] }
 0x42f   : > { %v1781_v61 = vpack.c.bf16 %v1746_v60, %v1746_v60  ;;  %v1750_v62 = vrot.slane %v1746_v60, 7  ;;  %v1982_v0 = vrot.slane %v1746_v60, 1 }
 0x431   : > { %3001 = vmatmul.msk.bf16.vlgmr.msra.gmra.mxu3 %vm389_vm3, %v1781_v61  ;;  %v1754_v2 = vsel %vm279_vm1, 0.0, %v1750_v62  ;;  %v1986_v3 = vsel %vm512_vm5, %v1982_v0, 0.0 }
 0x432   : > { %v1756_v4 = vmul.f32 %v3586_v25, %v1754_v2  ;;  %v1988_v5 = vmul.f32 %v3603_v39, %v1986_v3 }
 0x434   : > { %v1758_v6 = vpack.c.bf16 %v1756_v4, %v1756_v4  ;;  %v1990_v7 = vpack.c.bf16 %v1988_v5, %v1988_v5 }
 0x436   : > { %3042 = vmatmul.msk.bf16.vlgmr.msrb.gmra.mxu1 %vm389_vm3, %v1758_v6  ;;  %3103 = vmatmul.msk.bf16.vlgmr.msra.gmra.mxu2 %vm389_vm3, %v1990_v7 }
 0x441   : > { %2083 = vmatmul.bf16.vlgmr.msrb.gmra.mxu3 %v3736_v12 }
 0x4b3   : > { %v1977_v9 = vpop.f32.mrf.mxu1 }
 0x4b4   : > { %v1888_v10 = vpop.f32.mrf.mxu3 }
 0x4b5   : > { %v1889_v15 = vadd.f32 %v1888_v10, %v1875_v45 }
 0x4b7   : > { %v1965_v16 = vadd.f32 %v1964_v42, %v1889_v15 }
 0x4b9   : > { %v2097_v13 = vpop.f32.mrf.mxu2  ;;  %v1978_v39 = vadd.f32 %v1977_v9, %v1965_v16 }
 0x4bb   : > { %v1979_v14 = vpop.f32.mrf.mxu1 }
 0x4bc   : > { %v1890_v8 = vpop.f32.mrf.mxu3 }
 0x4c1   : > { %v2099_v25 = vpop.f32.mrf.mxu2 }
 0x4c4   : > { %v2084_v18 = vpop.f32.mrf.mxu3 }
 0x4c5   : > { %v2098_v19 = vadd.f32 %v2097_v13, %v2084_v18 }
 0x4c7   : > { %v2101_v21 = vadd.f32 %v2098_v19, %v1978_v39 }
 0x4c9   : > { %v2104_v22 = vadd.f32 %v3343_v20, %v2101_v21 }
 0x4cb   : > { %v2105_v23 = vmul.f32 0.2, %v2104_v22  ;;  %2112 = sbr.rel (%p3104_p7) target bundleno = 1246 (0x4de), region = 48 }
 0x4cc   : > { %v2086_v24 = vpop.f32.mrf.mxu3 }
 0x4cd   : > { %v2106_v12 = vadd.f32 %v2105_v23, %v3714_v63 }
 0x4cf   : > { %2108 = vst.msk [vmem:[#allocation2] sm:$0xff] %vm2107_vm14, %v2106_v12 }
 0x4d0   : > { %v2115_v26 = vld [vmem:[#allocation3] sm:$0xff] }
 0x4d6   : > { %v2113_v50 = vld [vmem:[#allocation2] sm:$0xff] }
 0x4d7   : > { %v2114_v27 = vmul.f32 0.2, %v2113_v50 }
 0x4d9   : > { %v2116_v28 = vadd.f32 %v2115_v26, %v2114_v27 }
 0x4db   : > { %v2117_v32 = vmul.f32 2.0, %v2116_v28 }
 0x4dd   : > { %2118 = vst.msk [vmem:[#allocation2] sm:$0xff] %vm2107_vm14, %v2117_v32 }
 0x4de PF: > { %p2119_p8 = scmp.eq.s32.totalorder %s3428_s16, 7 }
 0x4e0   : > { %p2120_p9 = pnand %p2119_p8, %p2109_p6 }
 0x4e2   : > { %2123 = sbr.rel (%p2120_p9) target bundleno = 1258 (0x4ea), region = 52 }
 0x4e7   : > { %v2124_v29 = vld [vmem:[#allocation2] sm:$0xff]  ;;  %v2125_v17 = vld [vmem:[#allocation2 + $0x8] sm:$0xff] }
 0x4e8   : > { %2126 = vst [vmem:[%s3859_s3] sm:$0xff] %v2124_v29 }
 0x4e9   : > { %2127 = vst.msk [vmem:[%s3859_s3 + $0x8] sm:$0xff] %vm389_vm3, %v2125_v17 }
 0x4ea PF: > { %s16_s19 = sadd.s32 1, %s3440_s19   ;;  %s3862_s12 = smov %s3416_s13 }
 0x4eb   : > { %p13_p10 = scmp.ge.s32.totalorder %s16_s19, 26   ;;  %s3863_s13 = smov %s3420_s14 }
 0x4ec   : > { %s3864_s14 = smov %s3534_s4  ;;  %s3865_s15 = smov %s3432_s17 }
 0x4ed   : > { %s3866_s16 = smov %s3436_s18  ;;  %s3867_s17 = smov %s3870_s21 }
 0x4ee   : > { %s3868_s18 = smov %s3874_s22  ;;  %15 = sbr.rel (!%p13_p10) target bundleno = 5 (0x5), region = 101 }
 0x4f3   :  { %2139 = vsyncpa [#allocation5], 1 }
 0x4f4   :  { %2141 = vsyncpa [#allocation5 + $0x1], 1 }

// kernel: csn_forward.13
= control target key start
LH: loop header
LB: loop body
LE: loop exit
PB: predicated region body
PF: predicated region fallthrough
CT: control target
= control target key end

     0   :  { %8 = vsyncpa [#allocation3], 0  ;;  %s893_s15 = smov [#allocation2]   ;;  %s1096_s0 = inlined_call_operand.vmem [shape: bf16[8,864], index: 0, kind: input, shape index: {}]   ;;  %s1097_s1 = inlined_call_operand.vmem [shape: bf16[864,96], index: 1, kind: input, shape index: {}]   ;;  %s1098_s2 = inlined_call_operand.hbm [shape: f32[1,96], index: 2, kind: input, shape index: {}]   ;;  %s1099_s3 = inlined_call_operand.vmem [shape: f32[8,96], index: 3, kind: output, shape index: {}]  }
   0x1   :  { %s18_s14 = sshll.u32 %s1098_s2, 4  ;;  %s20_s16 = sshll.u32 %s893_s15, 4  ;;  %s19_s14 = int_to_ptr.hbm [resolvable:$true] %s18_s14  ;;  %s21_s16 = int_to_ptr.vmem [resolvable:$true] %s20_s16 }
   0x2   :  { %23 = dma.hbm_to_vmem [thread:$0]  %s19_s14, 16, %s21_s16, [#allocation3]  }
   0x3   :  { %891 = dma.done.wait [#allocation3], 16  }
   0x4   :  { %892 = vsyncadd [#allocation3], 4294967280  ;;  %v818_v0 = vld [vmem:[%s1097_s1 + $0x38] sm:$0xff]  ;;  %v817_v3 = vld [vmem:[%s1097_s1 + $0x30] sm:$0xff]  ;;  %vm493_vm0 = vcmask 785408  }
   0x5   :  { %v826_v1 = vld [vmem:[%s1097_s1 + $0x78] sm:$0xff]  ;;  %497 = vmatpush.bf16.msra.mxu0 %v818_v0  ;;  %v825_v4 = vld [vmem:[%s1097_s1 + $0x70] sm:$0xff]  ;;  %v816_v8 = vld [vmem:[%s1097_s1 + $0x28] sm:$0xff] }
   0x6   :  { %v834_v2 = vld [vmem:[%s1097_s1 + $0xb8] sm:$0xff]  ;;  %510 = vmatpush.bf16.msra.mxu1 %v826_v1  ;;  %v833_v5 = vld [vmem:[%s1097_s1 + $0xb0] sm:$0xff]  ;;  %v824_v9 = vld [vmem:[%s1097_s1 + $0x68] sm:$0xff] }
   0x7   :  { %523 = vmatpush.bf16.msra.mxu2 %v834_v2  ;;  %v842_v6 = vld [vmem:[%s1097_s1 + $0xf8] sm:$0xff]  ;;  %v841_v7 = vld [vmem:[%s1097_s1 + $0xf0] sm:$0xff]  ;;  %v832_v10 = vld [vmem:[%s1097_s1 + $0xa8] sm:$0xff] }
   0x8   :  { %536 = vmatpush.bf16.msra.mxu3 %v842_v6  ;;  %v840_v11 = vld [vmem:[%s1097_s1 + $0xe8] sm:$0xff]  ;;  %v815_v12 = vld [vmem:[%s1097_s1 + $0x20] sm:$0xff]  ;;  %v814_v16 = vld [vmem:[%s1097_s1 + $0x18] sm:$0xff] }
   0x9   :  { %498 = vmatpush.bf16.msra.mxu0 %v817_v3  ;;  %v823_v13 = vld [vmem:[%s1097_s1 + $0x60] sm:$0xff]  ;;  %v822_v17 = vld [vmem:[%s1097_s1 + $0x58] sm:$0xff]  ;;  %v813_v20 = vld [vmem:[%s1097_s1 + $0x10] sm:$0xff] }
   0xa   :  { %511 = vmatpush.bf16.msra.mxu1 %v825_v4  ;;  %v831_v14 = vld [vmem:[%s1097_s1 + $0xa0] sm:$0xff]  ;;  %v830_v18 = vld [vmem:[%s1097_s1 + $0x98] sm:$0xff]  ;;  %v821_v21 = vld [vmem:[%s1097_s1 + $0x50] sm:$0xff] }
   0xb   :  { %524 = vmatpush.bf16.msra.mxu2 %v833_v5  ;;  %v839_v15 = vld [vmem:[%s1097_s1 + $0xe0] sm:$0xff]  ;;  %v838_v19 = vld [vmem:[%s1097_s1 + $0xd8] sm:$0xff]  ;;  %v829_v22 = vld [vmem:[%s1097_s1 + $0x90] sm:$0xff] }
   0xc   :  { %537 = vmatpush.bf16.msra.mxu3 %v841_v7  ;;  %v837_v23 = vld [vmem:[%s1097_s1 + $0xd0] sm:$0xff]  ;;  %v812_v24 = vld [vmem:[%s1097_s1 + $0x8] sm:$0xff]  ;;  %v29_v26 = vld [vmem:[%s1096_s0] sm:$0xff] }
   0xd   :  { %499 = vmatpush.bf16.msra.mxu0 %v816_v8  ;;  %v820_v25 = vld [vmem:[%s1097_s1 + $0x48] sm:$0xff]  ;;  %v149_v30 = vunpack.c.l.b16 %v29_v26  ;;  %v150_v31 = vunpack.c.h.b16 %v29_v26  ;;  %v811_v32 = vld [vmem:[%s1097_s1] sm:$0xff]  ;;  %v850_v36 = vld [vmem:[%s1097_s1 + $0x138] sm:$0xff] }
   0xe   :  { %512 = vmatpush.bf16.msra.mxu1 %v824_v9  ;;  %v828_v27 = vld [vmem:[%s1097_s1 + $0x88] sm:$0xff]  ;;  %v819_v33 = vld [vmem:[%s1097_s1 + $0x40] sm:$0xff]  ;;  %v858_v37 = vld [vmem:[%s1097_s1 + $0x178] sm:$0xff] }
   0xf   :  { %525 = vmatpush.bf16.msra.mxu2 %v832_v10  ;;  %v30_v28 = vld [vmem:[%s1096_s0 + $0x8] sm:$0xff]  ;;  %v827_v35 = vld [vmem:[%s1097_s1 + $0x80] sm:$0xff]  ;;  %v156_v39 = vpack.c.b16 %v149_v30, %v149_v30  ;;  %v157_v40 = vpack.c.b16 %v150_v31, %v150_v31  ;;  %v849_v44 = vld [vmem:[%s1097_s1 + $0x130] sm:$0xff] }
  0x10   :  { %538 = vmatpush.bf16.msra.mxu3 %v840_v11  ;;  %v836_v29 = vld [vmem:[%s1097_s1 + $0xc8] sm:$0xff]  ;;  %v151_v34 = vunpack.c.l.b16 %v30_v28  ;;  %v152_v41 = vunpack.c.h.b16 %v30_v28  ;;  %v835_v43 = vld [vmem:[%s1097_s1 + $0xc0] sm:$0xff]  ;;  %v857_v45 = vld [vmem:[%s1097_s1 + $0x170] sm:$0xff] }
  0x11   :  { %500 = vmatpush.bf16.msra.mxu0 %v815_v12  ;;  %v864_v38 = vld [vmem:[%s1097_s1 + $0x1a8] sm:$0xff]  ;;  %v863_v46 = vld [vmem:[%s1097_s1 + $0x1a0] sm:$0xff]  ;;  %v862_v50 = vld [vmem:[%s1097_s1 + $0x198] sm:$0xff] }
  0x12   :  { %513 = vmatpush.bf16.msra.mxu1 %v823_v13  ;;  %v158_v42 = vpack.c.b16 %v151_v34, %v151_v34  ;;  %v159_v47 = vpack.c.b16 %v152_v41, %v152_v41  ;;  %v848_v48 = vld [vmem:[%s1097_s1 + $0x128] sm:$0xff]  ;;  %v847_v51 = vld [vmem:[%s1097_s1 + $0x120] sm:$0xff]  ;;  %v861_v53 = vld [vmem:[%s1097_s1 + $0x190] sm:$0xff] }
  0x13   :  { %526 = vmatpush.bf16.msra.mxu2 %v831_v14  ;;  %v856_v49 = vld [vmem:[%s1097_s1 + $0x168] sm:$0xff]  ;;  %v855_v52 = vld [vmem:[%s1097_s1 + $0x160] sm:$0xff]  ;;  %v846_v54 = vld [vmem:[%s1097_s1 + $0x118] sm:$0xff] }
  0x14   :  { %539 = vmatpush.bf16.msra.mxu3 %v839_v15  ;;  %v854_v55 = vld [vmem:[%s1097_s1 + $0x158] sm:$0xff]  ;;  %v860_v56 = vld [vmem:[%s1097_s1 + $0x188] sm:$0xff]  ;;  %v845_v58 = vld [vmem:[%s1097_s1 + $0x110] sm:$0xff] }
  0x15   :  { %501 = vmatpush.bf16.msra.mxu0 %v814_v16  ;;  %v32_v57 = vld [vmem:[%s1096_s0 + $0x18] sm:$0xf]  ;;  %v853_v60 = vld [vmem:[%s1097_s1 + $0x150] sm:$0xff]  ;;  %v859_v61 = vld [vmem:[%s1097_s1 + $0x180] sm:$0xff] }
  0x16   :  { %514 = vmatpush.bf16.msra.mxu1 %v822_v17  ;;  %v155_v59 = vunpack.c.l.b16 %v32_v57  ;;  %v844_v63 = vld [vmem:[%s1097_s1 + $0x108] sm:$0xff]  ;;  %v31_v0 = vld [vmem:[%s1096_s0 + $0x10] sm:$0xff]  ;;  %v843_v3 = vld [vmem:[%s1097_s1 + $0x100] sm:$0xff] }
  0x17   :  { %527 = vmatpush.bf16.msra.mxu2 %v830_v18  ;;  %v852_v1 = vld [vmem:[%s1097_s1 + $0x148] sm:$0xff]  ;;  %v153_v2 = vunpack.c.l.b16 %v31_v0  ;;  %v154_v4 = vunpack.c.h.b16 %v31_v0  ;;  %v851_v5 = vld [vmem:[%s1097_s1 + $0x140] sm:$0xff] }
  0x18   :  { %540 = vmatpush.bf16.msra.mxu3 %v838_v19  ;;  %v162_v62 = vpack.c.b16 %v155_v59, %v155_v59  ;;  %v866_v14 = vld [vmem:[#allocation2] ss:$0 sm:$0xff] }
  0x19   :  { %502 = vmatpush.bf16.msra.mxu0 %v813_v20  ;;  %v160_v6 = vpack.c.b16 %v153_v2, %v153_v2  ;;  %v161_v7 = vpack.c.b16 %v154_v4, %v154_v4 }
  0x1a   :  { %515 = vmatpush.bf16.msra.mxu1 %v821_v21 }
  0x1b   :  { %528 = vmatpush.bf16.msra.mxu2 %v829_v22 }
  0x1c   :  { %541 = vmatpush.bf16.msra.mxu3 %v837_v23 }
  0x1d   :  { %503 = vmatpush.bf16.msra.mxu0 %v812_v24 }
  0x1e   :  { %516 = vmatpush.bf16.msra.mxu1 %v820_v25 }
  0x1f   :  { %529 = vmatpush.bf16.msra.mxu2 %v828_v27 }
  0x20   :  { %542 = vmatpush.bf16.msra.mxu3 %v836_v29 }
  0x21   :  { %504 = vmatpush.bf16.msra.mxu0 %v811_v32 }
  0x22   :  { %517 = vmatpush.bf16.msra.mxu1 %v819_v33 }
  0x23   :  { %530 = vmatpush.bf16.msra.mxu2 %v827_v35 }
  0x24   :  { %505 = vmatmul.bf16.vlgmr.msra.gmra.mxu0 %v156_v39  ;;  %543 = vmatpush.bf16.msra.mxu3 %v835_v43 }
  0x25   :  { %549 = vmatpush.bf16.msrb.mxu0 %v850_v36  ;;  %518 = vmatmul.bf16.vlgmr.msra.gmra.mxu1 %v157_v40 }
  0x26   :  { %562 = vmatpush.bf16.msrb.mxu1 %v858_v37  ;;  %531 = vmatmul.bf16.vlgmr.msra.gmra.mxu2 %v158_v42 }
  0x27   :  { %577 = vmatpush.bf16.msrb.mxu2 %v864_v38  ;;  %544 = vmatmul.bf16.vlgmr.msra.gmra.mxu3 %v159_v47 }
  0x29   :  { %550 = vmatpush.bf16.msrb.mxu0 %v849_v44 }
  0x2a   :  { %563 = vmatpush.bf16.msrb.mxu1 %v857_v45 }
  0x2b   :  { %578 = vmatpush.bf16.msrb.mxu2 %v863_v46 }
  0x2d   :  { %551 = vmatpush.bf16.msrb.mxu0 %v848_v48 }
  0x2e   :  { %564 = vmatpush.bf16.msrb.mxu1 %v856_v49 }
  0x2f   :  { %579 = vmatpush.bf16.msrb.mxu2 %v862_v50 }
  0x31   :  { %552 = vmatpush.bf16.msrb.mxu0 %v847_v51 }
  0x32   :  { %565 = vmatpush.bf16.msrb.mxu1 %v855_v52 }
  0x33   :  { %580 = vmatpush.bf16.msrb.mxu2 %v861_v53 }
  0x35   :  { %553 = vmatpush.bf16.msrb.mxu0 %v846_v54 }
  0x36   :  { %566 = vmatpush.bf16.msrb.mxu1 %v854_v55 }
  0x37   :  { %581 = vmatpush.bf16.msrb.mxu2 %v860_v56 }
  0x39   :  { %554 = vmatpush.bf16.msrb.mxu0 %v845_v58 }
  0x3a   :  { %567 = vmatpush.bf16.msrb.mxu1 %v853_v60 }
  0x3b   :  { %582 = vmatpush.bf16.msrb.mxu2 %v859_v61 }
  0x3d   :  { %555 = vmatpush.bf16.msrb.mxu0 %v844_v63 }
  0x3e   :  { %810 = vmatmul.msk.bf16.vlgmr.msrb.gmra.mxu2 %vm493_vm0, %v162_v62  ;;  %568 = vmatpush.bf16.msrb.mxu1 %v852_v1 }
  0x41   :  { %556 = vmatpush.bf16.msrb.mxu0 %v843_v3 }
  0x42   :  { %569 = vmatpush.bf16.msrb.mxu1 %v851_v5 }
  0x44   :  { %557 = vmatmul.bf16.vlgmr.msrb.gmra.mxu0 %v160_v6 }
  0x45   :  { %570 = vmatmul.bf16.vlgmr.msrb.gmra.mxu1 %v161_v7 }
  0xa1   :  { %v506_v8 = vpop.f32.mrf.mxu0 }
  0xa2   :  { %v519_v9 = vpop.f32.mrf.mxu1  ;;  %v507_v16 = vadd.f32 %v866_v14, %v506_v8 }
  0xa4   :  { %v520_v18 = vadd.f32 %v519_v9, %v507_v16 }
  0xa9   :  { %v532_v10 = vpop.f32.mrf.mxu2  ;;  %v508_v11 = vpop.f32.mrf.mxu0 }
  0xaa   :  { %v521_v12 = vpop.f32.mrf.mxu1  ;;  %v545_v13 = vpop.f32.mrf.mxu3  ;;  %v533_v19 = vadd.f32 %v532_v10, %v520_v18 }
  0xac   :  { %v546_v20 = vadd.f32 %v545_v13, %v533_v19 }
  0xb1   :  { %v534_v15 = vpop.f32.mrf.mxu2 }
  0xb2   :  { %v547_v17 = vpop.f32.mrf.mxu3 }
  0xc1   :  { %v584_v21 = vpop.f32.mrf.mxu2  ;;  %v558_v22 = vpop.f32.mrf.mxu0 }
  0xc2   :  { %v559_v23 = vadd.f32 %v558_v22, %v546_v20  ;;  %v571_v24 = vpop.f32.mrf.mxu1 }
  0xc4   :  { %v572_v25 = vadd.f32 %v571_v24, %v559_v23 }
  0xc6   :  { %v585_v26 = vadd.f32 %v584_v21, %v572_v25 }
  0xc8   :  { %588 = vst.msk [vmem:[%s1099_s3] sm:$0xff] %vm493_vm0, %v585_v26 }
  0xc9   :  { %v586_v27 = vpop.f32.mrf.mxu2  ;;  %v560_v28 = vpop.f32.mrf.mxu0 }
  0xca   :  { %v573_v29 = vpop.f32.mrf.mxu1 }
  0xcb   :  { %593 = vsyncpa [#allocation3], 1 }

// kernel: csn_forward.14
= control target key start
LH: loop header
LB: loop body
LE: loop exit
PB: predicated region body
PF: predicated region fallthrough
CT: control target
= control target key end

     0   :  { %8 = vsyncpa [#allocation3], 0  ;;  %s363_s15 = smov [#allocation2]   ;;  %s469_s0 = inlined_call_operand.vmem [shape: bf16[32,216], index: 0, kind: input, shape index: {}]   ;;  %s470_s1 = inlined_call_operand.vmem [shape: bf16[216,96], index: 1, kind: input, shape index: {}]   ;;  %s471_s2 = inlined_call_operand.hbm [shape: f32[1,96], index: 2, kind: input, shape index: {}]   ;;  %s472_s3 = inlined_call_operand.vmem [shape: f32[32,96], index: 3, kind: output, shape index: {}]  }
   0x1   :  { %s18_s14 = sshll.u32 %s471_s2, 4  ;;  %s20_s16 = sshll.u32 %s363_s15, 4  ;;  %s19_s14 = int_to_ptr.hbm [resolvable:$true] %s18_s14  ;;  %s21_s16 = int_to_ptr.vmem [resolvable:$true] %s20_s16 }
   0x2   :  { %23 = dma.hbm_to_vmem [thread:$0]  %s19_s14, 16, %s21_s16, [#allocation3]  }
   0x3   :  { %361 = dma.done.wait [#allocation3], 16  }
   0x4   :  { %362 = vsyncadd [#allocation3], 4294967280  ;;  %v315_v0 = vld [vmem:[%s470_s1 + $0x38] sm:$0xff]  ;;  %v59_v1 = vld [vmem:[%s470_s1 + $0x68] sm:$0xf]  ;;  %vm170_vm0 = vcmask 1043456  }
   0x5   :  { %v135_v2 = vunpack.c.l.b16 %v59_v1  ;;  %174 = vmatpush.bf16.msra.mxu0 %v315_v0  ;;  %321 = vmatpush.bf16.msra.mxu2 %v315_v0  ;;  %v314_v3 = vld [vmem:[%s470_s1 + $0x30] sm:$0xff]  ;;  %v320_v6 = vld [vmem:[%s470_s1 + $0x60] sm:$0xff]  ;;  %v313_v7 = vld [vmem:[%s470_s1 + $0x28] sm:$0xff]  ;;  %vm163_vm1 = vcmask 719872   ;;  %vm224_vm3 = vcmask 785408  }
   0x6   :  { %v319_v8 = vld [vmem:[%s470_s1 + $0x58] sm:$0xff]  ;;  %v312_v9 = vld [vmem:[%s470_s1 + $0x20] sm:$0xff]  ;;  %v318_v10 = vld [vmem:[%s470_s1 + $0x50] sm:$0xff] }
   0x7   :  { %v149_v4 = vpack.c.b16 %v135_v2, %v135_v2  ;;  %v311_v11 = vld [vmem:[%s470_s1 + $0x18] sm:$0xff]  ;;  %v317_v12 = vld [vmem:[%s470_s1 + $0x48] sm:$0xff]  ;;  %v310_v13 = vld [vmem:[%s470_s1 + $0x10] sm:$0xff] }
   0x8   :  { %v316_v14 = vld [vmem:[%s470_s1 + $0x40] sm:$0xff]  ;;  %v309_v15 = vld [vmem:[%s470_s1 + $0x8] sm:$0xff]  ;;  %v306_v16 = vld [vmem:[%s469_s0 + $0x14] sm:$0xf] }
   0x9   :  { %v172_v5 = vsel %vm170_vm0, %v149_v4, 0  ;;  %175 = vmatpush.bf16.msra.mxu0 %v314_v3  ;;  %322 = vmatpush.bf16.msra.mxu2 %v314_v3  ;;  %v246_v17 = vld [vmem:[%s469_s0 + $0x18] sm:$0xf0]  ;;  %v304_v18 = vld [vmem:[%s469_s0 + $0x4] sm:$0xf] }
   0xa   :  { %329 = vmatpush.bf16.msra.mxu3 %v172_v5  ;;  %195 = vmatpush.bf16.msra.mxu1 %v172_v5  ;;  %v238_v19 = vld [vmem:[%s469_s0 + $0x8] sm:$0xf0]  ;;  %v249_v20 = vor.u32 %v306_v16, %v246_v17  ;;  %v308_v21 = vld [vmem:[%s470_s1] sm:$0xff]  ;;  %v305_v23 = vld [vmem:[%s469_s0 + $0x4] sm:$0xf0] }
   0xb   :  { %v236_v22 = vld [vmem:[%s469_s0] sm:$0xf]  ;;  %v241_v24 = vor.u32 %v304_v18, %v238_v19  ;;  %v244_v25 = vld [vmem:[%s469_s0 + $0x10] sm:$0xf]  ;;  %v307_v26 = vld [vmem:[%s469_s0 + $0x14] sm:$0xf0] }
   0xc   :  { %v237_v27 = vor.u32 %v305_v23, %v236_v22  ;;  %v245_v28 = vor.u32 %v307_v26, %v244_v25  ;;  %v336_v29 = vld [vmem:[#allocation2] ss:$0 sm:$0xff] }
   0xd   :  { %176 = vmatpush.bf16.msra.mxu0 %v313_v7  ;;  %323 = vmatpush.bf16.msra.mxu2 %v313_v7 }
   0xe   :  { %330 = vmatpush.bf16.msra.mxu3 %v320_v6  ;;  %196 = vmatpush.bf16.msra.mxu1 %v320_v6 }
  0x11   :  { %177 = vmatpush.bf16.msra.mxu0 %v312_v9  ;;  %324 = vmatpush.bf16.msra.mxu2 %v312_v9 }
  0x12   :  { %331 = vmatpush.bf16.msra.mxu3 %v319_v8  ;;  %197 = vmatpush.bf16.msra.mxu1 %v319_v8 }
  0x15   :  { %178 = vmatpush.bf16.msra.mxu0 %v311_v11  ;;  %325 = vmatpush.bf16.msra.mxu2 %v311_v11 }
  0x16   :  { %332 = vmatpush.bf16.msra.mxu3 %v318_v10  ;;  %198 = vmatpush.bf16.msra.mxu1 %v318_v10 }
  0x19   :  { %179 = vmatpush.bf16.msra.mxu0 %v310_v13  ;;  %326 = vmatpush.bf16.msra.mxu2 %v310_v13 }
  0x1a   :  { %333 = vmatpush.bf16.msra.mxu3 %v317_v12  ;;  %199 = vmatpush.bf16.msra.mxu1 %v317_v12 }
  0x1d   :  { %180 = vmatpush.bf16.msra.mxu0 %v309_v15  ;;  %327 = vmatpush.bf16.msra.mxu2 %v309_v15 }
  0x1e   :  { %334 = vmatpush.bf16.msra.mxu3 %v316_v14  ;;  %200 = vmatpush.bf16.msra.mxu1 %v316_v14 }
  0x21   :  { %303 = vmatmul.msk.bf16.vlgmr.msra.gmra.mxu3 %vm163_vm1, %v249_v20  ;;  %181 = vmatpush.bf16.msra.mxu0 %v308_v21 }
  0x22   :  { %302 = vmatmul.msk.bf16.vlgmr.msra.gmra.mxu1 %vm163_vm1, %v241_v24  ;;  %328 = vmatpush.bf16.msra.mxu2 %v308_v21 }
  0x24   :  { %182 = vmatmul.bf16.vlgmr.msra.gmra.mxu0 %v237_v27 }
  0x25   :  { %187 = vmatmul.bf16.vlgmr.msra.gmra.mxu2 %v245_v28 }
  0x9f   :  { %v202_v31 = vpop.f32.mrf.mxu1 }
  0xa1   :  { %v183_v30 = vpop.f32.mrf.mxu0 }
  0xa2   :  { %v184_v32 = vadd.f32 %v336_v29, %v183_v30 }
  0xa4   :  { %v203_v33 = vadd.f32 %v202_v31, %v184_v32  ;;  %v207_v36 = vpop.f32.mrf.mxu3 }
  0xa6   :  { %vm212_vm2 = vcmp.ge.f32.partialorder %v203_v33, 0.0  ;;  %v216_v34 = vmul.f32 0.2, %v203_v33 }
  0xa7   :  { %v204_v42 = vpop.f32.mrf.mxu1 }
  0xa8   :  { %v220_v35 = vsel %vm212_vm2, %v203_v33, %v216_v34  ;;  %v188_v37 = vpop.f32.mrf.mxu2 }
  0xa9   :  { %225 = vst.msk [vmem:[%s472_s3] sm:$0xff] %vm224_vm3, %v220_v35  ;;  %v189_v38 = vadd.f32 %v336_v29, %v188_v37  ;;  %v185_v39 = vpop.f32.mrf.mxu0 }
  0xaa   :  { %v186_v40 = vadd.f32 %v336_v29, %v185_v39 }
  0xab   :  { %v208_v41 = vadd.f32 %v207_v36, %v189_v38 }
  0xac   :  { %v205_v43 = vadd.f32 %v204_v42, %v186_v40  ;;  %v209_v50 = vpop.f32.mrf.mxu3 }
  0xad   :  { %vm214_vm4 = vcmp.ge.f32.partialorder %v208_v41, 0.0  ;;  %v218_v44 = vmul.f32 0.2, %v208_v41 }
  0xae   :  { %vm213_vm5 = vcmp.ge.f32.partialorder %v205_v43, 0.0  ;;  %v217_v45 = vmul.f32 0.2, %v205_v43 }
  0xaf   :  { %v222_v46 = vsel %vm214_vm4, %v208_v41, %v218_v44 }
  0xb0   :  { %227 = vst.msk [vmem:[%s472_s3 + $0x10] sm:$0xff] %vm224_vm3, %v222_v46  ;;  %v221_v47 = vsel %vm213_vm5, %v205_v43, %v217_v45  ;;  %v190_v48 = vpop.f32.mrf.mxu2 }
  0xb1   :  { %226 = vst.msk [vmem:[%s472_s3 + $0x8] sm:$0xff] %vm224_vm3, %v221_v47  ;;  %v191_v49 = vadd.f32 %v336_v29, %v190_v48 }
  0xb3   :  { %v210_v51 = vadd.f32 %v209_v50, %v191_v49 }
  0xb5   :  { %vm215_vm6 = vcmp.ge.f32.partialorder %v210_v51, 0.0  ;;  %v219_v52 = vmul.f32 0.2, %v210_v51 }
  0xb7   :  { %v223_v53 = vsel %vm215_vm6, %v210_v51, %v219_v52 }
  0xb8   :  { %228 = vst.msk [vmem:[%s472_s3 + $0x18] sm:$0xff] %vm224_vm3, %v223_v53 }
  0xb9   :  { %233 = vsyncpa [#allocation3], 1 }

// kernel: csn_forward.15
= control target key start
LH: loop header
LB: loop body
LE: loop exit
PB: predicated region body
PF: predicated region fallthrough
CT: control target
= control target key end

     0   :  { %8 = vsyncpa [#allocation3], 0  ;;  %s1735_s15 = smov [#allocation2]   ;;  %s2583_s0 = inlined_call_operand.vmem [shape: bf16[32,864], index: 0, kind: input, shape index: {}]   ;;  %s2584_s1 = inlined_call_operand.vmem [shape: bf16[864,192], index: 1, kind: input, shape index: {}]   ;;  %s2585_s2 = inlined_call_operand.hbm [shape: f32[1,192], index: 2, kind: input, shape index: {}]   ;;  %s2586_s3 = inlined_call_operand.vmem [shape: f32[32,192], index: 3, kind: output, shape index: {}]  }
   0x1   :  { %s18_s14 = sshll.u32 %s2585_s2, 4  ;;  %s20_s16 = sshll.u32 %s1735_s15, 4  ;;  %s19_s14 = int_to_ptr.hbm [resolvable:$true] %s18_s14  ;;  %s21_s16 = int_to_ptr.vmem [resolvable:$true] %s20_s16 }
   0x2   :  { %23 = dma.hbm_to_vmem [thread:$0]  %s19_s14, 32, %s21_s16, [#allocation3]  }
   0x3   :  { %1733 = dma.done.wait [#allocation3], 32  }
   0x4   :  { %1734 = vsyncadd [#allocation3], 4294967264  ;;  %v1194_v0 = vld [vmem:[%s2584_s1 + $0x70] sm:$0xf]  ;;  %v1601_v1 = vld [vmem:[%s2584_s1 + $0x74] sm:$0xf0] }
   0x5   :  { %v1258_v2 = vld [vmem:[%s2584_s1 + $0xf0] sm:$0xf]  ;;  %v1195_v3 = vor.u32 %v1601_v1, %v1194_v0  ;;  %v1617_v4 = vld [vmem:[%s2584_s1 + $0xf4] sm:$0xf0]  ;;  %v1186_v11 = vld [vmem:[%s2584_s1 + $0x60] sm:$0xf] }
   0x6   :  { %v1322_v5 = vld [vmem:[%s2584_s1 + $0x170] sm:$0xf]  ;;  %v1633_v6 = vld [vmem:[%s2584_s1 + $0x174] sm:$0xf0]  ;;  %v1259_v7 = vor.u32 %v1617_v4, %v1258_v2  ;;  %v1599_v13 = vld [vmem:[%s2584_s1 + $0x64] sm:$0xf0] }
   0x7   :  { %v1323_v8 = vor.u32 %v1633_v6, %v1322_v5  ;;  %v1386_v9 = vld [vmem:[%s2584_s1 + $0x1f0] sm:$0xf]  ;;  %v1649_v10 = vld [vmem:[%s2584_s1 + $0x1f4] sm:$0xf0]  ;;  %776 = vmatpush.bf16.msra.mxu0 %v1195_v3  ;;  %v1250_v14 = vld [vmem:[%s2584_s1 + $0xe0] sm:$0xf]  ;;  %v1187_v16 = vor.u32 %v1599_v13, %v1186_v11 }
   0x8   :  { %v1387_v12 = vor.u32 %v1649_v10, %v1386_v9  ;;  %v1615_v15 = vld [vmem:[%s2584_s1 + $0xe4] sm:$0xf0]  ;;  %795 = vmatpush.bf16.msra.mxu1 %v1259_v7  ;;  %v1314_v18 = vld [vmem:[%s2584_s1 + $0x160] sm:$0xf]  ;;  %v1178_v23 = vld [vmem:[%s2584_s1 + $0x50] sm:$0xf] }
   0x9   :  { %814 = vmatpush.bf16.msra.mxu2 %v1323_v8  ;;  %v1251_v17 = vor.u32 %v1615_v15, %v1250_v14  ;;  %v1631_v19 = vld [vmem:[%s2584_s1 + $0x164] sm:$0xf0]  ;;  %v1378_v20 = vld [vmem:[%s2584_s1 + $0x1e0] sm:$0xf]  ;;  %v1597_v24 = vld [vmem:[%s2584_s1 + $0x54] sm:$0xf0] }
   0xa   :  { %833 = vmatpush.bf16.msra.mxu3 %v1387_v12  ;;  %v1315_v21 = vor.u32 %v1631_v19, %v1314_v18  ;;  %v1647_v22 = vld [vmem:[%s2584_s1 + $0x1e4] sm:$0xf0]  ;;  %v1242_v26 = vld [vmem:[%s2584_s1 + $0xd0] sm:$0xf]  ;;  %v1613_v27 = vld [vmem:[%s2584_s1 + $0xd4] sm:$0xf0]  ;;  %v1179_v29 = vor.u32 %v1597_v24, %v1178_v23 }
   0xb   :  { %v1379_v25 = vor.u32 %v1647_v22, %v1378_v20  ;;  %v1306_v28 = vld [vmem:[%s2584_s1 + $0x150] sm:$0xf]  ;;  %777 = vmatpush.bf16.msra.mxu0 %v1187_v16  ;;  %v1629_v30 = vld [vmem:[%s2584_s1 + $0x154] sm:$0xf0]  ;;  %v1243_v33 = vor.u32 %v1613_v27, %v1242_v26  ;;  %v1170_v35 = vld [vmem:[%s2584_s1 + $0x40] sm:$0xf] }
   0xc   :  { %v1370_v31 = vld [vmem:[%s2584_s1 + $0x1d0] sm:$0xf]  ;;  %v1645_v32 = vld [vmem:[%s2584_s1 + $0x1d4] sm:$0xf0]  ;;  %796 = vmatpush.bf16.msra.mxu1 %v1251_v17  ;;  %v1307_v34 = vor.u32 %v1629_v30, %v1306_v28  ;;  %v1595_v36 = vld [vmem:[%s2584_s1 + $0x44] sm:$0xf0] }
   0xd   :  { %815 = vmatpush.bf16.msra.mxu2 %v1315_v21  ;;  %v1234_v37 = vld [vmem:[%s2584_s1 + $0xc0] sm:$0xf]  ;;  %v1371_v38 = vor.u32 %v1645_v32, %v1370_v31  ;;  %v1611_v39 = vld [vmem:[%s2584_s1 + $0xc4] sm:$0xf0]  ;;  %v1171_v44 = vor.u32 %v1595_v36, %v1170_v35  ;;  %v1162_v47 = vld [vmem:[%s2584_s1 + $0x30] sm:$0xf] }
   0xe   :  { %834 = vmatpush.bf16.msra.mxu3 %v1379_v25  ;;  %v1298_v40 = vld [vmem:[%s2584_s1 + $0x140] sm:$0xf]  ;;  %v1627_v41 = vld [vmem:[%s2584_s1 + $0x144] sm:$0xf0]  ;;  %v1235_v45 = vor.u32 %v1611_v39, %v1234_v37  ;;  %v1593_v48 = vld [vmem:[%s2584_s1 + $0x34] sm:$0xf0] }
   0xf   :  { %v1362_v42 = vld [vmem:[%s2584_s1 + $0x1c0] sm:$0xf]  ;;  %v1643_v43 = vld [vmem:[%s2584_s1 + $0x1c4] sm:$0xf0]  ;;  %778 = vmatpush.bf16.msra.mxu0 %v1179_v29  ;;  %v1299_v46 = vor.u32 %v1627_v41, %v1298_v40  ;;  %v1226_v49 = vld [vmem:[%s2584_s1 + $0xb0] sm:$0xf]  ;;  %v1163_v56 = vor.u32 %v1593_v48, %v1162_v47 }
  0x10   :  { %797 = vmatpush.bf16.msra.mxu1 %v1243_v33  ;;  %v1363_v50 = vor.u32 %v1643_v43, %v1362_v42  ;;  %v1609_v51 = vld [vmem:[%s2584_s1 + $0xb4] sm:$0xf0]  ;;  %v1290_v52 = vld [vmem:[%s2584_s1 + $0x130] sm:$0xf]  ;;  %v1154_v59 = vld [vmem:[%s2584_s1 + $0x20] sm:$0xf] }
  0x11   :  { %816 = vmatpush.bf16.msra.mxu2 %v1307_v34  ;;  %v1625_v53 = vld [vmem:[%s2584_s1 + $0x134] sm:$0xf0]  ;;  %v1354_v54 = vld [vmem:[%s2584_s1 + $0x1b0] sm:$0xf]  ;;  %v1227_v57 = vor.u32 %v1609_v51, %v1226_v49  ;;  %v1591_v60 = vld [vmem:[%s2584_s1 + $0x24] sm:$0xf0] }
  0x12   :  { %835 = vmatpush.bf16.msra.mxu3 %v1371_v38  ;;  %v1641_v55 = vld [vmem:[%s2584_s1 + $0x1b4] sm:$0xf0]  ;;  %v1291_v58 = vor.u32 %v1625_v53, %v1290_v52  ;;  %v1218_v61 = vld [vmem:[%s2584_s1 + $0xa0] sm:$0xf]  ;;  %v1607_v63 = vld [vmem:[%s2584_s1 + $0xa4] sm:$0xf0]  ;;  %v1155_v4 = vor.u32 %v1591_v60, %v1154_v59 }
  0x13   :  { %779 = vmatpush.bf16.msra.mxu0 %v1171_v44  ;;  %v1355_v62 = vor.u32 %v1641_v55, %v1354_v54  ;;  %v1282_v0 = vld [vmem:[%s2584_s1 + $0x120] sm:$0xf]  ;;  %v1623_v1 = vld [vmem:[%s2584_s1 + $0x124] sm:$0xf0]  ;;  %v1219_v5 = vor.u32 %v1607_v63, %v1218_v61  ;;  %v1146_v7 = vld [vmem:[%s2584_s1 + $0x10] sm:$0xf] }
  0x14   :  { %798 = vmatpush.bf16.msra.mxu1 %v1235_v45  ;;  %v1346_v2 = vld [vmem:[%s2584_s1 + $0x1a0] sm:$0xf]  ;;  %v1639_v3 = vld [vmem:[%s2584_s1 + $0x1a4] sm:$0xf0]  ;;  %v1283_v6 = vor.u32 %v1623_v1, %v1282_v0  ;;  %v1589_v8 = vld [vmem:[%s2584_s1 + $0x14] sm:$0xf0] }
  0x15   :  { %817 = vmatpush.bf16.msra.mxu2 %v1299_v46  ;;  %v1210_v9 = vld [vmem:[%s2584_s1 + $0x90] sm:$0xf]  ;;  %v1347_v10 = vor.u32 %v1639_v3, %v1346_v2  ;;  %v1605_v11 = vld [vmem:[%s2584_s1 + $0x94] sm:$0xf0]  ;;  %v1138_v16 = vld [vmem:[%s2584_s1] sm:$0xf]  ;;  %v1147_v17 = vor.u32 %v1589_v8, %v1146_v7 }
  0x16   :  { %836 = vmatpush.bf16.msra.mxu3 %v1363_v50  ;;  %v1274_v12 = vld [vmem:[%s2584_s1 + $0x110] sm:$0xf]  ;;  %v1621_v13 = vld [vmem:[%s2584_s1 + $0x114] sm:$0xf0]  ;;  %v1587_v18 = vld [vmem:[%s2584_s1 + $0x4] sm:$0xf0]  ;;  %v1211_v21 = vor.u32 %v1605_v11, %v1210_v9 }
  0x17   :  { %780 = vmatpush.bf16.msra.mxu0 %v1163_v56  ;;  %v1338_v14 = vld [vmem:[%s2584_s1 + $0x190] sm:$0xf]  ;;  %v1637_v15 = vld [vmem:[%s2584_s1 + $0x194] sm:$0xf0]  ;;  %v1202_v19 = vld [vmem:[%s2584_s1 + $0x80] sm:$0xf]  ;;  %v1275_v22 = vor.u32 %v1621_v13, %v1274_v12  ;;  %v1139_v34 = vor.u32 %v1587_v18, %v1138_v16 }
  0x18   :  { %799 = vmatpush.bf16.msra.mxu1 %v1227_v57  ;;  %v1603_v20 = vld [vmem:[%s2584_s1 + $0x84] sm:$0xf0]  ;;  %v1266_v23 = vld [vmem:[%s2584_s1 + $0x100] sm:$0xf]  ;;  %v1339_v26 = vor.u32 %v1637_v15, %v1338_v14  ;;  %v1575_v29 = vld [vmem:[%s2583_s0 + $0x18] sm:$0xf0] }
  0x19   :  { %818 = vmatpush.bf16.msra.mxu2 %v1291_v58  ;;  %v1619_v24 = vld [vmem:[%s2584_s1 + $0x104] sm:$0xf0]  ;;  %v1330_v25 = vld [vmem:[%s2584_s1 + $0x180] sm:$0xf]  ;;  %v1572_v30 = vld [vmem:[%s2583_s0 + $0x4] sm:$0xf]  ;;  %v1203_v38 = vor.u32 %v1603_v20, %v1202_v19 }
  0x1a   :  { %837 = vmatpush.bf16.msra.mxu3 %v1355_v62  ;;  %v1635_v27 = vld [vmem:[%s2584_s1 + $0x184] sm:$0xf0]  ;;  %v1082_v28 = vld [vmem:[%s2583_s0] sm:$0xf]  ;;  %v1562_v32 = vld [vmem:[%s2584_s1 + $0x350] sm:$0xf]  ;;  %v1267_v39 = vor.u32 %v1619_v24, %v1266_v23 }
  0x1b   :  { %781 = vmatpush.bf16.msra.mxu0 %v1155_v4  ;;  %v1084_v31 = vld [vmem:[%s2583_s0 + $0x1c] sm:$0xf0]  ;;  %v1693_v33 = vld [vmem:[%s2584_s1 + $0x354] sm:$0xf0]  ;;  %v1090_v35 = vld [vmem:[%s2583_s0 + $0x8] sm:$0xf]  ;;  %v1331_v43 = vor.u32 %v1635_v27, %v1330_v25  ;;  %v1996_v48 = vor.u32 %v1575_v29, %v1082_v28 }
  0x1c   :  { %800 = vmatpush.bf16.msra.mxu1 %v1219_v5  ;;  %v1514_v36 = vld [vmem:[%s2584_s1 + $0x2f0] sm:$0xf]  ;;  %v1681_v37 = vld [vmem:[%s2584_s1 + $0x2f4] sm:$0xf0]  ;;  %v1576_v40 = vld [vmem:[%s2583_s0 + $0x20] sm:$0xf0]  ;;  %v1563_v44 = vor.u32 %v1693_v33, %v1562_v32  ;;  %v2007_v53 = vor.u32 %v1572_v30, %v1084_v31 }
  0x1d   :  { %819 = vmatpush.bf16.msra.mxu2 %v1283_v6  ;;  %v1573_v41 = vld [vmem:[%s2583_s0 + $0xc] sm:$0xf]  ;;  %v1092_v42 = vld [vmem:[%s2583_s0 + $0x24] sm:$0xf0]  ;;  %v1450_v45 = vld [vmem:[%s2584_s1 + $0x270] sm:$0xf]  ;;  %v1515_v49 = vor.u32 %v1681_v37, %v1514_v36  ;;  %v2009_v54 = vor.u32 %v1576_v40, %v1090_v35 }
  0x1e   :  { %838 = vmatpush.bf16.msra.mxu3 %v1347_v10  ;;  %v1665_v46 = vld [vmem:[%s2584_s1 + $0x274] sm:$0xf0]  ;;  %v1600_v47 = vld [vmem:[%s2584_s1 + $0x74] sm:$0xf]  ;;  %v1196_v50 = vld [vmem:[%s2584_s1 + $0x78] sm:$0xf0]  ;;  %v2017_v57 = vor.u32 %v1573_v41, %v1092_v42 }
  0x1f   :  { %782 = vmatpush.bf16.msra.mxu0 %v1147_v17  ;;  %v1554_v51 = vld [vmem:[%s2584_s1 + $0x340] sm:$0xf]  ;;  %v1691_v52 = vld [vmem:[%s2584_s1 + $0x344] sm:$0xf0]  ;;  %v1451_v58 = vor.u32 %v1665_v46, %v1450_v45  ;;  %v1199_v59 = vor.u32 %v1600_v47, %v1196_v50  ;;  %v1598_v62 = vld [vmem:[%s2584_s1 + $0x64] sm:$0xf] }
  0x20   :  { %801 = vmatpush.bf16.msra.mxu1 %v1211_v21  ;;  %v1506_v55 = vld [vmem:[%s2584_s1 + $0x2e0] sm:$0xf]  ;;  %v1679_v56 = vld [vmem:[%s2584_s1 + $0x2e4] sm:$0xf0]  ;;  %v1555_v63 = vor.u32 %v1691_v52, %v1554_v51  ;;  %v1188_v1 = vld [vmem:[%s2584_s1 + $0x68] sm:$0xf0] }
  0x21   :  { %820 = vmatpush.bf16.msra.mxu2 %v1275_v22  ;;  %v1442_v60 = vld [vmem:[%s2584_s1 + $0x260] sm:$0xf]  ;;  %v1663_v61 = vld [vmem:[%s2584_s1 + $0x264] sm:$0xf0]  ;;  %v1507_v0 = vor.u32 %v1679_v56, %v1506_v55  ;;  %v1546_v2 = vld [vmem:[%s2584_s1 + $0x330] sm:$0xf]  ;;  %v1191_v7 = vor.u32 %v1598_v62, %v1188_v1 }
  0x22   :  { %839 = vmatpush.bf16.msra.mxu3 %v1339_v26  ;;  %v1689_v3 = vld [vmem:[%s2584_s1 + $0x334] sm:$0xf0]  ;;  %v1498_v4 = vld [vmem:[%s2584_s1 + $0x2d0] sm:$0xf]  ;;  %v1443_v6 = vor.u32 %v1663_v61, %v1442_v60  ;;  %v1596_v10 = vld [vmem:[%s2584_s1 + $0x54] sm:$0xf] }
  0x23   :  { %783 = vmatpush.bf16.msra.mxu0 %v1139_v34  ;;  %v1677_v5 = vld [vmem:[%s2584_s1 + $0x2d4] sm:$0xf0]  ;;  %v1434_v8 = vld [vmem:[%s2584_s1 + $0x250] sm:$0xf]  ;;  %v1547_v11 = vor.u32 %v1689_v3, %v1546_v2  ;;  %v1180_v13 = vld [vmem:[%s2584_s1 + $0x58] sm:$0xf0] }
  0x24   :  { %802 = vmatpush.bf16.msra.mxu1 %v1203_v38  ;;  %v1661_v9 = vld [vmem:[%s2584_s1 + $0x254] sm:$0xf0]  ;;  %v1499_v12 = vor.u32 %v1677_v5, %v1498_v4  ;;  %v1538_v14 = vld [vmem:[%s2584_s1 + $0x320] sm:$0xf]  ;;  %v1687_v15 = vld [vmem:[%s2584_s1 + $0x324] sm:$0xf0]  ;;  %v1183_v22 = vor.u32 %v1596_v10, %v1180_v13 }
  0x25   :  { %821 = vmatpush.bf16.msra.mxu2 %v1267_v39  ;;  %v1490_v16 = vld [vmem:[%s2584_s1 + $0x2c0] sm:$0xf]  ;;  %v1675_v17 = vld [vmem:[%s2584_s1 + $0x2c4] sm:$0xf0]  ;;  %v1435_v18 = vor.u32 %v1661_v9, %v1434_v8  ;;  %v1594_v21 = vld [vmem:[%s2584_s1 + $0x44] sm:$0xf]  ;;  %v1539_v26 = vor.u32 %v1687_v15, %v1538_v14 }
  0x26   :  { %840 = vmatpush.bf16.msra.mxu3 %v1331_v43  ;;  %784 = vmatmul.bf16.vlgmr.msra.gmra.mxu0 %v1996_v48  ;;  %v1426_v19 = vld [vmem:[%s2584_s1 + $0x240] sm:$0xf]  ;;  %v1659_v20 = vld [vmem:[%s2584_s1 + $0x244] sm:$0xf0]  ;;  %v1172_v23 = vld [vmem:[%s2584_s1 + $0x48] sm:$0xf0]  ;;  %v1491_v27 = vor.u32 %v1675_v17, %v1490_v16 }
  0x27   :  { %803 = vmatmul.bf16.vlgmr.msra.gmra.mxu1 %v2007_v53  ;;  %852 = vmatpush.bf16.msrb.mxu0 %v1451_v58  ;;  %v1110_v24 = vld [vmem:[%s2583_s0 + $0x38] sm:$0xf]  ;;  %v1582_v25 = vld [vmem:[%s2583_s0 + $0x50] sm:$0xf0]  ;;  %v1579_v28 = vld [vmem:[%s2583_s0 + $0x3c] sm:$0xf]  ;;  %v1427_v35 = vor.u32 %v1659_v20, %v1426_v19  ;;  %v1175_v39 = vor.u32 %v1594_v21, %v1172_v23 }
  0x28   :  { %871 = vmatpush.bf16.msrb.mxu1 %v1515_v49  ;;  %822 = vmatmul.bf16.vlgmr.msra.gmra.mxu2 %v2009_v54  ;;  %v1112_v29 = vld [vmem:[%s2583_s0 + $0x54] sm:$0xf0]  ;;  %v1530_v30 = vld [vmem:[%s2584_s1 + $0x310] sm:$0xf]  ;;  %v1118_v32 = vld [vmem:[%s2583_s0 + $0x40] sm:$0xf] }
  0x29   :  { %892 = vmatpush.bf16.msrb.mxu2 %v1563_v44  ;;  %841 = vmatmul.bf16.vlgmr.msra.gmra.mxu3 %v2017_v57  ;;  %v1685_v31 = vld [vmem:[%s2584_s1 + $0x314] sm:$0xf0]  ;;  %v1482_v33 = vld [vmem:[%s2584_s1 + $0x2b0] sm:$0xf]  ;;  %v1583_v36 = vld [vmem:[%s2583_s0 + $0x58] sm:$0xf0]  ;;  %v2128_v44 = vor.u32 %v1582_v25, %v1110_v24  ;;  %v2139_v50 = vor.u32 %v1579_v28, %v1112_v29 }
  0x2a   :  { %909 = vmatpush.bf16.msrb.mxu3 %v1199_v59  ;;  %v1673_v34 = vld [vmem:[%s2584_s1 + $0x2b4] sm:$0xf0]  ;;  %v1580_v37 = vld [vmem:[%s2583_s0 + $0x44] sm:$0xf]  ;;  %v1120_v38 = vld [vmem:[%s2583_s0 + $0x5c] sm:$0xf0]  ;;  %v1531_v43 = vor.u32 %v1685_v31, %v1530_v30  ;;  %v2141_v51 = vor.u32 %v1583_v36, %v1118_v32 }
  0x2b   :  { %853 = vmatpush.bf16.msrb.mxu0 %v1443_v6  ;;  %v1418_v40 = vld [vmem:[%s2584_s1 + $0x230] sm:$0xf]  ;;  %v1657_v41 = vld [vmem:[%s2584_s1 + $0x234] sm:$0xf0]  ;;  %v1592_v42 = vld [vmem:[%s2584_s1 + $0x34] sm:$0xf]  ;;  %v1483_v45 = vor.u32 %v1673_v34, %v1482_v33  ;;  %v2149_v56 = vor.u32 %v1580_v37, %v1120_v38 }
  0x2c   :  { %872 = vmatpush.bf16.msrb.mxu1 %v1507_v0  ;;  %v1164_v46 = vld [vmem:[%s2584_s1 + $0x38] sm:$0xf0]  ;;  %v1522_v47 = vld [vmem:[%s2584_s1 + $0x300] sm:$0xf]  ;;  %v1683_v49 = vld [vmem:[%s2584_s1 + $0x304] sm:$0xf0]  ;;  %v1419_v58 = vor.u32 %v1657_v41, %v1418_v40 }
  0x2d   :  { %893 = vmatpush.bf16.msrb.mxu2 %v1555_v63  ;;  %v1474_v52 = vld [vmem:[%s2584_s1 + $0x2a0] sm:$0xf]  ;;  %v1671_v55 = vld [vmem:[%s2584_s1 + $0x2a4] sm:$0xf0]  ;;  %v1167_v60 = vor.u32 %v1592_v42, %v1164_v46  ;;  %v1523_v62 = vor.u32 %v1683_v49, %v1522_v47  ;;  %v1648_v63 = vld [vmem:[%s2584_s1 + $0x1f4] sm:$0xf] }
  0x2e   :  { %910 = vmatpush.bf16.msrb.mxu3 %v1191_v7  ;;  %v1410_v59 = vld [vmem:[%s2584_s1 + $0x220] sm:$0xf]  ;;  %v1655_v61 = vld [vmem:[%s2584_s1 + $0x224] sm:$0xf0]  ;;  %v1388_v0 = vld [vmem:[%s2584_s1 + $0x1f8] sm:$0xf0]  ;;  %v1475_v1 = vor.u32 %v1671_v55, %v1474_v52 }
  0x2f   :  { %854 = vmatpush.bf16.msrb.mxu0 %v1435_v18  ;;  %v1590_v2 = vld [vmem:[%s2584_s1 + $0x24] sm:$0xf]  ;;  %v1156_v3 = vld [vmem:[%s2584_s1 + $0x28] sm:$0xf0]  ;;  %v1391_v4 = vor.u32 %v1648_v63, %v1388_v0  ;;  %v1466_v5 = vld [vmem:[%s2584_s1 + $0x290] sm:$0xf]  ;;  %v1411_v8 = vor.u32 %v1655_v61, %v1410_v59 }
  0x30   :  { %873 = vmatpush.bf16.msrb.mxu1 %v1499_v12  ;;  %v1669_v6 = vld [vmem:[%s2584_s1 + $0x294] sm:$0xf0]  ;;  %v1646_v7 = vld [vmem:[%s2584_s1 + $0x1e4] sm:$0xf]  ;;  %v1380_v9 = vld [vmem:[%s2584_s1 + $0x1e8] sm:$0xf0]  ;;  %v1159_v10 = vor.u32 %v1590_v2, %v1156_v3 }
  0x31   :  { %894 = vmatpush.bf16.msrb.mxu2 %v1547_v11  ;;  %v1402_v11 = vld [vmem:[%s2584_s1 + $0x210] sm:$0xf]  ;;  %v1653_v12 = vld [vmem:[%s2584_s1 + $0x214] sm:$0xf0]  ;;  %v1467_v13 = vor.u32 %v1669_v6, %v1466_v5  ;;  %v1588_v14 = vld [vmem:[%s2584_s1 + $0x14] sm:$0xf]  ;;  %v1383_v17 = vor.u32 %v1646_v7, %v1380_v9 }
  0x32   :  { %911 = vmatpush.bf16.msrb.mxu3 %v1183_v22  ;;  %v1148_v15 = vld [vmem:[%s2584_s1 + $0x18] sm:$0xf0]  ;;  %v1458_v16 = vld [vmem:[%s2584_s1 + $0x280] sm:$0xf]  ;;  %v1667_v18 = vld [vmem:[%s2584_s1 + $0x284] sm:$0xf0]  ;;  %v1403_v21 = vor.u32 %v1653_v12, %v1402_v11 }
  0x33   :  { %855 = vmatpush.bf16.msrb.mxu0 %v1427_v35  ;;  %v1644_v19 = vld [vmem:[%s2584_s1 + $0x1d4] sm:$0xf]  ;;  %v1372_v20 = vld [vmem:[%s2584_s1 + $0x1d8] sm:$0xf0]  ;;  %v1394_v22 = vld [vmem:[%s2584_s1 + $0x200] sm:$0xf]  ;;  %v1151_v25 = vor.u32 %v1588_v14, %v1148_v15  ;;  %v1459_v29 = vor.u32 %v1667_v18, %v1458_v16 }
  0x34   :  { %874 = vmatpush.bf16.msrb.mxu1 %v1491_v27  ;;  %v1632_v23 = vld [vmem:[%s2584_s1 + $0x174] sm:$0xf]  ;;  %v1324_v24 = vld [vmem:[%s2584_s1 + $0x178] sm:$0xf0]  ;;  %v1586_v27 = vld [vmem:[%s2584_s1 + $0x4] sm:$0xf]  ;;  %v1375_v35 = vor.u32 %v1644_v19, %v1372_v20 }
  0x35   :  { %895 = vmatpush.bf16.msrb.mxu2 %v1539_v26  ;;  %v1651_v26 = vld [vmem:[%s2584_s1 + $0x204] sm:$0xf0]  ;;  %v1140_v28 = vld [vmem:[%s2584_s1 + $0x8] sm:$0xf0]  ;;  %v1098_v30 = vld [vmem:[%s2583_s0 + $0x10] sm:$0xf]  ;;  %v1327_v36 = vor.u32 %v1632_v23, %v1324_v24 }
  0x36   :  { %912 = vmatpush.bf16.msrb.mxu3 %v1175_v39  ;;  %789 = vmatmul.bf16.gmra.mxu0 %v2128_v44  ;;  %v1577_v31 = vld [vmem:[%s2583_s0 + $0x28] sm:$0xf0]  ;;  %v1616_v32 = vld [vmem:[%s2584_s1 + $0xf4] sm:$0xf]  ;;  %v1260_v33 = vld [vmem:[%s2584_s1 + $0xf8] sm:$0xf0]  ;;  %v1395_v40 = vor.u32 %v1651_v26, %v1394_v22 }
  0x37   :  { %808 = vmatmul.bf16.gmra.mxu1 %v2139_v50  ;;  %856 = vmatpush.bf16.msrb.mxu0 %v1419_v58  ;;  %v1664_v34 = vld [vmem:[%s2584_s1 + $0x274] sm:$0xf]  ;;  %v1452_v37 = vld [vmem:[%s2584_s1 + $0x278] sm:$0xf0]  ;;  %v1642_v38 = vld [vmem:[%s2584_s1 + $0x1c4] sm:$0xf]  ;;  %v1263_v47 = vor.u32 %v1616_v32, %v1260_v33 }
  0x38   :  { %875 = vmatpush.bf16.msrb.mxu1 %v1483_v45  ;;  %827 = vmatmul.bf16.gmra.mxu2 %v2141_v51  ;;  %v1364_v39 = vld [vmem:[%s2584_s1 + $0x1c8] sm:$0xf0]  ;;  %v1574_v41 = vld [vmem:[%s2583_s0 + $0x14] sm:$0xf]  ;;  %v1100_v42 = vld [vmem:[%s2583_s0 + $0x2c] sm:$0xf0]  ;;  %v1143_v45 = vor.u32 %v1586_v27, %v1140_v28  ;;  %v1455_v55 = vor.u32 %v1664_v34, %v1452_v37 }
  0x39   :  { %896 = vmatpush.bf16.msrb.mxu2 %v1531_v43  ;;  %846 = vmatmul.bf16.gmra.mxu3 %v2149_v56  ;;  %v1106_v43 = vld [vmem:[%s2583_s0 + $0x18] sm:$0xf]  ;;  %v1578_v46 = vld [vmem:[%s2583_s0 + $0x30] sm:$0xf0]  ;;  %v1614_v49 = vld [vmem:[%s2584_s1 + $0xe4] sm:$0xf]  ;;  %v1367_v61 = vor.u32 %v1642_v38, %v1364_v39  ;;  %v2280_v63 = vor.u32 %v1574_v41, %v1100_v42 }
  0x3a   :  { %913 = vmatpush.bf16.msrb.mxu3 %v1167_v60  ;;  %v1252_v52 = vld [vmem:[%s2584_s1 + $0xe8] sm:$0xf0]  ;;  %v1630_v58 = vld [vmem:[%s2584_s1 + $0x164] sm:$0xf]  ;;  %v1356_v2 = vld [vmem:[%s2584_s1 + $0x1b8] sm:$0xf0]  ;;  %v2291_v3 = vor.u32 %v1578_v46, %v1106_v43 }
  0x3b   :  { %857 = vmatpush.bf16.msrb.mxu0 %v1411_v8  ;;  %v1316_v59 = vld [vmem:[%s2584_s1 + $0x168] sm:$0xf0]  ;;  %v1662_v60 = vld [vmem:[%s2584_s1 + $0x264] sm:$0xf]  ;;  %vm769_vm0 = vcmask 785408   ;;  %vm1067_vm6 = vcmask 523264  }
  0x3c   :  { %876 = vmatpush.bf16.msrb.mxu1 %v1475_v1  ;;  %v1444_v0 = vld [vmem:[%s2584_s1 + $0x268] sm:$0xf0]  ;;  %v1640_v1 = vld [vmem:[%s2584_s1 + $0x1b4] sm:$0xf]  ;;  %v1319_v5 = vor.u32 %v1630_v58, %v1316_v59  ;;  %v1244_v7 = vld [vmem:[%s2584_s1 + $0xd8] sm:$0xf0] }
  0x3d   :  { %897 = vmatpush.bf16.msrb.mxu2 %v1523_v62  ;;  %v2278_v62 = vor.u32 %v1577_v31, %v1098_v30  ;;  %v1612_v6 = vld [vmem:[%s2584_s1 + $0xd4] sm:$0xf]  ;;  %v1447_v8 = vor.u32 %v1662_v60, %v1444_v0  ;;  %v1359_v12 = vor.u32 %v1640_v1, %v1356_v2  ;;  %v1638_v14 = vld [vmem:[%s2584_s1 + $0x1a4] sm:$0xf]  ;;  %v1348_v15 = vld [vmem:[%s2584_s1 + $0x1a8] sm:$0xf0] }
  0x3e   :  { %914 = vmatpush.bf16.msrb.mxu3 %v1159_v10  ;;  %v1628_v9 = vld [vmem:[%s2584_s1 + $0x154] sm:$0xf]  ;;  %v1308_v10 = vld [vmem:[%s2584_s1 + $0x158] sm:$0xf0]  ;;  %v1247_v16 = vor.u32 %v1612_v6, %v1244_v7  ;;  %v1610_v18 = vld [vmem:[%s2584_s1 + $0xc4] sm:$0xf]  ;;  %v1351_v23 = vor.u32 %v1638_v14, %v1348_v15 }
  0x3f   :  { %858 = vmatpush.bf16.msrb.mxu0 %v1403_v21  ;;  %v1660_v11 = vld [vmem:[%s2584_s1 + $0x254] sm:$0xf]  ;;  %v1236_v19 = vld [vmem:[%s2584_s1 + $0xc8] sm:$0xf0]  ;;  %v1626_v21 = vld [vmem:[%s2584_s1 + $0x144] sm:$0xf] }
  0x40   :  { %877 = vmatpush.bf16.msrb.mxu1 %v1467_v13  ;;  %v1436_v13 = vld [vmem:[%s2584_s1 + $0x258] sm:$0xf0]  ;;  %v1658_v22 = vld [vmem:[%s2584_s1 + $0x244] sm:$0xf]  ;;  %v1428_v24 = vld [vmem:[%s2584_s1 + $0x248] sm:$0xf0]  ;;  %v1239_v27 = vor.u32 %v1610_v18, %v1236_v19 }
  0x41   :  { %966 = vmatpush.bf16.msra.mxu2 %v1391_v4  ;;  %v1255_v4 = vor.u32 %v1614_v49, %v1252_v52  ;;  %v1439_v20 = vor.u32 %v1660_v11, %v1436_v13  ;;  %v1340_v26 = vld [vmem:[%s2584_s1 + $0x198] sm:$0xf0]  ;;  %v1431_v31 = vor.u32 %v1658_v22, %v1428_v24  ;;  %v1126_v32 = vld [vmem:[%s2583_s0 + $0x48] sm:$0xf]  ;;  %v1584_v33 = vld [vmem:[%s2583_s0 + $0x60] sm:$0xf0] }
  0x42   :  { %915 = vmatpush.bf16.msrb.mxu3 %v1151_v25  ;;  %v1636_v25 = vld [vmem:[%s2584_s1 + $0x194] sm:$0xf]  ;;  %v1228_v30 = vld [vmem:[%s2584_s1 + $0xb8] sm:$0xf0]  ;;  %v1634_v39 = vld [vmem:[%s2584_s1 + $0x184] sm:$0xf]  ;;  %v2403_v0 = vor.u32 %v1584_v33, %v1126_v32 }
  0x43   :  { %859 = vmatpush.bf16.msrb.mxu0 %v1395_v40  ;;  %v1624_v34 = vld [vmem:[%s2584_s1 + $0x134] sm:$0xf]  ;;  %v1343_v37 = vor.u32 %v1636_v25, %v1340_v26  ;;  %v1420_v38 = vld [vmem:[%s2584_s1 + $0x238] sm:$0xf0]  ;;  %v1332_v40 = vld [vmem:[%s2584_s1 + $0x188] sm:$0xf0] }
  0x44   :  { %878 = vmatpush.bf16.msrb.mxu1 %v1459_v29  ;;  %v1608_v29 = vld [vmem:[%s2584_s1 + $0xb4] sm:$0xf]  ;;  %v1581_v41 = vld [vmem:[%s2583_s0 + $0x4c] sm:$0xf]  ;;  %v1128_v42 = vld [vmem:[%s2583_s0 + $0x64] sm:$0xf0] }
  0x45   :  { %967 = vmatpush.bf16.msra.mxu2 %v1383_v17  ;;  %v1311_v17 = vor.u32 %v1628_v9, %v1308_v10  ;;  %v1134_v43 = vld [vmem:[%s2583_s0 + $0x50] sm:$0xf]  ;;  %v1231_v46 = vor.u32 %v1608_v29, %v1228_v30  ;;  %v1606_v49 = vld [vmem:[%s2584_s1 + $0xa4] sm:$0xf]  ;;  %v1220_v52 = vld [vmem:[%s2584_s1 + $0xa8] sm:$0xf0]  ;;  %v2405_v1 = vor.u32 %v1581_v41, %v1128_v42 }
  0x46   :  { %916 = vmatpush.bf16.msrb.mxu3 %v1143_v45  ;;  %860 = vmatmul.bf16.vlgmr.msrb.gmra.mxu0 %v2278_v62  ;;  %v1585_v45 = vld [vmem:[%s2583_s0 + $0x68] sm:$0xf0]  ;;  %v1622_v58 = vld [vmem:[%s2584_s1 + $0x124] sm:$0xf]  ;;  %v1223_v7 = vor.u32 %v1606_v49, %v1220_v52  ;;  %v1604_v9 = vld [vmem:[%s2584_s1 + $0x94] sm:$0xf] }
  0x47   :  { %928 = vmatpush.bf16.msra.mxu0 %v1263_v47  ;;  %879 = vmatmul.bf16.vlgmr.msrb.gmra.mxu1 %v2280_v63  ;;  %v1284_v59 = vld [vmem:[%s2584_s1 + $0x128] sm:$0xf0]  ;;  %v1654_v60 = vld [vmem:[%s2584_s1 + $0x224] sm:$0xf]  ;;  %v2416_v6 = vor.u32 %v1585_v45, %v1134_v43  ;;  %v1212_v10 = vld [vmem:[%s2584_s1 + $0x98] sm:$0xf0] }
  0x48   :  { %947 = vmatpush.bf16.msra.mxu1 %v1327_v36  ;;  %1568 = vmatmul.msk.bf16.vlgmr.msrb.gmra.mxu2 %vm769_vm0, %v2291_v3  ;;  %v1656_v36 = vld [vmem:[%s2584_s1 + $0x234] sm:$0xf]  ;;  %v1412_v2 = vld [vmem:[%s2584_s1 + $0x228] sm:$0xf0]  ;;  %v1276_v13 = vld [vmem:[%s2584_s1 + $0x118] sm:$0xf0]  ;;  %v1215_v19 = vor.u32 %v1604_v9, %v1212_v10 }
  0x49   :  { %968 = vmatpush.bf16.msra.mxu2 %v1375_v35  ;;  %917 = vmatmul.bf16.vlgmr.msrb.gmra.mxu3 %v1996_v48  ;;  %v1300_v48 = vld [vmem:[%s2584_s1 + $0x148] sm:$0xf0]  ;;  %v1292_v35 = vld [vmem:[%s2584_s1 + $0x138] sm:$0xf0]  ;;  %v1415_v11 = vor.u32 %v1654_v60, %v1412_v2  ;;  %v1652_v14 = vld [vmem:[%s2584_s1 + $0x214] sm:$0xf] }
  0x4a   :  { %985 = vmatpush.bf16.msra.mxu3 %v1455_v55  ;;  %v1303_v28 = vor.u32 %v1626_v21, %v1300_v48  ;;  %v1295_v47 = vor.u32 %v1624_v34, %v1292_v35  ;;  %v1423_v55 = vor.u32 %v1656_v36, %v1420_v38  ;;  %v1508_v18 = vld [vmem:[%s2584_s1 + $0x2e8] sm:$0xf0]  ;;  %v1602_v21 = vld [vmem:[%s2584_s1 + $0x84] sm:$0xf]  ;;  %v1676_v29 = vld [vmem:[%s2584_s1 + $0x2d4] sm:$0xf] }
  0x4b   :  { %929 = vmatpush.bf16.msra.mxu0 %v1255_v4  ;;  %v1680_v4 = vld [vmem:[%s2584_s1 + $0x2f4] sm:$0xf]  ;;  %v1204_v22 = vld [vmem:[%s2584_s1 + $0x88] sm:$0xf0]  ;;  %v1650_v25 = vld [vmem:[%s2584_s1 + $0x204] sm:$0xf] }
  0x4c   :  { %948 = vmatpush.bf16.msra.mxu1 %v1319_v5  ;;  %v1516_v5 = vld [vmem:[%s2584_s1 + $0x2f8] sm:$0xf0]  ;;  %v1396_v26 = vld [vmem:[%s2584_s1 + $0x208] sm:$0xf0]  ;;  %v1690_v36 = vld [vmem:[%s2584_s1 + $0x344] sm:$0xf] }
  0x4d   :  { %969 = vmatpush.bf16.msra.mxu2 %v1367_v61  ;;  %v1335_v61 = vor.u32 %v1634_v39, %v1332_v40  ;;  %v1519_v15 = vor.u32 %v1680_v4, %v1516_v5  ;;  %v1500_v30 = vld [vmem:[%s2584_s1 + $0x2d8] sm:$0xf0]  ;;  %v1399_v33 = vor.u32 %v1650_v25, %v1396_v26  ;;  %v1674_v38 = vld [vmem:[%s2584_s1 + $0x2c4] sm:$0xf]  ;;  %v1492_v39 = vld [vmem:[%s2584_s1 + $0x2c8] sm:$0xf0] }
  0x4e   :  { %986 = vmatpush.bf16.msra.mxu3 %v1447_v8  ;;  %v1287_v8 = vor.u32 %v1622_v58, %v1284_v59  ;;  %v1503_v35 = vor.u32 %v1676_v29, %v1500_v30  ;;  %v1495_v41 = vor.u32 %v1674_v38, %v1492_v39  ;;  %v1688_v42 = vld [vmem:[%s2584_s1 + $0x334] sm:$0xf]  ;;  %v1548_v43 = vld [vmem:[%s2584_s1 + $0x338] sm:$0xf0]  ;;  %v1686_v52 = vld [vmem:[%s2584_s1 + $0x324] sm:$0xf] }
  0x4f   :  { %930 = vmatpush.bf16.msra.mxu0 %v1247_v16  ;;  %v1404_v16 = vld [vmem:[%s2584_s1 + $0x218] sm:$0xf0]  ;;  %v1672_v45 = vld [vmem:[%s2584_s1 + $0x2b4] sm:$0xf]  ;;  %v1666_v5 = vld [vmem:[%s2584_s1 + $0x284] sm:$0xf] }
  0x50   :  { %949 = vmatpush.bf16.msra.mxu1 %v1311_v17  ;;  %v1678_v17 = vld [vmem:[%s2584_s1 + $0x2e4] sm:$0xf]  ;;  %v1407_v48 = vor.u32 %v1652_v14, %v1404_v16  ;;  %v1668_v58 = vld [vmem:[%s2584_s1 + $0x294] sm:$0xf]  ;;  %v1468_v59 = vld [vmem:[%s2584_s1 + $0x298] sm:$0xf0] }
  0x51   :  { %970 = vmatpush.bf16.msra.mxu2 %v1359_v12  ;;  %v1620_v12 = vld [vmem:[%s2584_s1 + $0x114] sm:$0xf]  ;;  %v1511_v24 = vor.u32 %v1678_v17, %v1508_v18  ;;  %v1471_v2 = vor.u32 %v1668_v58, %v1468_v59  ;;  %v1524_v9 = vld [vmem:[%s2584_s1 + $0x308] sm:$0xf0]  ;;  %v2551_v14 = vld [vmem:[#allocation2] sm:$0x3] }
  0x52   :  { %987 = vmatpush.bf16.msra.mxu3 %v1439_v20  ;;  %v1279_v20 = vor.u32 %v1620_v12, %v1276_v13  ;;  %v1684_v60 = vld [vmem:[%s2584_s1 + $0x314] sm:$0xf] }
  0x53   :  { %931 = vmatpush.bf16.msra.mxu0 %v1239_v27  ;;  %v1692_v27 = vld [vmem:[%s2584_s1 + $0x354] sm:$0xf] }
  0x54   :  { %950 = vmatpush.bf16.msra.mxu1 %v1303_v28  ;;  %v1564_v28 = vld [vmem:[%s2584_s1 + $0x358] sm:$0xf0] }
  0x55   :  { %971 = vmatpush.bf16.msra.mxu2 %v1351_v23  ;;  %v1618_v23 = vld [vmem:[%s2584_s1 + $0x104] sm:$0xf]  ;;  %v1567_v34 = vor.u32 %v1692_v27, %v1564_v28 }
  0x56   :  { %988 = vmatpush.bf16.msra.mxu3 %v1431_v31  ;;  %865 = vmatmul.bf16.gmra.mxu0 %v2403_v0  ;;  %v1207_v31 = vor.u32 %v1602_v21, %v1204_v22 }
  0x57   :  { %932 = vmatpush.bf16.msra.mxu0 %v1231_v46  ;;  %884 = vmatmul.bf16.gmra.mxu1 %v2405_v1  ;;  %v1484_v46 = vld [vmem:[%s2584_s1 + $0x2b8] sm:$0xf0] }
  0x58   :  { %951 = vmatpush.bf16.msra.mxu1 %v1295_v47  ;;  %1569 = vmatmul.msk.bf16.gmra.mxu2 %vm769_vm0, %v2416_v6  ;;  %v1551_v47 = vor.u32 %v1688_v42, %v1548_v43  ;;  %v1487_v49 = vor.u32 %v1672_v45, %v1484_v46 }
  0x59   :  { %972 = vmatpush.bf16.msra.mxu2 %v1343_v37  ;;  %922 = vmatmul.bf16.gmra.mxu3 %v2128_v44  ;;  %v1268_v44 = vld [vmem:[%s2584_s1 + $0x108] sm:$0xf0] }
  0x5a   :  { %989 = vmatpush.bf16.msra.mxu3 %v1423_v55  ;;  %v1271_v32 = vor.u32 %v1618_v23, %v1268_v44  ;;  %v1556_v37 = vld [vmem:[%s2584_s1 + $0x348] sm:$0xf0] }
  0x5b   :  { %933 = vmatpush.bf16.msra.mxu0 %v1223_v7  ;;  %v1559_v40 = vor.u32 %v1690_v36, %v1556_v37  ;;  %v1460_v7 = vld [vmem:[%s2584_s1 + $0x288] sm:$0xf0] }
  0x5c   :  { %952 = vmatpush.bf16.msra.mxu1 %v1287_v8  ;;  %v1682_v8 = vld [vmem:[%s2584_s1 + $0x304] sm:$0xf]  ;;  %v1463_v10 = vor.u32 %v1666_v5, %v1460_v7 }
  0x5d   :  { %973 = vmatpush.bf16.msra.mxu2 %v1335_v61  ;;  %v1532_v61 = vld [vmem:[%s2584_s1 + $0x318] sm:$0xf0] }
  0x5e   :  { %990 = vmatpush.bf16.msra.mxu3 %v1415_v11  ;;  %v1535_v4 = vor.u32 %v1684_v60, %v1532_v61  ;;  %v1527_v11 = vor.u32 %v1682_v8, %v1524_v9 }
  0x5f   :  { %934 = vmatpush.bf16.msra.mxu0 %v1215_v19 }
  0x60   :  { %953 = vmatpush.bf16.msra.mxu1 %v1279_v20 }
  0x61   :  { %1694 = vmatpush.bf16.msrb.mxu2 %v1519_v15 }
  0x62   :  { %991 = vmatpush.bf16.msra.mxu3 %v1407_v48 }
  0x63   :  { %935 = vmatpush.bf16.msra.mxu0 %v1207_v31 }
  0x64   :  { %954 = vmatpush.bf16.msra.mxu1 %v1271_v32 }
  0x65   :  { %1695 = vmatpush.bf16.msrb.mxu2 %v1511_v24 }
  0x66   :  { %992 = vmatpush.bf16.msra.mxu3 %v1399_v33  ;;  %936 = vmatmul.bf16.vlgmr.msra.gmra.mxu0 %v2007_v53  ;;  %v1540_v53 = vld [vmem:[%s2584_s1 + $0x328] sm:$0xf0] }
  0x67   :  { %1004 = vmatpush.bf16.msrb.mxu0 %v1519_v15  ;;  %955 = vmatmul.bf16.vlgmr.msra.gmra.mxu1 %v2009_v54  ;;  %v1670_v54 = vld [vmem:[%s2584_s1 + $0x2a4] sm:$0xf] }
  0x68   :  { %1025 = vmatpush.bf16.msrb.mxu1 %v1567_v34  ;;  %974 = vmatmul.bf16.vlgmr.msra.gmra.mxu2 %v2017_v57  ;;  %v1476_v57 = vld [vmem:[%s2584_s1 + $0x2a8] sm:$0xf0] }
  0x69   :  { %1696 = vmatpush.bf16.msrb.mxu2 %v1503_v35  ;;  %993 = vmatmul.bf16.vlgmr.msra.gmra.mxu3 %v2278_v62  ;;  %v1543_v62 = vor.u32 %v1686_v52, %v1540_v53  ;;  %v1479_v55 = vor.u32 %v1670_v54, %v1476_v57 }
  0x6a   :  { %1702 = vmatpush.bf16.msrb.mxu3 %v1567_v34 }
  0x6b   :  { %1005 = vmatpush.bf16.msrb.mxu0 %v1511_v24 }
  0x6c   :  { %1026 = vmatpush.bf16.msrb.mxu1 %v1559_v40 }
  0x6d   :  { %1697 = vmatpush.bf16.msrb.mxu2 %v1495_v41 }
  0x6e   :  { %1703 = vmatpush.bf16.msrb.mxu3 %v1559_v40 }
  0x6f   :  { %1006 = vmatpush.bf16.msrb.mxu0 %v1503_v35 }
  0x70   :  { %1027 = vmatpush.bf16.msrb.mxu1 %v1551_v47 }
  0x71   :  { %1698 = vmatpush.bf16.msrb.mxu2 %v1487_v49 }
  0x72   :  { %1704 = vmatpush.bf16.msrb.mxu3 %v1551_v47 }
  0x73   :  { %1007 = vmatpush.bf16.msrb.mxu0 %v1495_v41 }
  0x74   :  { %1028 = vmatpush.bf16.msrb.mxu1 %v1543_v62 }
  0x75   :  { %1699 = vmatpush.bf16.msrb.mxu2 %v1479_v55 }
  0x76   :  { %1705 = vmatpush.bf16.msrb.mxu3 %v1543_v62  ;;  %941 = vmatmul.bf16.gmra.mxu0 %v2139_v50 }
  0x77   :  { %1008 = vmatpush.bf16.msrb.mxu0 %v1487_v49  ;;  %960 = vmatmul.bf16.gmra.mxu1 %v2141_v51 }
  0x78   :  { %1029 = vmatpush.bf16.msrb.mxu1 %v1535_v4  ;;  %979 = vmatmul.bf16.gmra.mxu2 %v2149_v56 }
  0x79   :  { %1700 = vmatpush.bf16.msrb.mxu2 %v1471_v2  ;;  %998 = vmatmul.bf16.gmra.mxu3 %v2403_v0 }
  0x7a   :  { %1706 = vmatpush.bf16.msrb.mxu3 %v1535_v4 }
  0x7b   :  { %1009 = vmatpush.bf16.msrb.mxu0 %v1479_v55 }
  0x7c   :  { %1030 = vmatpush.bf16.msrb.mxu1 %v1527_v11 }
  0x7d   :  { %1701 = vmatpush.bf16.msrb.mxu2 %v1463_v10 }
  0x7e   :  { %1707 = vmatpush.bf16.msrb.mxu3 %v1527_v11 }
  0x7f   :  { %1010 = vmatpush.bf16.msrb.mxu0 %v1471_v2 }
  0x83   :  { %1011 = vmatpush.bf16.msrb.mxu0 %v1463_v10 }
  0x86   :  { %1012 = vmatmul.bf16.vlgmr.msrb.gmra.mxu0 %v2280_v63  ;;  %v155_v63 = vperm.slane %v2551_v14, 0 }
  0x87   :  { %1570 = vmatmul.msk.bf16.vlgmr.msrb.gmra.mxu1 %vm769_vm0, %v2291_v3 }
  0x88   :  { %1017 = vmatmul.bf16.vlgmr.msrb.gmra.mxu2 %v2405_v1 }
  0x89   :  { %1571 = vmatmul.msk.bf16.vlgmr.msrb.gmra.mxu3 %vm769_vm0, %v2416_v6 }
  0xa3   :  { %v785_v50 = vpop.f32.mrf.mxu0 }
  0xa4   :  { %v804_v51 = vpop.f32.mrf.mxu1  ;;  %v786_v3 = vadd.f32 %v785_v50, %v155_v63 }
  0xa6   :  { %v805_v21 = vadd.f32 %v804_v51, %v786_v3 }
  0xab   :  { %v823_v56 = vpop.f32.mrf.mxu2  ;;  %v787_v0 = vpop.f32.mrf.mxu0 }
  0xac   :  { %v842_v12 = vpop.f32.mrf.mxu3  ;;  %v806_v13 = vpop.f32.mrf.mxu1  ;;  %v824_v48 = vadd.f32 %v823_v56, %v805_v21  ;;  %v788_v22 = vadd.f32 %v787_v0, %v155_v63 }
  0xae   :  { %v843_v24 = vadd.f32 %v842_v12, %v824_v48  ;;  %v807_v27 = vadd.f32 %v806_v13, %v788_v22 }
  0xb3   :  { %v825_v15 = vpop.f32.mrf.mxu2  ;;  %v790_v17 = vpop.f32.mrf.mxu0 }
  0xb4   :  { %v844_v16 = vpop.f32.mrf.mxu3  ;;  %v809_v18 = vpop.f32.mrf.mxu1  ;;  %v826_v29 = vadd.f32 %v825_v15, %v807_v27  ;;  %v791_v30 = vadd.f32 %v790_v17, %v155_v63 }
  0xb6   :  { %v845_v34 = vadd.f32 %v844_v16, %v826_v29  ;;  %v810_v35 = vadd.f32 %v809_v18, %v791_v30 }
  0xbb   :  { %v828_v19 = vpop.f32.mrf.mxu2  ;;  %v792_v20 = vpop.f32.mrf.mxu0 }
  0xbc   :  { %v847_v1 = vpop.f32.mrf.mxu3  ;;  %v811_v6 = vpop.f32.mrf.mxu1  ;;  %v829_v41 = vadd.f32 %v828_v19, %v810_v35  ;;  %v793_v43 = vadd.f32 %v792_v20, %v155_v63  ;;  %v156_v19 = vperm.slane %v2551_v14, 1 }
  0xbe   :  { %v848_v49 = vadd.f32 %v847_v1, %v829_v41  ;;  %v812_v57 = vadd.f32 %v811_v6, %v793_v43 }
  0xc3   :  { %v830_v23 = vpop.f32.mrf.mxu2  ;;  %v861_v25 = vpop.f32.mrf.mxu0 }
  0xc4   :  { %v849_v44 = vpop.f32.mrf.mxu3  ;;  %v880_v26 = vpop.f32.mrf.mxu1  ;;  %v862_v28 = vadd.f32 %v861_v25, %v843_v24  ;;  %v831_v58 = vadd.f32 %v830_v23, %v812_v57 }
  0xc6   :  { %v881_v31 = vadd.f32 %v880_v26, %v862_v28  ;;  %v850_v4 = vadd.f32 %v849_v44, %v831_v58 }
  0xcb   :  { %v899_v32 = vpop.f32.mrf.mxu2  ;;  %v863_v37 = vpop.f32.mrf.mxu0 }
  0xcc   :  { %v918_v33 = vpop.f32.mrf.mxu3  ;;  %v900_v36 = vadd.f32 %v899_v32, %v881_v31  ;;  %v882_v38 = vpop.f32.mrf.mxu1  ;;  %v864_v40 = vadd.f32 %v863_v37, %v845_v34 }
  0xcd   :  { %v919_v48 = vadd.f32 %v918_v33, %v156_v19 }
  0xce   :  { %vm1042_vm1 = vcmp.ge.f32.partialorder %v900_v36, 0.0  ;;  %v1050_v39 = vmul.f32 0.2, %v900_v36  ;;  %v883_v45 = vadd.f32 %v882_v38, %v864_v40 }
  0xd0   :  { %v1058_v42 = vsel %vm1042_vm1, %v900_v36, %v1050_v39 }
  0xd1   :  { %1066 = vst [vmem:[%s2586_s3] sm:$0xff] %v1058_v42 }
  0xd3   :  { %v901_v46 = vpop.f32.mrf.mxu2  ;;  %v866_v53 = vpop.f32.mrf.mxu0 }
  0xd4   :  { %v920_v47 = vpop.f32.mrf.mxu3  ;;  %v902_v52 = vadd.f32 %v901_v46, %v883_v45  ;;  %v885_v54 = vpop.f32.mrf.mxu1  ;;  %v867_v55 = vadd.f32 %v866_v53, %v848_v49 }
  0xd5   :  { %v921_v28 = vadd.f32 %v920_v47, %v156_v19 }
  0xd6   :  { %vm1044_vm2 = vcmp.ge.f32.partialorder %v902_v52, 0.0  ;;  %v1052_v62 = vmul.f32 0.2, %v902_v52  ;;  %v886_v60 = vadd.f32 %v885_v54, %v867_v55 }
  0xd8   :  { %v1060_v59 = vsel %vm1044_vm2, %v902_v52, %v1052_v62 }
  0xd9   :  { %1069 = vst [vmem:[%s2586_s3 + $0x10] sm:$0xff] %v1060_v59 }
  0xdb   :  { %v904_v61 = vpop.f32.mrf.mxu2  ;;  %v868_v7 = vpop.f32.mrf.mxu0 }
  0xdc   :  { %v923_v2 = vpop.f32.mrf.mxu3  ;;  %v905_v5 = vadd.f32 %v904_v61, %v886_v60  ;;  %v887_v8 = vpop.f32.mrf.mxu1  ;;  %v869_v10 = vadd.f32 %v868_v7, %v850_v4 }
  0xdd   :  { %v924_v27 = vadd.f32 %v923_v2, %v156_v19 }
  0xde   :  { %vm1046_vm3 = vcmp.ge.f32.partialorder %v905_v5, 0.0  ;;  %v1054_v9 = vmul.f32 0.2, %v905_v5  ;;  %v888_v50 = vadd.f32 %v887_v8, %v869_v10 }
  0xe0   :  { %v1062_v11 = vsel %vm1046_vm3, %v905_v5, %v1054_v9 }
  0xe1   :  { %1071 = vst [vmem:[%s2586_s3 + $0x20] sm:$0xff] %v1062_v11 }
  0xe3   :  { %v906_v51 = vpop.f32.mrf.mxu2  ;;  %v937_v0 = vpop.f32.mrf.mxu0 }
  0xe4   :  { %v925_v56 = vpop.f32.mrf.mxu3  ;;  %v907_v12 = vadd.f32 %v906_v51, %v888_v50  ;;  %v956_v13 = vpop.f32.mrf.mxu1  ;;  %v938_v22 = vadd.f32 %v937_v0, %v919_v48 }
  0xe5   :  { %v926_v33 = vadd.f32 %v925_v56, %v156_v19 }
  0xe6   :  { %vm1048_vm4 = vcmp.ge.f32.partialorder %v907_v12, 0.0  ;;  %v1056_v15 = vmul.f32 0.2, %v907_v12  ;;  %v957_v26 = vadd.f32 %v956_v13, %v938_v22 }
  0xe8   :  { %v1064_v16 = vsel %vm1048_vm4, %v907_v12, %v1056_v15 }
  0xe9   :  { %1073 = vst [vmem:[%s2586_s3 + $0x30] sm:$0xff] %v1064_v16 }
  0xeb   :  { %v975_v17 = vpop.f32.mrf.mxu2  ;;  %v939_v18 = vpop.f32.mrf.mxu0 }
  0xec   :  { %v994_v63 = vpop.f32.mrf.mxu3  ;;  %v958_v3 = vpop.f32.mrf.mxu1  ;;  %v976_v29 = vadd.f32 %v975_v17, %v957_v26  ;;  %v940_v31 = vadd.f32 %v939_v18, %v921_v28 }
  0xee   :  { %v995_v32 = vadd.f32 %v994_v63, %v976_v29  ;;  %v959_v38 = vadd.f32 %v958_v3, %v940_v31 }
  0xf3   :  { %v977_v1 = vpop.f32.mrf.mxu2  ;;  %v942_v21 = vpop.f32.mrf.mxu0 }
  0xf4   :  { %v996_v20 = vpop.f32.mrf.mxu3  ;;  %v961_v6 = vpop.f32.mrf.mxu1  ;;  %v943_v30 = vadd.f32 %v942_v21, %v924_v27  ;;  %v978_v41 = vadd.f32 %v977_v1, %v959_v38 }
  0xf6   :  { %v962_v14 = vadd.f32 %v961_v6, %v943_v30  ;;  %v997_v47 = vadd.f32 %v996_v20, %v978_v41 }
  0xfb   :  { %v980_v23 = vpop.f32.mrf.mxu2  ;;  %v944_v24 = vpop.f32.mrf.mxu0 }
  0xfc   :  { %v999_v44 = vpop.f32.mrf.mxu3  ;;  %v963_v25 = vpop.f32.mrf.mxu1  ;;  %v981_v40 = vadd.f32 %v980_v23, %v962_v14  ;;  %v945_v43 = vadd.f32 %v944_v24, %v926_v33 }
  0xfe   :  { %v1000_v46 = vadd.f32 %v999_v44, %v981_v40  ;;  %v964_v54 = vadd.f32 %v963_v25, %v945_v43 }
 0x103   :  { %v982_v34 = vpop.f32.mrf.mxu2  ;;  %v1013_v36 = vpop.f32.mrf.mxu0 }
 0x104   :  { %v1001_v35 = vpop.f32.mrf.mxu3  ;;  %v1032_v37 = vpop.f32.mrf.mxu1  ;;  %v1014_v39 = vadd.f32 %v1013_v36, %v995_v32  ;;  %v983_v58 = vadd.f32 %v982_v34, %v964_v54 }
 0x106   :  { %v1033_v42 = vadd.f32 %v1032_v37, %v1014_v39  ;;  %v1002_v5 = vadd.f32 %v1001_v35, %v983_v58 }
 0x108   :  { %vm1043_vm5 = vcmp.ge.f32.partialorder %v1033_v42, 0.0  ;;  %v1051_v45 = vmul.f32 0.2, %v1033_v42 }
 0x10a   :  { %v1059_v49 = vsel %vm1043_vm5, %v1033_v42, %v1051_v45 }
 0x10b   :  { %v1018_v52 = vpop.f32.mrf.mxu2  ;;  %1068 = vst.msk [vmem:[%s2586_s3 + $0x8] sm:$0xff] %vm1067_vm6, %v1059_v49  ;;  %v1015_v62 = vpop.f32.mrf.mxu0 }
 0x10c   :  { %v1037_v53 = vpop.f32.mrf.mxu3  ;;  %v1019_v57 = vadd.f32 %v1018_v52, %v1000_v46  ;;  %v1016_v55 = vadd.f32 %v1015_v62, %v997_v47  ;;  %v1034_v60 = vpop.f32.mrf.mxu1 }
 0x10e   :  { %v1038_v59 = vadd.f32 %v1037_v53, %v1019_v57  ;;  %v1035_v61 = vadd.f32 %v1034_v60, %v1016_v55 }
 0x110   :  { %vm1047_vm7 = vcmp.ge.f32.partialorder %v1038_v59, 0.0  ;;  %v1055_v2 = vmul.f32 0.2, %v1038_v59  ;;  %vm1045_vm8 = vcmp.ge.f32.partialorder %v1035_v61, 0.0  ;;  %v1053_v4 = vmul.f32 0.2, %v1035_v61 }
 0x112   :  { %v1063_v7 = vsel %vm1047_vm7, %v1038_v59, %v1055_v2  ;;  %v1061_v8 = vsel %vm1045_vm8, %v1035_v61, %v1053_v4 }
 0x113   :  { %1072 = vst.msk [vmem:[%s2586_s3 + $0x28] sm:$0xff] %vm1067_vm6, %v1063_v7  ;;  %v1020_v9 = vpop.f32.mrf.mxu2 }
 0x114   :  { %1070 = vst.msk [vmem:[%s2586_s3 + $0x18] sm:$0xff] %vm1067_vm6, %v1061_v8  ;;  %v1021_v10 = vadd.f32 %v1020_v9, %v1002_v5  ;;  %v1039_v11 = vpop.f32.mrf.mxu3 }
 0x116   :  { %v1040_v50 = vadd.f32 %v1039_v11, %v1021_v10 }
 0x118   :  { %vm1049_vm9 = vcmp.ge.f32.partialorder %v1040_v50, 0.0  ;;  %v1057_v51 = vmul.f32 0.2, %v1040_v50 }
 0x11a   :  { %v1065_v56 = vsel %vm1049_vm9, %v1040_v50, %v1057_v51 }
 0x11b   :  { %1074 = vst.msk [vmem:[%s2586_s3 + $0x38] sm:$0xff] %vm1067_vm6, %v1065_v56 }
 0x11c   :  { %1079 = vsyncpa [#allocation3], 1 }

// kernel: csn_forward.16
= control target key start
LH: loop header
LB: loop body
LE: loop exit
PB: predicated region body
PF: predicated region fallthrough
CT: control target
= control target key end

     0   :  { %8 = vsyncpa [#allocation3], 0  ;;  %s1567_s15 = smov [#allocation2]   ;;  %s2403_s0 = inlined_call_operand.vmem [shape: bf16[128,432], index: 0, kind: input, shape index: {}]   ;;  %s2404_s1 = inlined_call_operand.vmem [shape: bf16[432,192], index: 1, kind: input, shape index: {}]   ;;  %s2405_s2 = inlined_call_operand.hbm [shape: f32[1,192], index: 2, kind: input, shape index: {}]   ;;  %s2406_s3 = inlined_call_operand.vmem [shape: f32[128,192], index: 3, kind: output, shape index: {}]  }
   0x1   :  { %s18_s14 = sshll.u32 %s2405_s2, 4  ;;  %s20_s16 = sshll.u32 %s1567_s15, 4  ;;  %s19_s14 = int_to_ptr.hbm [resolvable:$true] %s18_s14  ;;  %s21_s16 = int_to_ptr.vmem [resolvable:$true] %s20_s16 }
   0x2   :  { %23 = dma.hbm_to_vmem [thread:$0]  %s19_s14, 32, %s21_s16, [#allocation3]  }
   0x3   :  { %1565 = dma.done.wait [#allocation3], 32  }
   0x4   :  { %1566 = vsyncadd [#allocation3], 4294967264  ;;  %v1280_v0 = vld [vmem:[%s2404_s1 + $0x70] sm:$0xf]  ;;  %v1501_v1 = vld [vmem:[%s2404_s1 + $0x74] sm:$0xf0] }
   0x5   :  { %v1344_v2 = vld [vmem:[%s2404_s1 + $0xf0] sm:$0xf]  ;;  %v1281_v3 = vor.u32 %v1501_v1, %v1280_v0  ;;  %v1517_v4 = vld [vmem:[%s2404_s1 + $0xf4] sm:$0xf0]  ;;  %v1272_v9 = vld [vmem:[%s2404_s1 + $0x60] sm:$0xf] }
   0x6   :  { %v1408_v5 = vld [vmem:[%s2404_s1 + $0x170] sm:$0xf]  ;;  %v1533_v6 = vld [vmem:[%s2404_s1 + $0x174] sm:$0xf0]  ;;  %v1345_v7 = vor.u32 %v1517_v4, %v1344_v2  ;;  %v1499_v10 = vld [vmem:[%s2404_s1 + $0x64] sm:$0xf0] }
   0x7   :  { %v1409_v8 = vor.u32 %v1533_v6, %v1408_v5  ;;  %v1336_v11 = vld [vmem:[%s2404_s1 + $0xe0] sm:$0xf]  ;;  %568 = vmatpush.bf16.msra.mxu0 %v1281_v3  ;;  %v1273_v12 = vor.u32 %v1499_v10, %v1272_v9  ;;  %v1515_v13 = vld [vmem:[%s2404_s1 + $0xe4] sm:$0xf0]  ;;  %v1264_v20 = vld [vmem:[%s2404_s1 + $0x50] sm:$0xf] }
   0x8   :  { %v1400_v14 = vld [vmem:[%s2404_s1 + $0x160] sm:$0xf]  ;;  %v1531_v15 = vld [vmem:[%s2404_s1 + $0x164] sm:$0xf0]  ;;  %617 = vmatpush.bf16.msra.mxu1 %v1345_v7  ;;  %v1337_v16 = vor.u32 %v1515_v13, %v1336_v11  ;;  %v1497_v22 = vld [vmem:[%s2404_s1 + $0x54] sm:$0xf0] }
   0x9   :  { %666 = vmatpush.bf16.msra.mxu2 %v1409_v8  ;;  %v1401_v17 = vor.u32 %v1531_v15, %v1400_v14  ;;  %v1432_v18 = vld [vmem:[%s2404_s1 + $0x1a0] sm:$0xf]  ;;  %v1539_v19 = vld [vmem:[%s2404_s1 + $0x1a4] sm:$0xf0]  ;;  %v1328_v23 = vld [vmem:[%s2404_s1 + $0xd0] sm:$0xf]  ;;  %v1265_v28 = vor.u32 %v1497_v22, %v1264_v20 }
   0xa   :  { %v1433_v21 = vor.u32 %v1539_v19, %v1432_v18  ;;  %v1513_v24 = vld [vmem:[%s2404_s1 + $0xd4] sm:$0xf0]  ;;  %v1392_v25 = vld [vmem:[%s2404_s1 + $0x150] sm:$0xf]  ;;  %v1256_v30 = vld [vmem:[%s2404_s1 + $0x40] sm:$0xf] }
   0xb   :  { %v1529_v26 = vld [vmem:[%s2404_s1 + $0x154] sm:$0xf0]  ;;  %v1424_v27 = vld [vmem:[%s2404_s1 + $0x190] sm:$0xf]  ;;  %569 = vmatpush.bf16.msra.mxu0 %v1273_v12  ;;  %v1495_v31 = vld [vmem:[%s2404_s1 + $0x44] sm:$0xf0]  ;;  %v1329_v32 = vor.u32 %v1513_v24, %v1328_v23 }
   0xc   :  { %720 = vmatpush.bf16.msra.mxu3 %v1433_v21  ;;  %v1537_v29 = vld [vmem:[%s2404_s1 + $0x194] sm:$0xf0]  ;;  %618 = vmatpush.bf16.msra.mxu1 %v1337_v16  ;;  %v1393_v33 = vor.u32 %v1529_v26, %v1392_v25  ;;  %v1320_v35 = vld [vmem:[%s2404_s1 + $0xc0] sm:$0xf]  ;;  %v1511_v36 = vld [vmem:[%s2404_s1 + $0xc4] sm:$0xf0]  ;;  %v1257_v41 = vor.u32 %v1495_v31, %v1256_v30 }
   0xd   :  { %667 = vmatpush.bf16.msra.mxu2 %v1401_v17  ;;  %v1425_v34 = vor.u32 %v1537_v29, %v1424_v27  ;;  %v1384_v37 = vld [vmem:[%s2404_s1 + $0x140] sm:$0xf]  ;;  %v1527_v38 = vld [vmem:[%s2404_s1 + $0x144] sm:$0xf0]  ;;  %v1248_v43 = vld [vmem:[%s2404_s1 + $0x30] sm:$0xf]  ;;  %v1321_v45 = vor.u32 %v1511_v36, %v1320_v35 }
   0xe   :  { %v1416_v39 = vld [vmem:[%s2404_s1 + $0x180] sm:$0xf]  ;;  %v1535_v40 = vld [vmem:[%s2404_s1 + $0x184] sm:$0xf0]  ;;  %v1493_v44 = vld [vmem:[%s2404_s1 + $0x34] sm:$0xf0]  ;;  %v1385_v46 = vor.u32 %v1527_v38, %v1384_v37 }
   0xf   :  { %570 = vmatpush.bf16.msra.mxu0 %v1265_v28  ;;  %v1417_v42 = vor.u32 %v1535_v40, %v1416_v39  ;;  %v1312_v47 = vld [vmem:[%s2404_s1 + $0xb0] sm:$0xf]  ;;  %v1455_v48 = vld [vmem:[%s2403_s0 + $0xc] sm:$0xf]  ;;  %v1106_v49 = vld [vmem:[%s2403_s0 + $0x18] sm:$0xf0]  ;;  %v1249_v54 = vor.u32 %v1493_v44, %v1248_v43 }
  0x10   :  { %721 = vmatpush.bf16.msra.mxu3 %v1425_v34  ;;  %619 = vmatpush.bf16.msra.mxu1 %v1329_v32  ;;  %v1509_v50 = vld [vmem:[%s2404_s1 + $0xb4] sm:$0xf0]  ;;  %v1376_v51 = vld [vmem:[%s2404_s1 + $0x130] sm:$0xf]  ;;  %v1705_v53 = vor.u32 %v1455_v48, %v1106_v49  ;;  %vm543_vm0 = vcmask 392192  }
  0x11   :  { %668 = vmatpush.bf16.msra.mxu2 %v1393_v33  ;;  %v1525_v52 = vld [vmem:[%s2404_s1 + $0x134] sm:$0xf0]  ;;  %v1240_v55 = vld [vmem:[%s2404_s1 + $0x20] sm:$0xf]  ;;  %v1491_v56 = vld [vmem:[%s2404_s1 + $0x24] sm:$0xf0]  ;;  %v1313_v57 = vor.u32 %v1509_v50, %v1312_v47 }
  0x12   :  { %v1377_v58 = vor.u32 %v1525_v52, %v1376_v51  ;;  %v1304_v59 = vld [vmem:[%s2404_s1 + $0xa0] sm:$0xf]  ;;  %v1507_v60 = vld [vmem:[%s2404_s1 + $0xa4] sm:$0xf0]  ;;  %v1500_v61 = vld [vmem:[%s2404_s1 + $0x74] sm:$0xf]  ;;  %v1241_v2 = vor.u32 %v1491_v56, %v1240_v55 }
  0x13   :  { %571 = vmatpush.bf16.msra.mxu0 %v1257_v41  ;;  %v1368_v62 = vld [vmem:[%s2404_s1 + $0x120] sm:$0xf]  ;;  %v1523_v63 = vld [vmem:[%s2404_s1 + $0x124] sm:$0xf0]  ;;  %v1282_v0 = vld [vmem:[%s2404_s1 + $0x78] sm:$0xf0]  ;;  %v1305_v3 = vor.u32 %v1507_v60, %v1304_v59 }
  0x14   :  { %722 = vmatpush.bf16.msra.mxu3 %v1417_v42  ;;  %620 = vmatpush.bf16.msra.mxu1 %v1321_v45  ;;  %v1285_v1 = vor.u32 %v1500_v61, %v1282_v0  ;;  %v1369_v4 = vor.u32 %v1523_v63, %v1368_v62  ;;  %v1232_v5 = vld [vmem:[%s2404_s1 + $0x10] sm:$0xf]  ;;  %v1489_v6 = vld [vmem:[%s2404_s1 + $0x14] sm:$0xf0]  ;;  %v1224_v11 = vld [vmem:[%s2404_s1] sm:$0xf] }
  0x15   :  { %669 = vmatpush.bf16.msra.mxu2 %v1385_v46  ;;  %v1296_v7 = vld [vmem:[%s2404_s1 + $0x90] sm:$0xf]  ;;  %v1505_v8 = vld [vmem:[%s2404_s1 + $0x94] sm:$0xf0]  ;;  %v1487_v12 = vld [vmem:[%s2404_s1 + $0x4] sm:$0xf0]  ;;  %v1233_v13 = vor.u32 %v1489_v6, %v1232_v5 }
  0x16   :  { %v1360_v9 = vld [vmem:[%s2404_s1 + $0x110] sm:$0xf]  ;;  %v1521_v10 = vld [vmem:[%s2404_s1 + $0x114] sm:$0xf0]  ;;  %v1288_v14 = vld [vmem:[%s2404_s1 + $0x80] sm:$0xf]  ;;  %v1297_v17 = vor.u32 %v1505_v8, %v1296_v7  ;;  %v1225_v30 = vor.u32 %v1487_v12, %v1224_v11 }
  0x17   :  { %1438 = vmatmul.msk.bf16.vlgmr.msra.gmra.mxu3 %vm543_vm0, %v1705_v53  ;;  %572 = vmatpush.bf16.msra.mxu0 %v1249_v54  ;;  %v1503_v15 = vld [vmem:[%s2404_s1 + $0x84] sm:$0xf0]  ;;  %v1352_v16 = vld [vmem:[%s2404_s1 + $0x100] sm:$0xf]  ;;  %v1361_v18 = vor.u32 %v1521_v10, %v1360_v9  ;;  %v1498_v20 = vld [vmem:[%s2404_s1 + $0x64] sm:$0xf] }
  0x18   :  { %621 = vmatpush.bf16.msra.mxu1 %v1313_v57  ;;  %764 = vmatpush.bf16.msrb.mxu3 %v1285_v1  ;;  %v1519_v19 = vld [vmem:[%s2404_s1 + $0x104] sm:$0xf0]  ;;  %v1274_v21 = vld [vmem:[%s2404_s1 + $0x68] sm:$0xf0]  ;;  %v1096_v22 = vld [vmem:[%s2403_s0] sm:$0xf]  ;;  %v1289_v34 = vor.u32 %v1503_v15, %v1288_v14 }
  0x19   :  { %670 = vmatpush.bf16.msra.mxu2 %v1377_v58  ;;  %v1456_v23 = vld [vmem:[%s2403_s0 + $0xc] sm:$0xf0]  ;;  %v1538_v24 = vld [vmem:[%s2404_s1 + $0x1a4] sm:$0xf]  ;;  %v1277_v25 = vor.u32 %v1498_v20, %v1274_v21  ;;  %v1434_v27 = vld [vmem:[%s2404_s1 + $0x1a8] sm:$0xf0]  ;;  %v1353_v35 = vor.u32 %v1519_v19, %v1352_v16 }
  0x1a   :  { %v1454_v26 = vld [vmem:[%s2403_s0 + $0x4] sm:$0xf]  ;;  %v1516_v28 = vld [vmem:[%s2404_s1 + $0xf4] sm:$0xf]  ;;  %v1346_v29 = vld [vmem:[%s2404_s1 + $0xf8] sm:$0xf0]  ;;  %v1437_v39 = vor.u32 %v1538_v24, %v1434_v27  ;;  %v1823_v44 = vor.u32 %v1456_v23, %v1096_v22 }
  0x1b   :  { %573 = vmatpush.bf16.msra.mxu0 %v1241_v2  ;;  %v1098_v31 = vld [vmem:[%s2403_s0 + $0x10] sm:$0xf0]  ;;  %v1459_v32 = vld [vmem:[%s2403_s0 + $0x2c] sm:$0xf]  ;;  %v1122_v33 = vld [vmem:[%s2403_s0 + $0x38] sm:$0xf0]  ;;  %v1349_v40 = vor.u32 %v1516_v28, %v1346_v29 }
  0x1c   :  { %622 = vmatpush.bf16.msra.mxu1 %v1305_v3  ;;  %765 = vmatpush.bf16.msrb.mxu3 %v1277_v25  ;;  %v1104_v36 = vld [vmem:[%s2403_s0 + $0x8] sm:$0xf]  ;;  %v1457_v37 = vld [vmem:[%s2403_s0 + $0x14] sm:$0xf0]  ;;  %v1532_v38 = vld [vmem:[%s2404_s1 + $0x174] sm:$0xf]  ;;  %v1825_v45 = vor.u32 %v1459_v32, %v1122_v33  ;;  %v1833_v48 = vor.u32 %v1454_v26, %v1098_v31 }
  0x1d   :  { %671 = vmatpush.bf16.msra.mxu2 %v1369_v4  ;;  %v1410_v41 = vld [vmem:[%s2404_s1 + $0x178] sm:$0xf0]  ;;  %v1496_v42 = vld [vmem:[%s2404_s1 + $0x54] sm:$0xf]  ;;  %v1514_v46 = vld [vmem:[%s2404_s1 + $0xe4] sm:$0xf]  ;;  %v1835_v49 = vor.u32 %v1457_v37, %v1104_v36 }
  0x1e   :  { %v1266_v43 = vld [vmem:[%s2404_s1 + $0x58] sm:$0xf0]  ;;  %v1338_v47 = vld [vmem:[%s2404_s1 + $0xe8] sm:$0xf0]  ;;  %v1413_v50 = vor.u32 %v1532_v38, %v1410_v41  ;;  %v1530_v54 = vld [vmem:[%s2404_s1 + $0x164] sm:$0xf] }
  0x1f   :  { %574 = vmatpush.bf16.msra.mxu0 %v1233_v13  ;;  %v1269_v51 = vor.u32 %v1496_v42, %v1266_v43  ;;  %v1341_v52 = vor.u32 %v1514_v46, %v1338_v47  ;;  %v1402_v55 = vld [vmem:[%s2404_s1 + $0x168] sm:$0xf0]  ;;  %v1512_v56 = vld [vmem:[%s2404_s1 + $0xd4] sm:$0xf]  ;;  %v1330_v57 = vld [vmem:[%s2404_s1 + $0xd8] sm:$0xf0] }
  0x20   :  { %623 = vmatpush.bf16.msra.mxu1 %v1297_v17  ;;  %v1405_v58 = vor.u32 %v1530_v54, %v1402_v55  ;;  %v1528_v59 = vld [vmem:[%s2404_s1 + $0x154] sm:$0xf]  ;;  %v1494_v60 = vld [vmem:[%s2404_s1 + $0x44] sm:$0xf]  ;;  %v1258_v61 = vld [vmem:[%s2404_s1 + $0x48] sm:$0xf0]  ;;  %v1333_v62 = vor.u32 %v1512_v56, %v1330_v57 }
  0x21   :  { %672 = vmatpush.bf16.msra.mxu2 %v1361_v18  ;;  %766 = vmatpush.bf16.msrb.mxu3 %v1269_v51  ;;  %v1394_v63 = vld [vmem:[%s2404_s1 + $0x158] sm:$0xf0]  ;;  %v1261_v0 = vor.u32 %v1494_v60, %v1258_v61  ;;  %v1536_v1 = vld [vmem:[%s2404_s1 + $0x194] sm:$0xf]  ;;  %v1112_v5 = vld [vmem:[%s2403_s0 + $0x20] sm:$0xf] }
  0x22   :  { %v1426_v2 = vld [vmem:[%s2404_s1 + $0x198] sm:$0xf0]  ;;  %v1397_v4 = vor.u32 %v1528_v59, %v1394_v63  ;;  %v1460_v6 = vld [vmem:[%s2403_s0 + $0x2c] sm:$0xf0]  ;;  %v1458_v7 = vld [vmem:[%s2403_s0 + $0x24] sm:$0xf] }
  0x23   :  { %575 = vmatpush.bf16.msra.mxu0 %v1225_v30  ;;  %v1429_v3 = vor.u32 %v1536_v1, %v1426_v2  ;;  %v1463_v8 = vld [vmem:[%s2403_s0 + $0x4c] sm:$0xf]  ;;  %v1138_v9 = vld [vmem:[%s2403_s0 + $0x58] sm:$0xf0]  ;;  %v1114_v10 = vld [vmem:[%s2403_s0 + $0x30] sm:$0xf0]  ;;  %v1896_v13 = vor.u32 %v1460_v6, %v1112_v5 }
  0x24   :  { %624 = vmatpush.bf16.msra.mxu1 %v1289_v34  ;;  %v1120_v11 = vld [vmem:[%s2403_s0 + $0x28] sm:$0xf]  ;;  %v1461_v12 = vld [vmem:[%s2403_s0 + $0x34] sm:$0xf0]  ;;  %v1898_v14 = vor.u32 %v1463_v8, %v1138_v9  ;;  %v1900_v15 = vor.u32 %v1458_v7, %v1114_v10  ;;  %v1510_v17 = vld [vmem:[%s2404_s1 + $0xc4] sm:$0xf] }
  0x25   :  { %673 = vmatpush.bf16.msra.mxu2 %v1353_v35  ;;  %767 = vmatpush.bf16.msrb.mxu3 %v1261_v0  ;;  %v1902_v16 = vor.u32 %v1461_v12, %v1120_v11  ;;  %v1322_v18 = vld [vmem:[%s2404_s1 + $0xc8] sm:$0xf0]  ;;  %v1526_v19 = vld [vmem:[%s2404_s1 + $0x144] sm:$0xf]  ;;  %v1492_v22 = vld [vmem:[%s2404_s1 + $0x34] sm:$0xf] }
  0x26   :  { %576 = vmatmul.bf16.vlgmr.msra.gmra.mxu0 %v1823_v44  ;;  %v1325_v20 = vor.u32 %v1510_v17, %v1322_v18  ;;  %v1386_v21 = vld [vmem:[%s2404_s1 + $0x148] sm:$0xf0]  ;;  %v1250_v23 = vld [vmem:[%s2404_s1 + $0x38] sm:$0xf0]  ;;  %v1128_v26 = vld [vmem:[%s2403_s0 + $0x40] sm:$0xf] }
  0x27   :  { %813 = vmatpush.bf16.msrb.mxu0 %v1349_v40  ;;  %1439 = vmatmul.msk.bf16.gmra.mxu3 %vm543_vm0, %v1825_v45  ;;  %v1389_v24 = vor.u32 %v1526_v19, %v1386_v21  ;;  %v1253_v25 = vor.u32 %v1492_v22, %v1250_v23  ;;  %v1464_v27 = vld [vmem:[%s2403_s0 + $0x4c] sm:$0xf0]  ;;  %v1462_v28 = vld [vmem:[%s2403_s0 + $0x44] sm:$0xf]  ;;  %v1467_v29 = vld [vmem:[%s2403_s0 + $0x6c] sm:$0xf] }
  0x28   :  { %625 = vmatmul.bf16.vlgmr.msra.gmra.mxu1 %v1833_v48  ;;  %674 = vmatmul.bf16.vlgmr.msra.gmra.mxu2 %v1835_v49  ;;  %v1154_v30 = vld [vmem:[%s2403_s0 + $0x78] sm:$0xf0]  ;;  %v1130_v31 = vld [vmem:[%s2403_s0 + $0x50] sm:$0xf0]  ;;  %v1136_v32 = vld [vmem:[%s2403_s0 + $0x48] sm:$0xf]  ;;  %v1951_v34 = vor.u32 %v1464_v27, %v1128_v26 }
  0x29   :  { %916 = vmatpush.bf16.msrb.mxu2 %v1437_v39  ;;  %862 = vmatpush.bf16.msrb.mxu1 %v1413_v50  ;;  %v1465_v33 = vld [vmem:[%s2403_s0 + $0x54] sm:$0xf0]  ;;  %v1953_v35 = vor.u32 %v1467_v29, %v1154_v30  ;;  %v1955_v36 = vor.u32 %v1462_v28, %v1130_v31  ;;  %v1508_v38 = vld [vmem:[%s2404_s1 + $0xb4] sm:$0xf]  ;;  %v1314_v39 = vld [vmem:[%s2404_s1 + $0xb8] sm:$0xf0] }
  0x2a   :  { %768 = vmatpush.bf16.msrb.mxu3 %v1253_v25  ;;  %v1957_v37 = vor.u32 %v1465_v33, %v1136_v32  ;;  %v1524_v40 = vld [vmem:[%s2404_s1 + $0x134] sm:$0xf]  ;;  %v1317_v41 = vor.u32 %v1508_v38, %v1314_v39  ;;  %v1378_v42 = vld [vmem:[%s2404_s1 + $0x138] sm:$0xf0]  ;;  %v1490_v43 = vld [vmem:[%s2404_s1 + $0x24] sm:$0xf] }
  0x2b   :  { %814 = vmatpush.bf16.msrb.mxu0 %v1341_v52  ;;  %v1242_v46 = vld [vmem:[%s2404_s1 + $0x28] sm:$0xf0]  ;;  %v1381_v47 = vor.u32 %v1524_v40, %v1378_v42  ;;  %v1144_v51 = vld [vmem:[%s2403_s0 + $0x60] sm:$0xf]  ;;  %v1468_v52 = vld [vmem:[%s2403_s0 + $0x6c] sm:$0xf0] }
  0x2c   :  { %v1245_v50 = vor.u32 %v1490_v43, %v1242_v46  ;;  %v1466_v54 = vld [vmem:[%s2403_s0 + $0x64] sm:$0xf]  ;;  %v1471_v55 = vld [vmem:[%s2403_s0 + $0x8c] sm:$0xf]  ;;  %v1170_v56 = vld [vmem:[%s2403_s0 + $0x98] sm:$0xf0]  ;;  %v2006_v60 = vor.u32 %v1468_v52, %v1144_v51 }
  0x2d   :  { %863 = vmatpush.bf16.msrb.mxu1 %v1405_v58  ;;  %917 = vmatpush.bf16.msrb.mxu2 %v1429_v3  ;;  %v1146_v57 = vld [vmem:[%s2403_s0 + $0x70] sm:$0xf0]  ;;  %v1152_v58 = vld [vmem:[%s2403_s0 + $0x68] sm:$0xf]  ;;  %v1469_v59 = vld [vmem:[%s2403_s0 + $0x74] sm:$0xf0]  ;;  %v2008_v61 = vor.u32 %v1471_v55, %v1170_v56 }
  0x2e   :  { %769 = vmatpush.bf16.msrb.mxu3 %v1245_v50  ;;  %v2012_v63 = vor.u32 %v1469_v59, %v1152_v58  ;;  %v1506_v0 = vld [vmem:[%s2404_s1 + $0xa4] sm:$0xf]  ;;  %v1306_v1 = vld [vmem:[%s2404_s1 + $0xa8] sm:$0xf0]  ;;  %v1488_v9 = vld [vmem:[%s2404_s1 + $0x14] sm:$0xf] }
  0x2f   :  { %815 = vmatpush.bf16.msrb.mxu0 %v1333_v62  ;;  %v2010_v62 = vor.u32 %v1466_v54, %v1146_v57  ;;  %v1522_v2 = vld [vmem:[%s2404_s1 + $0x124] sm:$0xf]  ;;  %v1309_v3 = vor.u32 %v1506_v0, %v1306_v1  ;;  %v1418_v6 = vld [vmem:[%s2404_s1 + $0x188] sm:$0xf0]  ;;  %v1234_v10 = vld [vmem:[%s2404_s1 + $0x18] sm:$0xf0] }
  0x30   :  { %v1534_v5 = vld [vmem:[%s2404_s1 + $0x184] sm:$0xf]  ;;  %v1237_v11 = vor.u32 %v1488_v9, %v1234_v10  ;;  %v1160_v12 = vld [vmem:[%s2403_s0 + $0x80] sm:$0xf]  ;;  %v1472_v17 = vld [vmem:[%s2403_s0 + $0x8c] sm:$0xf0] }
  0x31   :  { %864 = vmatpush.bf16.msrb.mxu1 %v1397_v4  ;;  %v1370_v4 = vld [vmem:[%s2404_s1 + $0x128] sm:$0xf0]  ;;  %v1421_v8 = vor.u32 %v1534_v5, %v1418_v6  ;;  %v1470_v18 = vld [vmem:[%s2403_s0 + $0x84] sm:$0xf]  ;;  %v1162_v21 = vld [vmem:[%s2403_s0 + $0x90] sm:$0xf0] }
  0x32   :  { %v1373_v7 = vor.u32 %v1522_v2, %v1370_v4  ;;  %770 = vmatpush.bf16.msrb.mxu3 %v1237_v11  ;;  %v1475_v19 = vld [vmem:[%s2403_s0 + $0xac] sm:$0xf]  ;;  %v1168_v22 = vld [vmem:[%s2403_s0 + $0x88] sm:$0xf]  ;;  %v1473_v23 = vld [vmem:[%s2403_s0 + $0x94] sm:$0xf0]  ;;  %v2071_v26 = vor.u32 %v1470_v18, %v1162_v21 }
  0x33   :  { %816 = vmatpush.bf16.msrb.mxu0 %v1325_v20  ;;  %918 = vmatpush.bf16.msrb.mxu2 %v1421_v8  ;;  %v1186_v20 = vld [vmem:[%s2403_s0 + $0xb8] sm:$0xf0]  ;;  %v2073_v27 = vor.u32 %v1473_v23, %v1168_v22  ;;  %v1504_v28 = vld [vmem:[%s2404_s1 + $0x94] sm:$0xf]  ;;  %v1486_v33 = vld [vmem:[%s2404_s1 + $0x4] sm:$0xf] }
  0x34   :  { %v2069_v25 = vor.u32 %v1475_v19, %v1186_v20  ;;  %v1298_v29 = vld [vmem:[%s2404_s1 + $0x98] sm:$0xf0]  ;;  %v1520_v30 = vld [vmem:[%s2404_s1 + $0x114] sm:$0xf]  ;;  %v1226_v38 = vld [vmem:[%s2404_s1 + $0x8] sm:$0xf0] }
  0x35   :  { %865 = vmatpush.bf16.msrb.mxu1 %v1389_v24  ;;  %v2067_v24 = vor.u32 %v1472_v17, %v1160_v12  ;;  %v1301_v31 = vor.u32 %v1504_v28, %v1298_v29  ;;  %v1362_v32 = vld [vmem:[%s2404_s1 + $0x118] sm:$0xf0]  ;;  %v1229_v40 = vor.u32 %v1486_v33, %v1226_v38  ;;  %v1476_v42 = vld [vmem:[%s2403_s0 + $0xac] sm:$0xf0]  ;;  %v1474_v43 = vld [vmem:[%s2403_s0 + $0xa4] sm:$0xf] }
  0x36   :  { %581 = vmatmul.bf16.gmra.mxu0 %v1896_v13  ;;  %v1365_v39 = vor.u32 %v1520_v30, %v1362_v32  ;;  %v1479_v46 = vld [vmem:[%s2403_s0 + $0xcc] sm:$0xf]  ;;  %v1178_v50 = vld [vmem:[%s2403_s0 + $0xb0] sm:$0xf0]  ;;  %v1184_v51 = vld [vmem:[%s2403_s0 + $0xa8] sm:$0xf] }
  0x37   :  { %1440 = vmatmul.msk.bf16.gmra.mxu3 %vm543_vm0, %v1898_v14  ;;  %817 = vmatpush.bf16.msrb.mxu0 %v1317_v41  ;;  %v1176_v41 = vld [vmem:[%s2403_s0 + $0xa0] sm:$0xf]  ;;  %v1477_v52 = vld [vmem:[%s2403_s0 + $0xb4] sm:$0xf0]  ;;  %v2126_v56 = vor.u32 %v1474_v43, %v1178_v50  ;;  %v1502_v58 = vld [vmem:[%s2404_s1 + $0x84] sm:$0xf] }
  0x38   :  { %630 = vmatmul.bf16.gmra.mxu1 %v1900_v15  ;;  %679 = vmatmul.bf16.gmra.mxu2 %v1902_v16  ;;  %v2122_v54 = vor.u32 %v1476_v42, %v1176_v41  ;;  %v2128_v57 = vor.u32 %v1477_v52, %v1184_v51  ;;  %v1290_v59 = vld [vmem:[%s2404_s1 + $0x88] sm:$0xf0]  ;;  %v1518_v0 = vld [vmem:[%s2404_s1 + $0x104] sm:$0xf]  ;;  %v1192_v4 = vld [vmem:[%s2403_s0 + $0xc0] sm:$0xf] }
  0x39   :  { %866 = vmatpush.bf16.msrb.mxu1 %v1381_v47  ;;  %771 = vmatpush.bf16.msrb.mxu3 %v1229_v40  ;;  %v1202_v47 = vld [vmem:[%s2403_s0 + $0xd8] sm:$0xf0]  ;;  %v1293_v1 = vor.u32 %v1502_v58, %v1290_v59  ;;  %v1354_v2 = vld [vmem:[%s2404_s1 + $0x108] sm:$0xf0]  ;;  %v1480_v5 = vld [vmem:[%s2403_s0 + $0xcc] sm:$0xf0] }
  0x3a   :  { %v2124_v55 = vor.u32 %v1479_v46, %v1202_v47  ;;  %v1478_v6 = vld [vmem:[%s2403_s0 + $0xc4] sm:$0xf]  ;;  %v1218_v8 = vld [vmem:[%s2403_s0 + $0xf8] sm:$0xf0]  ;;  %v1194_v9 = vld [vmem:[%s2403_s0 + $0xd0] sm:$0xf0]  ;;  %v2171_v12 = vor.u32 %v1480_v5, %v1192_v4 }
  0x3b   :  { %818 = vmatpush.bf16.msrb.mxu0 %v1309_v3  ;;  %v1357_v3 = vor.u32 %v1518_v0, %v1354_v2  ;;  %v1200_v10 = vld [vmem:[%s2403_s0 + $0xc8] sm:$0xf]  ;;  %v1481_v11 = vld [vmem:[%s2403_s0 + $0xd4] sm:$0xf0]  ;;  %v2175_v18 = vor.u32 %v1478_v6, %v1194_v9  ;;  %v1208_v20 = vld [vmem:[%s2403_s0 + $0xe0] sm:$0xf] }
  0x3c   :  { %v2177_v19 = vor.u32 %v1481_v11, %v1200_v10  ;;  %v1484_v21 = vld [vmem:[%s2403_s0 + $0xec] sm:$0xf0]  ;;  %v1482_v22 = vld [vmem:[%s2403_s0 + $0xe4] sm:$0xf]  ;;  %v1210_v23 = vld [vmem:[%s2403_s0 + $0xf0] sm:$0xf0] }
  0x3d   :  { %867 = vmatpush.bf16.msrb.mxu1 %v1373_v7  ;;  %v1483_v7 = vld [vmem:[%s2403_s0 + $0xec] sm:$0xf]  ;;  %v1216_v28 = vld [vmem:[%s2403_s0 + $0xe8] sm:$0xf]  ;;  %v1485_v29 = vld [vmem:[%s2403_s0 + $0xf4] sm:$0xf0]  ;;  %v2202_v30 = vor.u32 %v1484_v21, %v1208_v20 }
  0x3e   :  { %v2173_v17 = vor.u32 %v1483_v7, %v1218_v8  ;;  %v2206_v32 = vor.u32 %v1485_v29, %v1216_v28  ;;  %v2212_v38 = vld [vmem:[#allocation2] sm:$0x3] }
  0x3f   :  { %819 = vmatpush.bf16.msrb.mxu0 %v1301_v31  ;;  %v2204_v31 = vor.u32 %v1482_v22, %v1210_v23 }
  0x41   :  { %868 = vmatpush.bf16.msrb.mxu1 %v1365_v39  ;;  %v2215_v39 = vperm.slane %v2212_v38, 0 }
  0x43   :  { %820 = vmatpush.bf16.msrb.mxu0 %v1293_v1 }
  0x45   :  { %869 = vmatpush.bf16.msrb.mxu1 %v1357_v3 }
  0x46   :  { %586 = vmatmul.bf16.gmra.mxu0 %v1951_v34 }
  0x47   :  { %1441 = vmatmul.msk.bf16.gmra.mxu3 %vm543_vm0, %v1953_v35 }
  0x48   :  { %635 = vmatmul.bf16.gmra.mxu1 %v1955_v36  ;;  %684 = vmatmul.bf16.gmra.mxu2 %v1957_v37 }
  0x56   :  { %591 = vmatmul.bf16.gmra.mxu0 %v2006_v60 }
  0x57   :  { %1442 = vmatmul.msk.bf16.gmra.mxu3 %vm543_vm0, %v2008_v61 }
  0x58   :  { %640 = vmatmul.bf16.gmra.mxu1 %v2010_v62  ;;  %689 = vmatmul.bf16.gmra.mxu2 %v2012_v63 }
  0x66   :  { %596 = vmatmul.bf16.gmra.mxu0 %v2067_v24 }
  0x67   :  { %1443 = vmatmul.msk.bf16.gmra.mxu3 %vm543_vm0, %v2069_v25 }
  0x68   :  { %645 = vmatmul.bf16.gmra.mxu1 %v2071_v26  ;;  %694 = vmatmul.bf16.gmra.mxu2 %v2073_v27 }
  0x76   :  { %601 = vmatmul.bf16.gmra.mxu0 %v2122_v54 }
  0x77   :  { %1444 = vmatmul.msk.bf16.gmra.mxu3 %vm543_vm0, %v2124_v55 }
  0x78   :  { %650 = vmatmul.bf16.gmra.mxu1 %v2126_v56  ;;  %699 = vmatmul.bf16.gmra.mxu2 %v2128_v57 }
  0x86   :  { %606 = vmatmul.bf16.gmra.mxu0 %v2171_v12 }
  0x87   :  { %1445 = vmatmul.msk.bf16.gmra.mxu3 %vm543_vm0, %v2173_v17 }
  0x88   :  { %655 = vmatmul.bf16.gmra.mxu1 %v2175_v18  ;;  %704 = vmatmul.bf16.gmra.mxu2 %v2177_v19 }
  0x96   :  { %611 = vmatmul.bf16.gmra.mxu0 %v2202_v30 }
  0x97   :  { %772 = vmatmul.bf16.vlgmr.msrb.gmra.mxu3 %v1823_v44 }
  0x98   :  { %660 = vmatmul.bf16.gmra.mxu1 %v2204_v31  ;;  %709 = vmatmul.bf16.gmra.mxu2 %v2206_v32 }
  0x9a   :  { %v724_v33 = vpop.f32.mrf.mxu3 }
  0xa2   :  { %v726_v40 = vpop.f32.mrf.mxu3 }
  0xa3   :  { %v577_v41 = vpop.f32.mrf.mxu0 }
  0xa4   :  { %v578_v42 = vadd.f32 %v577_v41, %v2215_v39 }
  0xa5   :  { %v626_v43 = vpop.f32.mrf.mxu1 }
  0xa6   :  { %821 = vmatmul.bf16.vlgmr.msrb.gmra.mxu0 %v1833_v48  ;;  %v627_v44 = vadd.f32 %v626_v43, %v578_v42 }
  0xa7   :  { %777 = vmatmul.bf16.gmra.mxu3 %v1896_v13 }
  0xa8   :  { %870 = vmatmul.bf16.vlgmr.msrb.gmra.mxu1 %v1835_v49  ;;  %1446 = vmatmul.msk.bf16.vlgmr.msrb.gmra.mxu2 %vm543_vm0, %v1705_v53 }
  0xaa   :  { %v729_v46 = vpop.f32.mrf.mxu3 }
  0xab   :  { %v675_v47 = vpop.f32.mrf.mxu2  ;;  %v579_v51 = vpop.f32.mrf.mxu0 }
  0xac   :  { %v676_v50 = vadd.f32 %v675_v47, %v627_v44  ;;  %v580_v59 = vadd.f32 %v579_v51, %v2215_v39 }
  0xad   :  { %v628_v52 = vpop.f32.mrf.mxu1 }
  0xae   :  { %v725_v58 = vadd.f32 %v724_v33, %v676_v50  ;;  %v629_v48 = vadd.f32 %v628_v52, %v580_v59 }
  0xb0   :  { %vm960_vm1 = vcmp.ge.f32.partialorder %v725_v58, 0.0  ;;  %v992_v0 = vmul.f32 0.2, %v725_v58 }
  0xb2   :  { %v1024_v1 = vsel %vm960_vm1, %v725_v58, %v992_v0  ;;  %v731_v2 = vpop.f32.mrf.mxu3 }
  0xb3   :  { %1056 = vst [vmem:[%s2406_s3] sm:$0xff] %v1024_v1  ;;  %v677_v49 = vpop.f32.mrf.mxu2  ;;  %v582_v53 = vpop.f32.mrf.mxu0 }
  0xb4   :  { %v678_v13 = vadd.f32 %v677_v49, %v629_v48  ;;  %v583_v3 = vadd.f32 %v582_v53, %v2215_v39 }
  0xb5   :  { %v631_v4 = vpop.f32.mrf.mxu1 }
  0xb6   :  { %v727_v5 = vadd.f32 %v726_v40, %v678_v13  ;;  %826 = vmatmul.bf16.gmra.mxu0 %v1900_v15  ;;  %v632_v7 = vadd.f32 %v631_v4, %v583_v3 }
  0xb7   :  { %782 = vmatmul.bf16.gmra.mxu3 %v1951_v34 }
  0xb8   :  { %vm962_vm2 = vcmp.ge.f32.partialorder %v727_v5, 0.0  ;;  %v994_v6 = vmul.f32 0.2, %v727_v5  ;;  %875 = vmatmul.bf16.gmra.mxu1 %v1902_v16  ;;  %1447 = vmatmul.msk.bf16.gmra.mxu2 %vm543_vm0, %v1825_v45 }
  0xba   :  { %v1026_v8 = vsel %vm962_vm2, %v727_v5, %v994_v6  ;;  %v734_v9 = vpop.f32.mrf.mxu3  ;;  %vm1057_vm2 = vcmask 523264  }
  0xbb   :  { %1059 = vst [vmem:[%s2406_s3 + $0x10] sm:$0xff] %v1026_v8  ;;  %v680_v10 = vpop.f32.mrf.mxu2  ;;  %v584_v20 = vpop.f32.mrf.mxu0 }
  0xbc   :  { %v681_v11 = vadd.f32 %v680_v10, %v632_v7  ;;  %v585_v34 = vadd.f32 %v584_v20, %v2215_v39 }
  0xbd   :  { %v633_v15 = vpop.f32.mrf.mxu1 }
  0xbe   :  { %v730_v21 = vadd.f32 %v729_v46, %v681_v11  ;;  %v634_v16 = vadd.f32 %v633_v15, %v585_v34 }
  0xc0   :  { %vm964_vm3 = vcmp.ge.f32.partialorder %v730_v21, 0.0  ;;  %v996_v22 = vmul.f32 0.2, %v730_v21 }
  0xc2   :  { %v1028_v23 = vsel %vm964_vm3, %v730_v21, %v996_v22  ;;  %v736_v28 = vpop.f32.mrf.mxu3 }
  0xc3   :  { %1061 = vst [vmem:[%s2406_s3 + $0x20] sm:$0xff] %v1028_v23  ;;  %v682_v45 = vpop.f32.mrf.mxu2  ;;  %v587_v33 = vpop.f32.mrf.mxu0 }
  0xc4   :  { %v683_v29 = vadd.f32 %v682_v45, %v634_v16  ;;  %v588_v40 = vadd.f32 %v587_v33, %v2215_v39 }
  0xc5   :  { %v636_v41 = vpop.f32.mrf.mxu1 }
  0xc6   :  { %v732_v42 = vadd.f32 %v731_v2, %v683_v29  ;;  %831 = vmatmul.bf16.gmra.mxu0 %v1955_v36  ;;  %v637_v44 = vadd.f32 %v636_v41, %v588_v40 }
  0xc7   :  { %787 = vmatmul.bf16.gmra.mxu3 %v2006_v60 }
  0xc8   :  { %vm966_vm4 = vcmp.ge.f32.partialorder %v732_v42, 0.0  ;;  %v998_v43 = vmul.f32 0.2, %v732_v42  ;;  %880 = vmatmul.bf16.gmra.mxu1 %v1957_v37  ;;  %1448 = vmatmul.msk.bf16.gmra.mxu2 %vm543_vm0, %v1898_v14 }
  0xca   :  { %v1030_v46 = vsel %vm966_vm4, %v732_v42, %v998_v43  ;;  %v739_v47 = vpop.f32.mrf.mxu3 }
  0xcb   :  { %1063 = vst [vmem:[%s2406_s3 + $0x30] sm:$0xff] %v1030_v46  ;;  %v685_v50 = vpop.f32.mrf.mxu2  ;;  %v589_v52 = vpop.f32.mrf.mxu0 }
  0xcc   :  { %v686_v51 = vadd.f32 %v685_v50, %v637_v44  ;;  %v590_v60 = vadd.f32 %v589_v52, %v2215_v39 }
  0xcd   :  { %v638_v36 = vpop.f32.mrf.mxu1 }
  0xce   :  { %v735_v58 = vadd.f32 %v734_v9, %v686_v51  ;;  %v639_v37 = vadd.f32 %v638_v36, %v590_v60 }
  0xd0   :  { %vm968_vm5 = vcmp.ge.f32.partialorder %v735_v58, 0.0  ;;  %v1000_v59 = vmul.f32 0.2, %v735_v58 }
  0xd2   :  { %v1032_v0 = vsel %vm968_vm5, %v735_v58, %v1000_v59  ;;  %v741_v1 = vpop.f32.mrf.mxu3 }
  0xd3   :  { %1065 = vst [vmem:[%s2406_s3 + $0x40] sm:$0xff] %v1032_v0  ;;  %v687_v14 = vpop.f32.mrf.mxu2  ;;  %v592_v2 = vpop.f32.mrf.mxu0 }
  0xd4   :  { %v688_v48 = vadd.f32 %v687_v14, %v639_v37  ;;  %v593_v49 = vadd.f32 %v592_v2, %v2215_v39 }
  0xd5   :  { %v641_v13 = vpop.f32.mrf.mxu1 }
  0xd6   :  { %v737_v53 = vadd.f32 %v736_v28, %v688_v48  ;;  %836 = vmatmul.bf16.gmra.mxu0 %v2010_v62  ;;  %v642_v4 = vadd.f32 %v641_v13, %v593_v49 }
  0xd7   :  { %792 = vmatmul.bf16.gmra.mxu3 %v2067_v24 }
  0xd8   :  { %vm970_vm6 = vcmp.ge.f32.partialorder %v737_v53, 0.0  ;;  %v1002_v3 = vmul.f32 0.2, %v737_v53  ;;  %885 = vmatmul.bf16.gmra.mxu1 %v2012_v63  ;;  %1449 = vmatmul.msk.bf16.gmra.mxu2 %vm543_vm0, %v1953_v35 }
  0xda   :  { %v1034_v5 = vsel %vm970_vm6, %v737_v53, %v1002_v3  ;;  %v744_v6 = vpop.f32.mrf.mxu3 }
  0xdb   :  { %1067 = vst [vmem:[%s2406_s3 + $0x50] sm:$0xff] %v1034_v5  ;;  %v690_v7 = vpop.f32.mrf.mxu2  ;;  %v594_v9 = vpop.f32.mrf.mxu0 }
  0xdc   :  { %v691_v8 = vadd.f32 %v690_v7, %v642_v4  ;;  %v595_v24 = vadd.f32 %v594_v9, %v2215_v39 }
  0xdd   :  { %v643_v62 = vpop.f32.mrf.mxu1 }
  0xde   :  { %v740_v10 = vadd.f32 %v739_v47, %v691_v8  ;;  %v644_v63 = vadd.f32 %v643_v62, %v595_v24 }
  0xe0   :  { %vm972_vm7 = vcmp.ge.f32.partialorder %v740_v10, 0.0  ;;  %v1004_v11 = vmul.f32 0.2, %v740_v10 }
  0xe2   :  { %v1036_v20 = vsel %vm972_vm7, %v740_v10, %v1004_v11  ;;  %v746_v15 = vpop.f32.mrf.mxu3 }
  0xe3   :  { %1069 = vst [vmem:[%s2406_s3 + $0x60] sm:$0xff] %v1036_v20  ;;  %v692_v35 = vpop.f32.mrf.mxu2  ;;  %v597_v34 = vpop.f32.mrf.mxu0 }
  0xe4   :  { %v693_v21 = vadd.f32 %v692_v35, %v644_v63  ;;  %v598_v22 = vadd.f32 %v597_v34, %v2215_v39 }
  0xe5   :  { %v646_v23 = vpop.f32.mrf.mxu1 }
  0xe6   :  { %v742_v16 = vadd.f32 %v741_v1, %v693_v21  ;;  %841 = vmatmul.bf16.gmra.mxu0 %v2071_v26  ;;  %v647_v45 = vadd.f32 %v646_v23, %v598_v22 }
  0xe7   :  { %797 = vmatmul.bf16.gmra.mxu3 %v2122_v54 }
  0xe8   :  { %vm974_vm8 = vcmp.ge.f32.partialorder %v742_v16, 0.0  ;;  %v1006_v28 = vmul.f32 0.2, %v742_v16  ;;  %890 = vmatmul.bf16.gmra.mxu1 %v2073_v27  ;;  %1450 = vmatmul.msk.bf16.gmra.mxu2 %vm543_vm0, %v2008_v61 }
  0xea   :  { %v1038_v29 = vsel %vm974_vm8, %v742_v16, %v1006_v28  ;;  %v749_v33 = vpop.f32.mrf.mxu3 }
  0xeb   :  { %1071 = vst [vmem:[%s2406_s3 + $0x70] sm:$0xff] %v1038_v29  ;;  %v695_v40 = vpop.f32.mrf.mxu2  ;;  %v599_v42 = vpop.f32.mrf.mxu0 }
  0xec   :  { %v696_v41 = vadd.f32 %v695_v40, %v647_v45  ;;  %v600_v54 = vadd.f32 %v599_v42, %v2215_v39 }
  0xed   :  { %v648_v26 = vpop.f32.mrf.mxu1 }
  0xee   :  { %v745_v43 = vadd.f32 %v744_v6, %v696_v41  ;;  %v649_v27 = vadd.f32 %v648_v26, %v600_v54 }
  0xf0   :  { %vm976_vm9 = vcmp.ge.f32.partialorder %v745_v43, 0.0  ;;  %v1008_v44 = vmul.f32 0.2, %v745_v43 }
  0xf2   :  { %v1040_v46 = vsel %vm976_vm9, %v745_v43, %v1008_v44  ;;  %v751_v47 = vpop.f32.mrf.mxu3 }
  0xf3   :  { %1073 = vst [vmem:[%s2406_s3 + $0x80] sm:$0xff] %v1040_v46  ;;  %v697_v61 = vpop.f32.mrf.mxu2  ;;  %v602_v51 = vpop.f32.mrf.mxu0 }
  0xf4   :  { %v698_v50 = vadd.f32 %v697_v61, %v649_v27  ;;  %v603_v52 = vadd.f32 %v602_v51, %v2215_v39 }
  0xf5   :  { %v651_v36 = vpop.f32.mrf.mxu1 }
  0xf6   :  { %v747_v58 = vadd.f32 %v746_v15, %v698_v50  ;;  %846 = vmatmul.bf16.gmra.mxu0 %v2126_v56  ;;  %v652_v59 = vadd.f32 %v651_v36, %v603_v52 }
  0xf7   :  { %802 = vmatmul.bf16.gmra.mxu3 %v2171_v12 }
  0xf8   :  { %vm978_vm10 = vcmp.ge.f32.partialorder %v747_v58, 0.0  ;;  %v1010_v60 = vmul.f32 0.2, %v747_v58  ;;  %895 = vmatmul.bf16.gmra.mxu1 %v2128_v57  ;;  %1451 = vmatmul.msk.bf16.gmra.mxu2 %vm543_vm0, %v2069_v25 }
  0xfa   :  { %v1042_v0 = vsel %vm978_vm10, %v747_v58, %v1010_v60  ;;  %v754_v37 = vpop.f32.mrf.mxu3 }
  0xfb   :  { %1075 = vst [vmem:[%s2406_s3 + $0x90] sm:$0xff] %v1042_v0  ;;  %v700_v1 = vpop.f32.mrf.mxu2  ;;  %v604_v48 = vpop.f32.mrf.mxu0 }
  0xfc   :  { %v701_v14 = vadd.f32 %v700_v1, %v652_v59  ;;  %v605_v12 = vadd.f32 %v604_v48, %v2215_v39 }
  0xfd   :  { %v653_v56 = vpop.f32.mrf.mxu1 }
  0xfe   :  { %v750_v2 = vadd.f32 %v749_v33, %v701_v14  ;;  %v654_v57 = vadd.f32 %v653_v56, %v605_v12 }
 0x100   :  { %vm980_vm11 = vcmp.ge.f32.partialorder %v750_v2, 0.0  ;;  %v1012_v49 = vmul.f32 0.2, %v750_v2 }
 0x102   :  { %v1044_v13 = vsel %vm980_vm11, %v750_v2, %v1012_v49  ;;  %v756_v53 = vpop.f32.mrf.mxu3 }
 0x103   :  { %1077 = vst [vmem:[%s2406_s3 + $0xa0] sm:$0xff] %v1044_v13  ;;  %v702_v25 = vpop.f32.mrf.mxu2  ;;  %v607_v4 = vpop.f32.mrf.mxu0 }
 0x104   :  { %v703_v3 = vadd.f32 %v702_v25, %v654_v57  ;;  %v608_v5 = vadd.f32 %v607_v4, %v2215_v39 }
 0x105   :  { %v656_v6 = vpop.f32.mrf.mxu1 }
 0x106   :  { %v752_v7 = vadd.f32 %v751_v47, %v703_v3  ;;  %851 = vmatmul.bf16.gmra.mxu0 %v2175_v18  ;;  %v657_v9 = vadd.f32 %v656_v6, %v608_v5 }
 0x107   :  { %807 = vmatmul.bf16.gmra.mxu3 %v2202_v30 }
 0x108   :  { %vm982_vm12 = vcmp.ge.f32.partialorder %v752_v7, 0.0  ;;  %v1014_v8 = vmul.f32 0.2, %v752_v7  ;;  %900 = vmatmul.bf16.gmra.mxu1 %v2177_v19  ;;  %1452 = vmatmul.msk.bf16.gmra.mxu2 %vm543_vm0, %v2124_v55 }
 0x10a   :  { %v1046_v62 = vsel %vm982_vm12, %v752_v7, %v1014_v8  ;;  %v759_v10 = vpop.f32.mrf.mxu3 }
 0x10b   :  { %1079 = vst [vmem:[%s2406_s3 + $0xb0] sm:$0xff] %v1046_v62  ;;  %v705_v24 = vpop.f32.mrf.mxu2  ;;  %v609_v20 = vpop.f32.mrf.mxu0 }
 0x10c   :  { %v706_v11 = vadd.f32 %v705_v24, %v657_v9  ;;  %v610_v30 = vadd.f32 %v609_v20, %v2215_v39 }
 0x10d   :  { %v658_v18 = vpop.f32.mrf.mxu1 }
 0x10e   :  { %v755_v63 = vadd.f32 %v754_v37, %v706_v11  ;;  %v659_v19 = vadd.f32 %v658_v18, %v610_v30 }
 0x110   :  { %vm984_vm13 = vcmp.ge.f32.partialorder %v755_v63, 0.0  ;;  %v1016_v15 = vmul.f32 0.2, %v755_v63 }
 0x112   :  { %v1048_v35 = vsel %vm984_vm13, %v755_v63, %v1016_v15  ;;  %v761_v21 = vpop.f32.mrf.mxu3 }
 0x113   :  { %1081 = vst [vmem:[%s2406_s3 + $0xc0] sm:$0xff] %v1048_v35  ;;  %v707_v55 = vpop.f32.mrf.mxu2  ;;  %v612_v22 = vpop.f32.mrf.mxu0 }
 0x114   :  { %v708_v34 = vadd.f32 %v707_v55, %v659_v19  ;;  %v613_v23 = vadd.f32 %v612_v22, %v2215_v39 }
 0x115   :  { %v661_v16 = vpop.f32.mrf.mxu1 }
 0x116   :  { %v757_v28 = vadd.f32 %v756_v53, %v708_v34  ;;  %856 = vmatmul.bf16.gmra.mxu0 %v2204_v31  ;;  %v662_v29 = vadd.f32 %v661_v16, %v613_v23  ;;  %v2314_v31 = vperm.slane %v2212_v38, 1 }
 0x118   :  { %vm986_vm14 = vcmp.ge.f32.partialorder %v757_v28, 0.0  ;;  %v1018_v45 = vmul.f32 0.2, %v757_v28  ;;  %905 = vmatmul.bf16.gmra.mxu1 %v2206_v32  ;;  %1453 = vmatmul.msk.bf16.gmra.mxu2 %vm543_vm0, %v2173_v17 }
 0x11a   :  { %v1050_v33 = vsel %vm986_vm14, %v757_v28, %v1018_v45  ;;  %v773_v40 = vpop.f32.mrf.mxu3 }
 0x11b   :  { %1083 = vst [vmem:[%s2406_s3 + $0xd0] sm:$0xff] %v1050_v33  ;;  %v710_v41 = vpop.f32.mrf.mxu2  ;;  %v614_v26 = vpop.f32.mrf.mxu0  ;;  %v774_v17 = vadd.f32 %v773_v40, %v2314_v31 }
 0x11c   :  { %v711_v42 = vadd.f32 %v710_v41, %v662_v29  ;;  %v615_v44 = vadd.f32 %v614_v26, %v2215_v39 }
 0x11d   :  { %v663_v43 = vpop.f32.mrf.mxu1 }
 0x11e   :  { %v760_v54 = vadd.f32 %v759_v10, %v711_v42  ;;  %v664_v27 = vadd.f32 %v663_v43, %v615_v44 }
 0x120   :  { %vm988_vm15 = vcmp.ge.f32.partialorder %v760_v54, 0.0  ;;  %v1020_v32 = vmul.f32 0.2, %v760_v54 }
 0x122   :  { %v1052_v46 = vsel %vm988_vm15, %v760_v54, %v1020_v32  ;;  %v775_v47 = vpop.f32.mrf.mxu3 }
 0x123   :  { %1085 = vst [vmem:[%s2406_s3 + $0xe0] sm:$0xff] %v1052_v46  ;;  %v712_v61 = vpop.f32.mrf.mxu2  ;;  %v822_v51 = vpop.f32.mrf.mxu0  ;;  %v776_v37 = vadd.f32 %v775_v47, %v2314_v31 }
 0x124   :  { %v713_v50 = vadd.f32 %v712_v61, %v664_v27  ;;  %v823_v52 = vadd.f32 %v822_v51, %v774_v17 }
 0x125   :  { %v871_v38 = vpop.f32.mrf.mxu1 }
 0x126   :  { %v762_v36 = vadd.f32 %v761_v21, %v713_v50  ;;  %v872_v39 = vadd.f32 %v871_v38, %v823_v52 }
 0x128   :  { %vm990_vm0 = vcmp.ge.f32.partialorder %v762_v36, 0.0  ;;  %v1022_v58 = vmul.f32 0.2, %v762_v36 }
 0x12a   :  { %v1054_v60 = vsel %vm990_vm0, %v762_v36, %v1022_v58  ;;  %v778_v59 = vpop.f32.mrf.mxu3 }
 0x12b   :  { %1087 = vst [vmem:[%s2406_s3 + $0xf0] sm:$0xff] %v1054_v60  ;;  %v920_v0 = vpop.f32.mrf.mxu2  ;;  %v824_v14 = vpop.f32.mrf.mxu0  ;;  %v779_v49 = vadd.f32 %v778_v59, %v2314_v31 }
 0x12c   :  { %v921_v1 = vadd.f32 %v920_v0, %v872_v39  ;;  %v825_v2 = vadd.f32 %v824_v14, %v776_v37 }
 0x12d   :  { %v873_v48 = vpop.f32.mrf.mxu1 }
 0x12e   :  { %vm961_vm1 = vcmp.ge.f32.partialorder %v921_v1, 0.0  ;;  %v993_v56 = vmul.f32 0.2, %v921_v1  ;;  %v874_v13 = vadd.f32 %v873_v48, %v825_v2 }
 0x130   :  { %v1025_v12 = vsel %vm961_vm1, %v921_v1, %v993_v56 }
 0x131   :  { %1058 = vst.msk [vmem:[%s2406_s3 + $0x8] sm:$0xff] %vm1057_vm2, %v1025_v12 }
 0x132   :  { %v780_v57 = vpop.f32.mrf.mxu3 }
 0x133   :  { %v922_v53 = vpop.f32.mrf.mxu2  ;;  %v827_v3 = vpop.f32.mrf.mxu0  ;;  %v781_v10 = vadd.f32 %v780_v57, %v2314_v31 }
 0x134   :  { %v923_v25 = vadd.f32 %v922_v53, %v874_v13  ;;  %v828_v4 = vadd.f32 %v827_v3, %v779_v49 }
 0x135   :  { %v876_v5 = vpop.f32.mrf.mxu1 }
 0x136   :  { %vm963_vm3 = vcmp.ge.f32.partialorder %v923_v25, 0.0  ;;  %v995_v6 = vmul.f32 0.2, %v923_v25  ;;  %v877_v8 = vadd.f32 %v876_v5, %v828_v4 }
 0x138   :  { %v1027_v7 = vsel %vm963_vm3, %v923_v25, %v995_v6 }
 0x139   :  { %1060 = vst.msk [vmem:[%s2406_s3 + $0x18] sm:$0xff] %vm1057_vm2, %v1027_v7 }
 0x13a   :  { %v783_v9 = vpop.f32.mrf.mxu3 }
 0x13b   :  { %v925_v62 = vpop.f32.mrf.mxu2  ;;  %v829_v11 = vpop.f32.mrf.mxu0  ;;  %v784_v15 = vadd.f32 %v783_v9, %v2314_v31 }
 0x13c   :  { %v926_v24 = vadd.f32 %v925_v62, %v877_v8  ;;  %v830_v63 = vadd.f32 %v829_v11, %v781_v10 }
 0x13d   :  { %v878_v20 = vpop.f32.mrf.mxu1 }
 0x13e   :  { %vm965_vm4 = vcmp.ge.f32.partialorder %v926_v24, 0.0  ;;  %v997_v18 = vmul.f32 0.2, %v926_v24  ;;  %v879_v35 = vadd.f32 %v878_v20, %v830_v63 }
 0x140   :  { %v1029_v30 = vsel %vm965_vm4, %v926_v24, %v997_v18 }
 0x141   :  { %1062 = vst.msk [vmem:[%s2406_s3 + $0x28] sm:$0xff] %vm1057_vm2, %v1029_v30 }
 0x142   :  { %v785_v19 = vpop.f32.mrf.mxu3 }
 0x143   :  { %v927_v21 = vpop.f32.mrf.mxu2  ;;  %v832_v34 = vpop.f32.mrf.mxu0  ;;  %v786_v40 = vadd.f32 %v785_v19, %v2314_v31 }
 0x144   :  { %v928_v55 = vadd.f32 %v927_v21, %v879_v35  ;;  %v833_v22 = vadd.f32 %v832_v34, %v784_v15 }
 0x145   :  { %v881_v23 = vpop.f32.mrf.mxu1 }
 0x146   :  { %vm967_vm5 = vcmp.ge.f32.partialorder %v928_v55, 0.0  ;;  %v999_v16 = vmul.f32 0.2, %v928_v55  ;;  %v882_v45 = vadd.f32 %v881_v23, %v833_v22 }
 0x148   :  { %v1031_v28 = vsel %vm967_vm5, %v928_v55, %v999_v16 }
 0x149   :  { %1064 = vst.msk [vmem:[%s2406_s3 + $0x38] sm:$0xff] %vm1057_vm2, %v1031_v28 }
 0x14a   :  { %v788_v29 = vpop.f32.mrf.mxu3 }
 0x14b   :  { %v930_v33 = vpop.f32.mrf.mxu2  ;;  %v834_v42 = vpop.f32.mrf.mxu0  ;;  %v789_v32 = vadd.f32 %v788_v29, %v2314_v31 }
 0x14c   :  { %v931_v41 = vadd.f32 %v930_v33, %v882_v45  ;;  %v835_v54 = vadd.f32 %v834_v42, %v786_v40 }
 0x14d   :  { %v883_v26 = vpop.f32.mrf.mxu1 }
 0x14e   :  { %vm969_vm6 = vcmp.ge.f32.partialorder %v931_v41, 0.0  ;;  %v1001_v43 = vmul.f32 0.2, %v931_v41  ;;  %v884_v17 = vadd.f32 %v883_v26, %v835_v54 }
 0x150   :  { %v1033_v44 = vsel %vm969_vm6, %v931_v41, %v1001_v43 }
 0x151   :  { %1066 = vst.msk [vmem:[%s2406_s3 + $0x48] sm:$0xff] %vm1057_vm2, %v1033_v44 }
 0x152   :  { %v790_v46 = vpop.f32.mrf.mxu3 }
 0x153   :  { %v932_v27 = vpop.f32.mrf.mxu2  ;;  %v837_v61 = vpop.f32.mrf.mxu0  ;;  %v791_v60 = vadd.f32 %v790_v46, %v2314_v31 }
 0x154   :  { %v933_v47 = vadd.f32 %v932_v27, %v884_v17  ;;  %v838_v50 = vadd.f32 %v837_v61, %v789_v32 }
 0x155   :  { %v886_v51 = vpop.f32.mrf.mxu1 }
 0x156   :  { %vm971_vm7 = vcmp.ge.f32.partialorder %v933_v47, 0.0  ;;  %v1003_v52 = vmul.f32 0.2, %v933_v47  ;;  %v887_v36 = vadd.f32 %v886_v51, %v838_v50 }
 0x158   :  { %v1035_v38 = vsel %vm971_vm7, %v933_v47, %v1003_v52 }
 0x159   :  { %1068 = vst.msk [vmem:[%s2406_s3 + $0x58] sm:$0xff] %vm1057_vm2, %v1035_v38 }
 0x15a   :  { %v793_v58 = vpop.f32.mrf.mxu3 }
 0x15b   :  { %v935_v39 = vpop.f32.mrf.mxu2  ;;  %v839_v0 = vpop.f32.mrf.mxu0  ;;  %v794_v56 = vadd.f32 %v793_v58, %v2314_v31 }
 0x15c   :  { %v936_v59 = vadd.f32 %v935_v39, %v887_v36  ;;  %v840_v14 = vadd.f32 %v839_v0, %v791_v60 }
 0x15d   :  { %v888_v37 = vpop.f32.mrf.mxu1 }
 0x15e   :  { %vm973_vm8 = vcmp.ge.f32.partialorder %v936_v59, 0.0  ;;  %v1005_v1 = vmul.f32 0.2, %v936_v59  ;;  %v889_v2 = vadd.f32 %v888_v37, %v840_v14 }
 0x160   :  { %v1037_v48 = vsel %vm973_vm8, %v936_v59, %v1005_v1 }
 0x161   :  { %1070 = vst.msk [vmem:[%s2406_s3 + $0x68] sm:$0xff] %vm1057_vm2, %v1037_v48 }
 0x162   :  { %v795_v12 = vpop.f32.mrf.mxu3 }
 0x163   :  { %v937_v49 = vpop.f32.mrf.mxu2  ;;  %v842_v57 = vpop.f32.mrf.mxu0  ;;  %v796_v8 = vadd.f32 %v795_v12, %v2314_v31 }
 0x164   :  { %v938_v13 = vadd.f32 %v937_v49, %v889_v2  ;;  %v843_v53 = vadd.f32 %v842_v57, %v794_v56 }
 0x165   :  { %v891_v25 = vpop.f32.mrf.mxu1 }
 0x166   :  { %vm975_vm9 = vcmp.ge.f32.partialorder %v938_v13, 0.0  ;;  %v1007_v3 = vmul.f32 0.2, %v938_v13  ;;  %v892_v5 = vadd.f32 %v891_v25, %v843_v53 }
 0x168   :  { %v1039_v4 = vsel %vm975_vm9, %v938_v13, %v1007_v3 }
 0x169   :  { %1072 = vst.msk [vmem:[%s2406_s3 + $0x78] sm:$0xff] %vm1057_vm2, %v1039_v4 }
 0x16a   :  { %v798_v6 = vpop.f32.mrf.mxu3 }
 0x16b   :  { %v940_v7 = vpop.f32.mrf.mxu2  ;;  %v844_v62 = vpop.f32.mrf.mxu0  ;;  %v799_v18 = vadd.f32 %v798_v6, %v2314_v31 }
 0x16c   :  { %v941_v9 = vadd.f32 %v940_v7, %v892_v5  ;;  %v845_v11 = vadd.f32 %v844_v62, %v796_v8 }
 0x16d   :  { %v893_v10 = vpop.f32.mrf.mxu1 }
 0x16e   :  { %vm977_vm10 = vcmp.ge.f32.partialorder %v941_v9, 0.0  ;;  %v1009_v24 = vmul.f32 0.2, %v941_v9  ;;  %v894_v63 = vadd.f32 %v893_v10, %v845_v11 }
 0x170   :  { %v1041_v20 = vsel %vm977_vm10, %v941_v9, %v1009_v24 }
 0x171   :  { %1074 = vst.msk [vmem:[%s2406_s3 + $0x88] sm:$0xff] %vm1057_vm2, %v1041_v20 }
 0x172   :  { %v800_v30 = vpop.f32.mrf.mxu3 }
 0x173   :  { %v942_v15 = vpop.f32.mrf.mxu2  ;;  %v847_v19 = vpop.f32.mrf.mxu0  ;;  %v801_v45 = vadd.f32 %v800_v30, %v2314_v31 }
 0x174   :  { %v943_v35 = vadd.f32 %v942_v15, %v894_v63  ;;  %v848_v21 = vadd.f32 %v847_v19, %v799_v18 }
 0x175   :  { %v896_v55 = vpop.f32.mrf.mxu1 }
 0x176   :  { %vm979_vm11 = vcmp.ge.f32.partialorder %v943_v35, 0.0  ;;  %v1011_v34 = vmul.f32 0.2, %v943_v35  ;;  %v897_v23 = vadd.f32 %v896_v55, %v848_v21 }
 0x178   :  { %v1043_v22 = vsel %vm979_vm11, %v943_v35, %v1011_v34 }
 0x179   :  { %1076 = vst.msk [vmem:[%s2406_s3 + $0x98] sm:$0xff] %vm1057_vm2, %v1043_v22 }
 0x17a   :  { %v803_v28 = vpop.f32.mrf.mxu3 }
 0x17b   :  { %v945_v16 = vpop.f32.mrf.mxu2  ;;  %v849_v33 = vpop.f32.mrf.mxu0  ;;  %v804_v43 = vadd.f32 %v803_v28, %v2314_v31 }
 0x17c   :  { %v946_v29 = vadd.f32 %v945_v16, %v897_v23  ;;  %v850_v42 = vadd.f32 %v849_v33, %v801_v45 }
 0x17d   :  { %v898_v40 = vpop.f32.mrf.mxu1 }
 0x17e   :  { %vm981_vm12 = vcmp.ge.f32.partialorder %v946_v29, 0.0  ;;  %v1013_v41 = vmul.f32 0.2, %v946_v29  ;;  %v899_v54 = vadd.f32 %v898_v40, %v850_v42 }
 0x180   :  { %v1045_v26 = vsel %vm981_vm12, %v946_v29, %v1013_v41 }
 0x181   :  { %1078 = vst.msk [vmem:[%s2406_s3 + $0xa8] sm:$0xff] %vm1057_vm2, %v1045_v26 }
 0x182   :  { %v805_v46 = vpop.f32.mrf.mxu3 }
 0x183   :  { %v947_v44 = vpop.f32.mrf.mxu2  ;;  %v852_v17 = vpop.f32.mrf.mxu0  ;;  %v806_v38 = vadd.f32 %v805_v46, %v2314_v31 }
 0x184   :  { %v948_v32 = vadd.f32 %v947_v44, %v899_v54  ;;  %v853_v27 = vadd.f32 %v852_v17, %v804_v43 }
 0x185   :  { %v901_v47 = vpop.f32.mrf.mxu1 }
 0x186   :  { %vm983_vm13 = vcmp.ge.f32.partialorder %v948_v32, 0.0  ;;  %v1015_v61 = vmul.f32 0.2, %v948_v32  ;;  %v902_v51 = vadd.f32 %v901_v47, %v853_v27 }
 0x188   :  { %v1047_v50 = vsel %vm983_vm13, %v948_v32, %v1015_v61 }
 0x189   :  { %1080 = vst.msk [vmem:[%s2406_s3 + $0xb8] sm:$0xff] %vm1057_vm2, %v1047_v50 }
 0x18a   :  { %v808_v0 = vpop.f32.mrf.mxu3 }
 0x18b   :  { %v950_v52 = vpop.f32.mrf.mxu2  ;;  %v854_v58 = vpop.f32.mrf.mxu0  ;;  %v809_v1 = vadd.f32 %v808_v0, %v2314_v31 }
 0x18c   :  { %v951_v36 = vadd.f32 %v950_v52, %v902_v51  ;;  %v855_v59 = vadd.f32 %v854_v58, %v806_v38 }
 0x18d   :  { %v903_v39 = vpop.f32.mrf.mxu1 }
 0x18e   :  { %vm985_vm14 = vcmp.ge.f32.partialorder %v951_v36, 0.0  ;;  %v1017_v60 = vmul.f32 0.2, %v951_v36  ;;  %v904_v14 = vadd.f32 %v903_v39, %v855_v59 }
 0x190   :  { %v1049_v37 = vsel %vm985_vm14, %v951_v36, %v1017_v60 }
 0x191   :  { %1082 = vst.msk [vmem:[%s2406_s3 + $0xc8] sm:$0xff] %vm1057_vm2, %v1049_v37 }
 0x192   :  { %v810_v25 = vpop.f32.mrf.mxu3 }
 0x193   :  { %v952_v48 = vpop.f32.mrf.mxu2  ;;  %v857_v2 = vpop.f32.mrf.mxu0  ;;  %v811_v4 = vadd.f32 %v810_v25, %v2314_v31 }
 0x194   :  { %v953_v56 = vadd.f32 %v952_v48, %v904_v14  ;;  %v858_v12 = vadd.f32 %v857_v2, %v809_v1 }
 0x195   :  { %v906_v13 = vpop.f32.mrf.mxu1 }
 0x196   :  { %vm987_vm15 = vcmp.ge.f32.partialorder %v953_v56, 0.0  ;;  %v1019_v49 = vmul.f32 0.2, %v953_v56  ;;  %v907_v53 = vadd.f32 %v906_v13, %v858_v12 }
 0x198   :  { %v1051_v57 = vsel %vm987_vm15, %v953_v56, %v1019_v49 }
 0x199   :  { %1084 = vst.msk [vmem:[%s2406_s3 + $0xd8] sm:$0xff] %vm1057_vm2, %v1051_v57 }
 0x19b   :  { %v955_v3 = vpop.f32.mrf.mxu2  ;;  %v859_v6 = vpop.f32.mrf.mxu0 }
 0x19c   :  { %v956_v5 = vadd.f32 %v955_v3, %v907_v53  ;;  %v860_v8 = vadd.f32 %v859_v6, %v811_v4 }
 0x19d   :  { %v908_v62 = vpop.f32.mrf.mxu1 }
 0x19e   :  { %vm989_vm0 = vcmp.ge.f32.partialorder %v956_v5, 0.0  ;;  %v1021_v7 = vmul.f32 0.2, %v956_v5  ;;  %v909_v10 = vadd.f32 %v908_v62, %v860_v8 }
 0x1a0   :  { %v1053_v9 = vsel %vm989_vm0, %v956_v5, %v1021_v7 }
 0x1a1   :  { %1086 = vst.msk [vmem:[%s2406_s3 + $0xe8] sm:$0xff] %vm1057_vm2, %v1053_v9 }
 0x1a3   :  { %v957_v24 = vpop.f32.mrf.mxu2 }
 0x1a4   :  { %v958_v11 = vadd.f32 %v957_v24, %v909_v10 }
 0x1a6   :  { %vm991_vm1 = vcmp.ge.f32.partialorder %v958_v11, 0.0  ;;  %v1023_v20 = vmul.f32 0.2, %v958_v11 }
 0x1a8   :  { %v1055_v18 = vsel %vm991_vm1, %v958_v11, %v1023_v20 }
 0x1a9   :  { %1088 = vst.msk [vmem:[%s2406_s3 + $0xf8] sm:$0xff] %vm1057_vm2, %v1055_v18 }
 0x1aa   :  { %1093 = vsyncpa [#allocation3], 1 }

// kernel: csn_forward.17
= control target key start
LH: loop header
LB: loop body
LE: loop exit
PB: predicated region body
PF: predicated region fallthrough
CT: control target
= control target key end

     0   :  { %8 = vsyncpa [#allocation3], 0  ;;  %s1151_s0 = inlined_call_operand.vmem [shape: bf16[128,192], index: 0, kind: input, shape index: {}]   ;;  %s1152_s1 = inlined_call_operand.vmem [shape: bf16[192,172], index: 1, kind: input, shape index: {}]   ;;  %s1153_s2 = inlined_call_operand.hbm [shape: f32[1,172], index: 2, kind: input, shape index: {}]   ;;  %s1154_s3 = inlined_call_operand.hbm [shape: f32[128,172], index: 3, kind: output, shape index: {}]  }
   0x1   :  { %9 = vsyncpa [#allocation4], 0  ;;  %s19_s14 = sshll.u32 %s1153_s2, 4  ;;  %s813_s15 = smov [#allocation2]   ;;  %s20_s14 = int_to_ptr.hbm [resolvable:$true] %s19_s14 }
   0x2   :  { %s21_s16 = sshll.u32 %s813_s15, 4  ;;  %s22_s16 = int_to_ptr.vmem [resolvable:$true] %s21_s16 }
   0x3   :  { %24 = dma.hbm_to_vmem [thread:$0]  %s20_s14, 32, %s22_s16, [#allocation3]  }
   0x4   :  { %809 = dma.done.wait [#allocation3], 32  }
   0x5   :  { %810 = vsyncadd [#allocation3], 4294967264  ;;  %v663_v0 = vld [vmem:[%s1152_s1 + $0x70] sm:$0xf]  ;;  %v748_v1 = vld [vmem:[%s1152_s1 + $0x74] sm:$0xf0] }
   0x6   :  { %v747_v2 = vld [vmem:[%s1152_s1 + $0x74] sm:$0xf]  ;;  %v664_v3 = vor.u32 %v748_v1, %v663_v0  ;;  %v665_v4 = vld [vmem:[%s1152_s1 + $0x78] sm:$0xf0]  ;;  %v655_v5 = vld [vmem:[%s1152_s1 + $0x60] sm:$0xf] }
   0x7   :  { %v746_v6 = vld [vmem:[%s1152_s1 + $0x64] sm:$0xf0]  ;;  %v668_v7 = vor.u32 %v747_v2, %v665_v4  ;;  %v745_v8 = vld [vmem:[%s1152_s1 + $0x64] sm:$0xf]  ;;  %v657_v9 = vld [vmem:[%s1152_s1 + $0x68] sm:$0xf0] }
   0x8   :  { %293 = vmatpush.bf16.msra.mxu0 %v664_v3  ;;  %v656_v10 = vor.u32 %v746_v6, %v655_v5  ;;  %v647_v11 = vld [vmem:[%s1152_s1 + $0x50] sm:$0xf]  ;;  %v660_v12 = vor.u32 %v745_v8, %v657_v9  ;;  %v744_v13 = vld [vmem:[%s1152_s1 + $0x54] sm:$0xf0]  ;;  %v755_v14 = vld [vmem:[%s1152_s1 + $0xb4] sm:$0xf] }
   0x9   :  { %391 = vmatpush.bf16.msra.mxu2 %v668_v7  ;;  %v697_v15 = vld [vmem:[%s1152_s1 + $0xb8] sm:$0xf0]  ;;  %v743_v16 = vld [vmem:[%s1152_s1 + $0x54] sm:$0xf]  ;;  %v753_v19 = vld [vmem:[%s1152_s1 + $0xa4] sm:$0xf]  ;;  %v648_v21 = vor.u32 %v744_v13, %v647_v11 }
   0xa   :  { %v649_v17 = vld [vmem:[%s1152_s1 + $0x58] sm:$0xf0]  ;;  %v700_v18 = vor.u32 %v755_v14, %v697_v15  ;;  %v689_v20 = vld [vmem:[%s1152_s1 + $0xa8] sm:$0xf0]  ;;  %v695_v23 = vld [vmem:[%s1152_s1 + $0xb0] sm:$0xf] }
   0xb   :  { %v692_v22 = vor.u32 %v753_v19, %v689_v20  ;;  %v756_v24 = vld [vmem:[%s1152_s1 + $0xb4] sm:$0xf0]  ;;  %v652_v25 = vor.u32 %v743_v16, %v649_v17  ;;  %v639_v26 = vld [vmem:[%s1152_s1 + $0x40] sm:$0xf]  ;;  %v742_v27 = vld [vmem:[%s1152_s1 + $0x44] sm:$0xf0] }
   0xc   :  { %294 = vmatpush.bf16.msra.mxu0 %v656_v10  ;;  %444 = vmatpush.bf16.msra.mxu3 %v700_v18  ;;  %v696_v28 = vor.u32 %v756_v24, %v695_v23  ;;  %v751_v29 = vld [vmem:[%s1152_s1 + $0x94] sm:$0xf]  ;;  %v741_v30 = vld [vmem:[%s1152_s1 + $0x44] sm:$0xf]  ;;  %v641_v31 = vld [vmem:[%s1152_s1 + $0x48] sm:$0xf0]  ;;  %v640_v35 = vor.u32 %v742_v27, %v639_v26 }
   0xd   :  { %392 = vmatpush.bf16.msra.mxu2 %v660_v12  ;;  %v681_v32 = vld [vmem:[%s1152_s1 + $0x98] sm:$0xf0]  ;;  %v687_v33 = vld [vmem:[%s1152_s1 + $0xa0] sm:$0xf]  ;;  %v754_v34 = vld [vmem:[%s1152_s1 + $0xa4] sm:$0xf0]  ;;  %v644_v40 = vor.u32 %v741_v30, %v641_v31 }
   0xe   :  { %346 = vmatpush.bf16.msra.mxu1 %v696_v28  ;;  %v631_v36 = vld [vmem:[%s1152_s1 + $0x30] sm:$0xf]  ;;  %v740_v37 = vld [vmem:[%s1152_s1 + $0x34] sm:$0xf0]  ;;  %v684_v38 = vor.u32 %v751_v29, %v681_v32  ;;  %v688_v39 = vor.u32 %v754_v34, %v687_v33  ;;  %v749_v41 = vld [vmem:[%s1152_s1 + $0x84] sm:$0xf] }
   0xf   :  { %v673_v42 = vld [vmem:[%s1152_s1 + $0x88] sm:$0xf0]  ;;  %v679_v43 = vld [vmem:[%s1152_s1 + $0x90] sm:$0xf]  ;;  %v739_v44 = vld [vmem:[%s1152_s1 + $0x34] sm:$0xf]  ;;  %v632_v49 = vor.u32 %v740_v37, %v631_v36 }
  0x10   :  { %295 = vmatpush.bf16.msra.mxu0 %v648_v21  ;;  %445 = vmatpush.bf16.msra.mxu3 %v692_v22  ;;  %v633_v45 = vld [vmem:[%s1152_s1 + $0x38] sm:$0xf0]  ;;  %v752_v46 = vld [vmem:[%s1152_s1 + $0x94] sm:$0xf0]  ;;  %v717_v48 = vld [vmem:[%s1151_s0 + $0x4] sm:$0xf]  ;;  %v676_v50 = vor.u32 %v749_v41, %v673_v42 }
  0x11   :  { %393 = vmatpush.bf16.msra.mxu2 %v652_v25  ;;  %v680_v47 = vor.u32 %v752_v46, %v679_v43  ;;  %v545_v51 = vld [vmem:[%s1151_s0 + $0x8] sm:$0xf0]  ;;  %v671_v52 = vld [vmem:[%s1152_s1 + $0x80] sm:$0xf]  ;;  %v750_v53 = vld [vmem:[%s1152_s1 + $0x84] sm:$0xf0]  ;;  %v636_v54 = vor.u32 %v739_v44, %v633_v45 }
  0x12   :  { %347 = vmatpush.bf16.msra.mxu1 %v688_v39  ;;  %v623_v55 = vld [vmem:[%s1152_s1 + $0x20] sm:$0xf]  ;;  %v738_v56 = vld [vmem:[%s1152_s1 + $0x24] sm:$0xf0]  ;;  %v737_v57 = vld [vmem:[%s1152_s1 + $0x24] sm:$0xf]  ;;  %v548_v59 = vor.u32 %v717_v48, %v545_v51  ;;  %v672_v60 = vor.u32 %v750_v53, %v671_v52 }
  0x13   :  { %v625_v58 = vld [vmem:[%s1152_s1 + $0x28] sm:$0xf0]  ;;  %v624_v61 = vor.u32 %v738_v56, %v623_v55  ;;  %vm268_vm0 = vcmask 523264   ;;  %v615_v63 = vld [vmem:[%s1152_s1 + $0x10] sm:$0xf]  ;;  %vm490_vm1 = vcmask 359424  }
  0x14   :  { %296 = vmatpush.bf16.msra.mxu0 %v640_v35  ;;  %446 = vmatpush.bf16.msra.mxu3 %v684_v38  ;;  %v628_v62 = vor.u32 %v737_v57, %v625_v58  ;;  %v736_v0 = vld [vmem:[%s1152_s1 + $0x14] sm:$0xf0]  ;;  %v735_v1 = vld [vmem:[%s1152_s1 + $0x14] sm:$0xf]  ;;  %v617_v2 = vld [vmem:[%s1152_s1 + $0x18] sm:$0xf0] }
  0x15   :  { %394 = vmatpush.bf16.msra.mxu2 %v644_v40  ;;  %v616_v3 = vor.u32 %v736_v0, %v615_v63  ;;  %v620_v4 = vor.u32 %v735_v1, %v617_v2  ;;  %v607_v5 = vld [vmem:[%s1152_s1] sm:$0xf]  ;;  %v734_v6 = vld [vmem:[%s1152_s1 + $0x4] sm:$0xf0]  ;;  %v733_v7 = vld [vmem:[%s1152_s1 + $0x4] sm:$0xf] }
  0x16   :  { %348 = vmatpush.bf16.msra.mxu1 %v680_v47  ;;  %v609_v8 = vld [vmem:[%s1152_s1 + $0x8] sm:$0xf0]  ;;  %v608_v9 = vor.u32 %v734_v6, %v607_v5  ;;  %v543_v10 = vld [vmem:[%s1151_s0] sm:$0xf]  ;;  %v718_v11 = vld [vmem:[%s1151_s0 + $0x4] sm:$0xf0] }
  0x17   :  { %v612_v12 = vor.u32 %v733_v7, %v609_v8  ;;  %v544_v13 = vor.u32 %v718_v11, %v543_v10  ;;  %v719_v14 = vld [vmem:[%s1151_s0 + $0x14] sm:$0xf]  ;;  %v553_v15 = vld [vmem:[%s1151_s0 + $0x18] sm:$0xf0]  ;;  %v551_v17 = vld [vmem:[%s1151_s0 + $0x10] sm:$0xf] }
  0x18   :  { %297 = vmatpush.bf16.msra.mxu0 %v632_v49  ;;  %447 = vmatpush.bf16.msra.mxu3 %v676_v50  ;;  %v556_v16 = vor.u32 %v719_v14, %v553_v15  ;;  %v720_v18 = vld [vmem:[%s1151_s0 + $0x14] sm:$0xf0]  ;;  %v721_v20 = vld [vmem:[%s1151_s0 + $0x24] sm:$0xf]  ;;  %v561_v21 = vld [vmem:[%s1151_s0 + $0x28] sm:$0xf0] }
  0x19   :  { %395 = vmatpush.bf16.msra.mxu2 %v636_v54  ;;  %v552_v19 = vor.u32 %v720_v18, %v551_v17  ;;  %v564_v22 = vor.u32 %v721_v20, %v561_v21  ;;  %v559_v23 = vld [vmem:[%s1151_s0 + $0x20] sm:$0xf]  ;;  %v722_v24 = vld [vmem:[%s1151_s0 + $0x24] sm:$0xf0]  ;;  %v723_v26 = vld [vmem:[%s1151_s0 + $0x34] sm:$0xf] }
  0x1a   :  { %349 = vmatpush.bf16.msra.mxu1 %v672_v60  ;;  %v560_v25 = vor.u32 %v722_v24, %v559_v23  ;;  %v569_v27 = vld [vmem:[%s1151_s0 + $0x38] sm:$0xf0]  ;;  %v567_v29 = vld [vmem:[%s1151_s0 + $0x30] sm:$0xf]  ;;  %v724_v30 = vld [vmem:[%s1151_s0 + $0x34] sm:$0xf0] }
  0x1b   :  { %709 = vmatmul.msk.bf16.vlgmr.msra.gmra.mxu3 %vm268_vm0, %v548_v59  ;;  %v572_v28 = vor.u32 %v723_v26, %v569_v27  ;;  %v568_v31 = vor.u32 %v724_v30, %v567_v29  ;;  %v725_v32 = vld [vmem:[%s1151_s0 + $0x44] sm:$0xf]  ;;  %v577_v33 = vld [vmem:[%s1151_s0 + $0x48] sm:$0xf0]  ;;  %v575_v35 = vld [vmem:[%s1151_s0 + $0x40] sm:$0xf] }
  0x1c   :  { %298 = vmatpush.bf16.msra.mxu0 %v624_v61  ;;  %v580_v34 = vor.u32 %v725_v32, %v577_v33  ;;  %v726_v36 = vld [vmem:[%s1151_s0 + $0x44] sm:$0xf0]  ;;  %v727_v38 = vld [vmem:[%s1151_s0 + $0x54] sm:$0xf]  ;;  %v585_v39 = vld [vmem:[%s1151_s0 + $0x58] sm:$0xf0] }
  0x1d   :  { %396 = vmatpush.bf16.msra.mxu2 %v628_v62  ;;  %701 = vmatmul.msk.bf16.vlgmr.msra.gmra.mxu1 %vm268_vm0, %v548_v59  ;;  %v576_v37 = vor.u32 %v726_v36, %v575_v35  ;;  %v588_v40 = vor.u32 %v727_v38, %v585_v39  ;;  %v583_v41 = vld [vmem:[%s1151_s0 + $0x50] sm:$0xf]  ;;  %v728_v42 = vld [vmem:[%s1151_s0 + $0x54] sm:$0xf0]  ;;  %v729_v44 = vld [vmem:[%s1151_s0 + $0x64] sm:$0xf] }
  0x1e   :  { %v584_v43 = vor.u32 %v728_v42, %v583_v41  ;;  %v593_v45 = vld [vmem:[%s1151_s0 + $0x68] sm:$0xf0]  ;;  %v591_v47 = vld [vmem:[%s1151_s0 + $0x60] sm:$0xf]  ;;  %v730_v48 = vld [vmem:[%s1151_s0 + $0x64] sm:$0xf0] }
  0x1f   :  { %v596_v46 = vor.u32 %v729_v44, %v593_v45  ;;  %v592_v49 = vor.u32 %v730_v48, %v591_v47  ;;  %v731_v50 = vld [vmem:[%s1151_s0 + $0x74] sm:$0xf]  ;;  %v601_v51 = vld [vmem:[%s1151_s0 + $0x78] sm:$0xf0]  ;;  %v599_v53 = vld [vmem:[%s1151_s0 + $0x70] sm:$0xf] }
  0x20   :  { %299 = vmatpush.bf16.msra.mxu0 %v616_v3  ;;  %v604_v52 = vor.u32 %v731_v50, %v601_v51  ;;  %v732_v54 = vld [vmem:[%s1151_s0 + $0x74] sm:$0xf0]  ;;  %v70_v57 = vld [vmem:[#allocation2] sm:$0x3]  ;;  %s814_s0 = smov [#allocation5]   ;;  %s528_s10 = sshll.u32 %s1154_s3, 4  ;;  %s529_s10 = int_to_ptr.hbm [resolvable:$true] %s528_s10 }
  0x21   :  { %397 = vmatpush.bf16.msra.mxu2 %v620_v4  ;;  %v600_v55 = vor.u32 %v732_v54, %v599_v53  ;;  %v1096_v59 = vperm.slane %v70_v57, 0  ;;  %v1099_v1 = vperm.slane %v70_v57, 1  ;;  %s526_s7 = sshll.u32 %s814_s0, 4  ;;  %s815_s1 = smov 256   ;;  %s527_s7 = int_to_ptr.vmem [resolvable:$true] %s526_s7 }
  0x22   :  { %s816_s11 = smov 16  }
  0x24   :  { %300 = vmatpush.bf16.msra.mxu0 %v608_v9 }
  0x25   :  { %398 = vmatpush.bf16.msra.mxu2 %v612_v12 }
  0x27   :  { %301 = vmatmul.bf16.vlgmr.msra.gmra.mxu0 %v544_v13 }
  0x28   :  { %399 = vmatmul.bf16.vlgmr.msra.gmra.mxu2 %v544_v13 }
  0x2b   :  { %710 = vmatmul.msk.bf16.gmra.mxu3 %vm268_vm0, %v556_v16 }
  0x2d   :  { %702 = vmatmul.msk.bf16.gmra.mxu1 %vm268_vm0, %v556_v16 }
  0x37   :  { %306 = vmatmul.bf16.gmra.mxu0 %v552_v19 }
  0x38   :  { %404 = vmatmul.bf16.gmra.mxu2 %v552_v19 }
  0x3b   :  { %711 = vmatmul.msk.bf16.gmra.mxu3 %vm268_vm0, %v564_v22 }
  0x3d   :  { %703 = vmatmul.msk.bf16.gmra.mxu1 %vm268_vm0, %v564_v22 }
  0x47   :  { %311 = vmatmul.bf16.gmra.mxu0 %v560_v25 }
  0x48   :  { %409 = vmatmul.bf16.gmra.mxu2 %v560_v25 }
  0x4b   :  { %712 = vmatmul.msk.bf16.gmra.mxu3 %vm268_vm0, %v572_v28 }
  0x4d   :  { %704 = vmatmul.msk.bf16.gmra.mxu1 %vm268_vm0, %v572_v28 }
  0x57   :  { %316 = vmatmul.bf16.gmra.mxu0 %v568_v31 }
  0x58   :  { %414 = vmatmul.bf16.gmra.mxu2 %v568_v31 }
  0x5b   :  { %713 = vmatmul.msk.bf16.gmra.mxu3 %vm268_vm0, %v580_v34 }
  0x5d   :  { %705 = vmatmul.msk.bf16.gmra.mxu1 %vm268_vm0, %v580_v34 }
  0x67   :  { %321 = vmatmul.bf16.gmra.mxu0 %v576_v37 }
  0x68   :  { %419 = vmatmul.bf16.gmra.mxu2 %v576_v37 }
  0x6b   :  { %714 = vmatmul.msk.bf16.gmra.mxu3 %vm268_vm0, %v588_v40 }
  0x6d   :  { %706 = vmatmul.msk.bf16.gmra.mxu1 %vm268_vm0, %v588_v40 }
  0x77   :  { %326 = vmatmul.bf16.gmra.mxu0 %v584_v43 }
  0x78   :  { %424 = vmatmul.bf16.gmra.mxu2 %v584_v43 }
  0x7b   :  { %715 = vmatmul.msk.bf16.gmra.mxu3 %vm268_vm0, %v596_v46 }
  0x7d   :  { %707 = vmatmul.msk.bf16.gmra.mxu1 %vm268_vm0, %v596_v46 }
  0x87   :  { %331 = vmatmul.bf16.gmra.mxu0 %v592_v49 }
  0x88   :  { %429 = vmatmul.bf16.gmra.mxu2 %v592_v49 }
  0x8b   :  { %716 = vmatmul.msk.bf16.gmra.mxu3 %vm268_vm0, %v604_v52 }
  0x8d   :  { %708 = vmatmul.msk.bf16.gmra.mxu1 %vm268_vm0, %v604_v52 }
  0x97   :  { %336 = vmatmul.bf16.gmra.mxu0 %v600_v55 }
  0x98   :  { %434 = vmatmul.bf16.gmra.mxu2 %v600_v55 }
  0x9a   :  { %v351_v56 = vpop.f32.mrf.mxu1 }
  0x9e   :  { %v449_v58 = vpop.f32.mrf.mxu3 }
  0xa2   :  { %v353_v60 = vpop.f32.mrf.mxu1 }
  0xa4   :  { %v302_v61 = vpop.f32.mrf.mxu0 }
  0xa5   :  { %v303_v62 = vadd.f32 %v302_v61, %v1096_v59 }
  0xa6   :  { %v451_v63 = vpop.f32.mrf.mxu3 }
  0xa7   :  { %v352_v0 = vadd.f32 %v351_v56, %v303_v62 }
  0xa9   :  { %489 = vst [vmem:[#allocation5] sm:$0xff] %v352_v0 }
  0xaa   :  { %v356_v3 = vpop.f32.mrf.mxu1 }
  0xab   :  { %v400_v2 = vpop.f32.mrf.mxu2 }
  0xac   :  { %v401_v4 = vadd.f32 %v400_v2, %v1099_v1  ;;  %v304_v5 = vpop.f32.mrf.mxu0 }
  0xad   :  { %v305_v6 = vadd.f32 %v304_v5, %v1096_v59 }
  0xae   :  { %v450_v7 = vadd.f32 %v449_v58, %v401_v4  ;;  %v454_v8 = vpop.f32.mrf.mxu3 }
  0xaf   :  { %v354_v9 = vadd.f32 %v353_v60, %v305_v6 }
  0xb0   :  { %491 = vst.msk [vmem:[#allocation5 + $0x8] sm:$0xff] %vm490_vm1, %v450_v7 }
  0xb1   :  { %492 = vst [vmem:[#allocation5 + $0x10] sm:$0xff] %v354_v9 }
  0xb2   :  { %v358_v11 = vpop.f32.mrf.mxu1 }
  0xb3   :  { %v402_v10 = vpop.f32.mrf.mxu2 }
  0xb4   :  { %v403_v12 = vadd.f32 %v402_v10, %v1099_v1  ;;  %v307_v13 = vpop.f32.mrf.mxu0 }
  0xb5   :  { %v308_v14 = vadd.f32 %v307_v13, %v1096_v59 }
  0xb6   :  { %v452_v15 = vadd.f32 %v451_v63, %v403_v12  ;;  %v456_v16 = vpop.f32.mrf.mxu3 }
  0xb7   :  { %v357_v17 = vadd.f32 %v356_v3, %v308_v14 }
  0xb8   :  { %493 = vst.msk [vmem:[#allocation5 + $0x18] sm:$0xff] %vm490_vm1, %v452_v15 }
  0xb9   :  { %494 = vst [vmem:[#allocation5 + $0x20] sm:$0xff] %v357_v17 }
  0xba   :  { %v361_v19 = vpop.f32.mrf.mxu1 }
  0xbb   :  { %v405_v18 = vpop.f32.mrf.mxu2 }
  0xbc   :  { %v406_v20 = vadd.f32 %v405_v18, %v1099_v1  ;;  %v309_v21 = vpop.f32.mrf.mxu0 }
  0xbd   :  { %v310_v22 = vadd.f32 %v309_v21, %v1096_v59 }
  0xbe   :  { %v455_v23 = vadd.f32 %v454_v8, %v406_v20  ;;  %v459_v24 = vpop.f32.mrf.mxu3 }
  0xbf   :  { %v359_v25 = vadd.f32 %v358_v11, %v310_v22 }
  0xc0   :  { %495 = vst.msk [vmem:[#allocation5 + $0x28] sm:$0xff] %vm490_vm1, %v455_v23 }
  0xc1   :  { %496 = vst [vmem:[#allocation5 + $0x30] sm:$0xff] %v359_v25 }
  0xc2   :  { %v363_v27 = vpop.f32.mrf.mxu1 }
  0xc3   :  { %v407_v26 = vpop.f32.mrf.mxu2 }
  0xc4   :  { %v408_v28 = vadd.f32 %v407_v26, %v1099_v1  ;;  %v312_v29 = vpop.f32.mrf.mxu0 }
  0xc5   :  { %v313_v30 = vadd.f32 %v312_v29, %v1096_v59 }
  0xc6   :  { %v457_v31 = vadd.f32 %v456_v16, %v408_v28  ;;  %v461_v32 = vpop.f32.mrf.mxu3 }
  0xc7   :  { %v362_v33 = vadd.f32 %v361_v19, %v313_v30 }
  0xc8   :  { %497 = vst.msk [vmem:[#allocation5 + $0x38] sm:$0xff] %vm490_vm1, %v457_v31 }
  0xc9   :  { %498 = vst [vmem:[#allocation5 + $0x40] sm:$0xff] %v362_v33 }
  0xca   :  { %v366_v35 = vpop.f32.mrf.mxu1 }
  0xcb   :  { %v410_v34 = vpop.f32.mrf.mxu2 }
  0xcc   :  { %v411_v36 = vadd.f32 %v410_v34, %v1099_v1  ;;  %v314_v37 = vpop.f32.mrf.mxu0 }
  0xcd   :  { %v315_v38 = vadd.f32 %v314_v37, %v1096_v59 }
  0xce   :  { %v460_v39 = vadd.f32 %v459_v24, %v411_v36  ;;  %v464_v40 = vpop.f32.mrf.mxu3 }
  0xcf   :  { %v364_v41 = vadd.f32 %v363_v27, %v315_v38 }
  0xd0   :  { %499 = vst.msk [vmem:[#allocation5 + $0x48] sm:$0xff] %vm490_vm1, %v460_v39 }
  0xd1   :  { %500 = vst [vmem:[#allocation5 + $0x50] sm:$0xff] %v364_v41 }
  0xd2   :  { %v368_v43 = vpop.f32.mrf.mxu1 }
  0xd3   :  { %v412_v42 = vpop.f32.mrf.mxu2 }
  0xd4   :  { %v413_v44 = vadd.f32 %v412_v42, %v1099_v1  ;;  %v317_v45 = vpop.f32.mrf.mxu0 }
  0xd5   :  { %v318_v46 = vadd.f32 %v317_v45, %v1096_v59 }
  0xd6   :  { %v462_v47 = vadd.f32 %v461_v32, %v413_v44  ;;  %v466_v48 = vpop.f32.mrf.mxu3 }
  0xd7   :  { %v367_v49 = vadd.f32 %v366_v35, %v318_v46 }
  0xd8   :  { %501 = vst.msk [vmem:[#allocation5 + $0x58] sm:$0xff] %vm490_vm1, %v462_v47 }
  0xd9   :  { %502 = vst [vmem:[#allocation5 + $0x60] sm:$0xff] %v367_v49 }
  0xda   :  { %v371_v51 = vpop.f32.mrf.mxu1 }
  0xdb   :  { %v415_v50 = vpop.f32.mrf.mxu2 }
  0xdc   :  { %v416_v52 = vadd.f32 %v415_v50, %v1099_v1  ;;  %v319_v53 = vpop.f32.mrf.mxu0 }
  0xdd   :  { %v320_v54 = vadd.f32 %v319_v53, %v1096_v59 }
  0xde   :  { %v465_v55 = vadd.f32 %v464_v40, %v416_v52  ;;  %v469_v57 = vpop.f32.mrf.mxu3 }
  0xdf   :  { %v369_v56 = vadd.f32 %v368_v43, %v320_v54 }
  0xe0   :  { %503 = vst.msk [vmem:[#allocation5 + $0x68] sm:$0xff] %vm490_vm1, %v465_v55 }
  0xe1   :  { %504 = vst [vmem:[#allocation5 + $0x70] sm:$0xff] %v369_v56 }
  0xe2   :  { %v373_v60 = vpop.f32.mrf.mxu1 }
  0xe3   :  { %v417_v58 = vpop.f32.mrf.mxu2 }
  0xe4   :  { %v418_v61 = vadd.f32 %v417_v58, %v1099_v1  ;;  %v322_v62 = vpop.f32.mrf.mxu0 }
  0xe5   :  { %v323_v63 = vadd.f32 %v322_v62, %v1096_v59 }
  0xe6   :  { %v467_v0 = vadd.f32 %v466_v48, %v418_v61  ;;  %v471_v3 = vpop.f32.mrf.mxu3 }
  0xe7   :  { %v372_v2 = vadd.f32 %v371_v51, %v323_v63 }
  0xe8   :  { %505 = vst.msk [vmem:[#allocation5 + $0x78] sm:$0xff] %vm490_vm1, %v467_v0 }
  0xe9   :  { %506 = vst [vmem:[#allocation5 + $0x80] sm:$0xff] %v372_v2 }
  0xea   :  { %v376_v7 = vpop.f32.mrf.mxu1 }
  0xeb   :  { %v420_v4 = vpop.f32.mrf.mxu2 }
  0xec   :  { %v421_v5 = vadd.f32 %v420_v4, %v1099_v1  ;;  %v324_v6 = vpop.f32.mrf.mxu0 }
  0xed   :  { %v325_v8 = vadd.f32 %v324_v6, %v1096_v59 }
  0xee   :  { %v470_v9 = vadd.f32 %v469_v57, %v421_v5  ;;  %v474_v12 = vpop.f32.mrf.mxu3 }
  0xef   :  { %v374_v10 = vadd.f32 %v373_v60, %v325_v8 }
  0xf0   :  { %507 = vst.msk [vmem:[#allocation5 + $0x88] sm:$0xff] %vm490_vm1, %v470_v9 }
  0xf1   :  { %508 = vst [vmem:[#allocation5 + $0x90] sm:$0xff] %v374_v10 }
  0xf2   :  { %v378_v17 = vpop.f32.mrf.mxu1 }
  0xf3   :  { %v422_v11 = vpop.f32.mrf.mxu2 }
  0xf4   :  { %v423_v13 = vadd.f32 %v422_v11, %v1099_v1  ;;  %v327_v14 = vpop.f32.mrf.mxu0 }
  0xf5   :  { %v328_v15 = vadd.f32 %v327_v14, %v1096_v59 }
  0xf6   :  { %v472_v16 = vadd.f32 %v471_v3, %v423_v13  ;;  %v476_v23 = vpop.f32.mrf.mxu3 }
  0xf7   :  { %v377_v18 = vadd.f32 %v376_v7, %v328_v15 }
  0xf8   :  { %509 = vst.msk [vmem:[#allocation5 + $0x98] sm:$0xff] %vm490_vm1, %v472_v16 }
  0xf9   :  { %510 = vst [vmem:[#allocation5 + $0xa0] sm:$0xff] %v377_v18 }
  0xfa   :  { %v381_v26 = vpop.f32.mrf.mxu1 }
  0xfb   :  { %v425_v19 = vpop.f32.mrf.mxu2 }
  0xfc   :  { %v426_v20 = vadd.f32 %v425_v19, %v1099_v1  ;;  %v329_v21 = vpop.f32.mrf.mxu0 }
  0xfd   :  { %v330_v22 = vadd.f32 %v329_v21, %v1096_v59 }
  0xfe   :  { %v475_v24 = vadd.f32 %v474_v12, %v426_v20  ;;  %v479_v33 = vpop.f32.mrf.mxu3 }
  0xff   :  { %v379_v25 = vadd.f32 %v378_v17, %v330_v22 }
 0x100   :  { %511 = vst.msk [vmem:[#allocation5 + $0xa8] sm:$0xff] %vm490_vm1, %v475_v24 }
 0x101   :  { %512 = vst [vmem:[#allocation5 + $0xb0] sm:$0xff] %v379_v25 }
 0x102   :  { %v383_v34 = vpop.f32.mrf.mxu1 }
 0x103   :  { %v427_v27 = vpop.f32.mrf.mxu2 }
 0x104   :  { %v428_v28 = vadd.f32 %v427_v27, %v1099_v1  ;;  %v332_v29 = vpop.f32.mrf.mxu0 }
 0x105   :  { %v333_v30 = vadd.f32 %v332_v29, %v1096_v59 }
 0x106   :  { %v477_v31 = vadd.f32 %v476_v23, %v428_v28  ;;  %v481_v41 = vpop.f32.mrf.mxu3 }
 0x107   :  { %v382_v32 = vadd.f32 %v381_v26, %v333_v30 }
 0x108   :  { %513 = vst.msk [vmem:[#allocation5 + $0xb8] sm:$0xff] %vm490_vm1, %v477_v31 }
 0x109   :  { %514 = vst [vmem:[#allocation5 + $0xc0] sm:$0xff] %v382_v32 }
 0x10a   :  { %v386_v45 = vpop.f32.mrf.mxu1 }
 0x10b   :  { %v430_v35 = vpop.f32.mrf.mxu2 }
 0x10c   :  { %v431_v36 = vadd.f32 %v430_v35, %v1099_v1  ;;  %v334_v37 = vpop.f32.mrf.mxu0 }
 0x10d   :  { %v335_v38 = vadd.f32 %v334_v37, %v1096_v59 }
 0x10e   :  { %v480_v39 = vadd.f32 %v479_v33, %v431_v36  ;;  %v484_v49 = vpop.f32.mrf.mxu3 }
 0x10f   :  { %v384_v40 = vadd.f32 %v383_v34, %v335_v38 }
 0x110   :  { %515 = vst.msk [vmem:[#allocation5 + $0xc8] sm:$0xff] %vm490_vm1, %v480_v39 }
 0x111   :  { %516 = vst [vmem:[#allocation5 + $0xd0] sm:$0xff] %v384_v40 }
 0x112   :  { %v388_v55 = vpop.f32.mrf.mxu1 }
 0x113   :  { %v432_v42 = vpop.f32.mrf.mxu2 }
 0x114   :  { %v433_v43 = vadd.f32 %v432_v42, %v1099_v1  ;;  %v337_v44 = vpop.f32.mrf.mxu0 }
 0x115   :  { %v338_v46 = vadd.f32 %v337_v44, %v1096_v59 }
 0x116   :  { %v482_v47 = vadd.f32 %v481_v41, %v433_v43  ;;  %v486_v60 = vpop.f32.mrf.mxu3 }
 0x117   :  { %v387_v48 = vadd.f32 %v386_v45, %v338_v46 }
 0x118   :  { %517 = vst.msk [vmem:[#allocation5 + $0xd8] sm:$0xff] %vm490_vm1, %v482_v47 }
 0x119   :  { %518 = vst [vmem:[#allocation5 + $0xe0] sm:$0xff] %v387_v48 }
 0x11b   :  { %v435_v50 = vpop.f32.mrf.mxu2 }
 0x11c   :  { %v436_v51 = vadd.f32 %v435_v50, %v1099_v1  ;;  %v339_v52 = vpop.f32.mrf.mxu0 }
 0x11d   :  { %v340_v53 = vadd.f32 %v339_v52, %v1096_v59 }
 0x11e   :  { %v485_v54 = vadd.f32 %v484_v49, %v436_v51 }
 0x11f   :  { %v389_v56 = vadd.f32 %v388_v55, %v340_v53 }
 0x120   :  { %519 = vst.msk [vmem:[#allocation5 + $0xe8] sm:$0xff] %vm490_vm1, %v485_v54 }
 0x121   :  { %520 = vst [vmem:[#allocation5 + $0xf0] sm:$0xff] %v389_v56 }
 0x123   :  { %v437_v57 = vpop.f32.mrf.mxu2 }
 0x124   :  { %v438_v58 = vadd.f32 %v437_v57, %v1099_v1 }
 0x126   :  { %v487_v61 = vadd.f32 %v486_v60, %v438_v58 }
 0x128   :  { %521 = vst.msk [vmem:[#allocation5 + $0xf8] sm:$0xff] %vm490_vm1, %v487_v61 }
 0x129   :  { %534 = dma.vmem_to_hbm [thread:$0]  %s527_s7, 4096, %s529_s10, [#allocation4], %s815_s1, %s815_s1, %s816_s11  }
 0x12a   :  { %811 = dma.done.wait [#allocation4], 4096  }
 0x12b   :  { %812 = vsyncadd [#allocation4], 4294963200 }
 0x12c   :  { %539 = vsyncpa [#allocation3], 1 }
 0x12d   :  { %540 = vsyncpa [#allocation4], 1 }

</bundles_post_ra>
